<compile_context>
chip_gen: v7x
topology: tpu7x:2x2x1
jax: 0.10.0
libtpu: 0.0.40
codegen_flags: <defaults>
</compile_context>

<pallas_src>
import functools

import jax
import jax.numpy as jnp
from jax import lax
from jax.experimental import pallas as pl
from jax.experimental.pallas import tpu as pltpu


# -----------------------------------------------------------------------------
# Fused Pallas kernel: full RK4 ODE solve for one batch element.
# -----------------------------------------------------------------------------
def _ode_rk4_kernel(x_ref, wt_ref, tu_ref, b_ref, mask_ref, o_ref,
                    *, c, h, w, n_steps):
    """All-VMEM fixed-step RK4 of dy/dt = tanh(conv3x3([t, y]) + b), t in [0,1].

    x_ref    : (c, h*w)     VMEM  initial state, lane-dense spatial layout
    wt_ref   : (9, c, c)    VMEM  per-tap data-channel weights wt[tap, co, ci]
    tu_ref   : (c, h*w)     VMEM  time-channel contribution per unit t
    b_ref    : (c, h*w)     VMEM  bias, pre-broadcast over space
    mask_ref : (9, c, h*w)  VMEM  zero-padding coverage mask per 3x3 tap
    o_ref    : (c, h*w)     VMEM  y(t = 1)
    """
    hw = h * w
    dt = 1.0 / float(n_steps)

    # Loop-invariant operands held in vregs across the whole solve.
    time_unit = tu_ref[...]          # (c, hw)
    bias_plane = b_ref[...]          # (c, hw)

    # Static lane shift per 3x3 tap (tap = kh*3 + kw) on the flattened spatial
    # axis; out-of-image / wrap-around positions are zeroed by the mask.
    shifts = [(kh - 1) * w + (kw - 1) for kh in range(3) for kw in range(3)]

    def odefunc(t, y):
        acc = t * time_unit + bias_plane                       # (c, hw)  VPU
        for tap, s in enumerate(shifts):
            # shifted[ci, p] = y[ci, p + s]   (jnp.roll semantics on the XLU)
            shifted = y if s == 0 else pltpu.roll(y, (-s) % hw, axis=1)
            shifted = shifted * mask_ref[tap]                  # zero padding
            acc = acc + jnp.dot(wt_ref[tap], shifted,          # (c,c)@(c,hw) MXU
                                preferred_element_type=jnp.float32,
                                precision=lax.Precision.HIGHEST)
        return jnp.tanh(acc)                                   # EUP

    def rk4_step(i, y):
        t0 = i.astype(jnp.float32) * dt
        k1 = odefunc(t0, y)
        k2 = odefunc(t0 + 0.5 * dt, y + (0.5 * dt) * k1)
        k3 = odefunc(t0 + 0.5 * dt, y + (0.5 * dt) * k2)
        k4 = odefunc(t0 + dt, y + dt * k3)
        return y + (dt / 6.0) * (k1 + 2.0 * k2 + 2.0 * k3 + k4)

    y_final = lax.fori_loop(0, n_steps, rk4_step, x_ref[...])
    o_ref[...] = y_final.astype(o_ref.dtype)


# -----------------------------------------------------------------------------
# Wrapper: weight preprocessing (glue) + pallas_call.
# -----------------------------------------------------------------------------
def _coverage_masks(h, w):
    """mask[tap, p] = 1 iff 3x3 tap (tap//3, tap%3) reads an in-bounds pixel
    for output position p = i*w + j under 1-pixel zero padding."""
    i = jnp.arange(h)[:, None]
    j = jnp.arange(w)[None, :]
    rows = []
    for kh in range(3):
        for kw in range(3):
            di, dj = kh - 1, kw - 1
            ok = (i + di >= 0) & (i + di < h) & (j + dj >= 0) & (j + dj < w)
            rows.append(ok.reshape(-1))
    return jnp.stack(rows, 0).astype(jnp.float32)              # (9, h*w)


@functools.partial(jax.jit, static_argnames=("n_steps",))
def ode_int_forward(x, weight, bias, n_steps=8):
    n, c, h, w = x.shape
    cout, cin_aug, kh, kw = weight.shape
    assert cout == c and cin_aug == c + 1 and kh == 3 and kw == 3
    hw = h * w

    # Lane-dense state layout: (N, C, H*W); H*W = 256 is a multiple of 128.
    x_flat = x.reshape(n, c, hw).astype(jnp.float32)

    mask_mat = _coverage_masks(h, w)                                    # (9, hw)
    # Time channel folded into an exact per-unit-t plane (border coverage incl).
    w_time = weight[:, 0, :, :].reshape(c, 9).astype(jnp.float32)       # (c, 9)
    time_unit = w_time @ mask_mat                                       # (c, hw)
    # Data-channel taps: wt[tap, co, ci] = weight[co, ci + 1, tap//3, tap%3].
    w_taps = jnp.transpose(weight[:, 1:, :, :], (2, 3, 0, 1)) \
                .reshape(9, c, c).astype(jnp.float32)                   # (9, c, c)
    bias_plane = jnp.broadcast_to(
        bias.astype(jnp.float32).reshape(c, 1), (c, hw))                # (c, hw)
    mask_full = jnp.broadcast_to(mask_mat[:, None, :], (9, c, hw))      # (9,c,hw)

    kernel = functools.partial(_ode_rk4_kernel, c=c, h=h, w=w, n_steps=n_steps)

    out_flat = pl.pallas_call(
        kernel,
        out_shape=jax.ShapeDtypeStruct((n, c, hw), jnp.float32),
        grid=(n,),
        in_specs=[
            pl.BlockSpec((None, c, hw), lambda i: (i, 0, 0)),   # x (per batch)
            pl.BlockSpec((9, c, c), lambda i: (0, 0, 0)),       # per-tap weights
            pl.BlockSpec((c, hw), lambda i: (0, 0)),            # time_unit
            pl.BlockSpec((c, hw), lambda i: (0, 0)),            # bias plane
            pl.BlockSpec((9, c, hw), lambda i: (0, 0, 0)),      # coverage masks
        ],
        out_specs=pl.BlockSpec((None, c, hw), lambda i: (i, 0, 0)),
        compiler_params=pltpu.CompilerParams(
            dimension_semantics=("parallel",)),
    )(x_flat, w_taps, time_unit, bias_plane, mask_full)

    return out_flat.reshape(n, c, h, w)


# -----------------------------------------------------------------------------
# Pure-JAX reference (same fixed-step RK4 + ConcatConv2d semantics).
# -----------------------------------------------------------------------------
def _reference_forward(x, weight, bias, n_steps=8):
    def odefunc(t, y):
        nb, _, hh, ww = y.shape
        t_plane = jnp.full((nb, 1, hh, ww), t, dtype=y.dtype)
        y_aug = jnp.concatenate([t_plane, y], axis=1)
        conv = lax.conv_general_dilated(
            y_aug, weight, window_strides=(1, 1), padding="SAME",
            dimension_numbers=("NCHW", "OIHW", "NCHW"),
            precision=lax.Precision.HIGHEST)
        return jnp.tanh(conv + bias[None, :, None, None])

    dt = 1.0 / n_steps
    y = x
    for i in range(n_steps):
        t0 = i * dt
        k1 = odefunc(t0, y)
        k2 = odefunc(t0 + 0.5 * dt, y + 0.5 * dt * k1)
        k3 = odefunc(t0 + 0.5 * dt, y + 0.5 * dt * k2)
        k4 = odefunc(t0 + dt, y + dt * k3)
        y = y + (dt / 6.0) * (k1 + 2.0 * k2 + 2.0 * k3 + k4)
    return y


# -----------------------------------------------------------------------------
# Demo
# -----------------------------------------------------------------------------
if __name__ == "__main__":
    N, C, H, W = 2, 4, 16, 16          # small shapes consistent with the module

    key = jax.random.PRNGKey(0)
    k_x, k_w, k_b = jax.random.split(key, 3)

    x = jax.random.normal(k_x, (N, C, H, W), dtype=jnp.float32)
    weight = 0.1 * jax.random.normal(k_w, (C, C + 1, 3, 3), dtype=jnp.float32)
    bias = 0.1 * jax.random.normal(k_b, (C,), dtype=jnp.float32)

    out = jax.block_until_ready(ode_int_forward(x, weight, bias))

    assert out.shape == (N, C, H, W)
    assert bool(jnp.all(jnp.isfinite(out)))

    ref = jax.block_until_ready(jax.jit(_reference_forward)(x, weight, bias))
    max_err = float(jnp.max(jnp.abs(out - ref)))
    assert max_err < 2e-2, f"mismatch vs pure-JAX reference: {max_err}"

    print("KERNEL_OK")
</pallas_src>

<mosaic_0001>
module attributes {stable_mosaic.version = 11 : i64} {
  func.func @_ode_rk4_kernel(%arg0: i32, %arg1: memref<1x4x256xf32, #tpu.memory_space<vmem>>, %arg2: memref<9x4x4xf32, #tpu.memory_space<vmem>>, %arg3: memref<4x256xf32, #tpu.memory_space<vmem>>, %arg4: memref<4x256xf32, #tpu.memory_space<vmem>>, %arg5: memref<9x4x256xf32, #tpu.memory_space<vmem>>, %arg6: memref<1x4x256xf32, #tpu.memory_space<vmem>>) attributes {dimension_semantics = [#tpu.dimension_semantics<parallel>], iteration_bounds = array<i64: 2>, scalar_prefetch = 0 : i64, scratch_operands = 0 : i64, tpu.core_type = #tpu.core_type<tc>, window_params = [{transform_indices = @transform_0, window_bounds = array<i64: 1, 4, 256>}, {pipeline_mode = #tpu.pipeline_mode<synchronous>, transform_indices = @transform_1, window_bounds = array<i64: 9, 4, 4>}, {pipeline_mode = #tpu.pipeline_mode<synchronous>, transform_indices = @transform_2, window_bounds = array<i64: 4, 256>}, {pipeline_mode = #tpu.pipeline_mode<synchronous>, transform_indices = @transform_3, window_bounds = array<i64: 4, 256>}, {pipeline_mode = #tpu.pipeline_mode<synchronous>, transform_indices = @transform_4, window_bounds = array<i64: 9, 4, 256>}, {transform_indices = @transform_5, window_bounds = array<i64: 1, 4, 256>}]} {
    %c0 = arith.constant 0 : index
    %c0_0 = arith.constant 0 : index
    %0 = vector.load %arg3[%c0, %c0_0] : memref<4x256xf32, #tpu.memory_space<vmem>>, vector<4x256xf32>
    %c0_1 = arith.constant 0 : index
    %c0_2 = arith.constant 0 : index
    %1 = vector.load %arg4[%c0_1, %c0_2] : memref<4x256xf32, #tpu.memory_space<vmem>>, vector<4x256xf32>
    %c0_3 = arith.constant 0 : index
    %c0_4 = arith.constant 0 : index
    %c0_5 = arith.constant 0 : index
    %2 = vector.load %arg1[%c0_3, %c0_4, %c0_5] : memref<1x4x256xf32, #tpu.memory_space<vmem>>, vector<1x4x256xf32>
    %3 = vector.shape_cast %2 : vector<1x4x256xf32> to vector<4x256xf32>
    %c0_i32 = arith.constant 0 : i32
    %c8_i32 = arith.constant 8 : i32
    %4 = arith.addi %c0_i32, %c8_i32 : i32
    %c1_i32 = arith.constant 1 : i32
    %5 = scf.for %arg7 = %c0_i32 to %4 step %c1_i32 iter_args(%arg8 = %3) -> (vector<4x256xf32>)  : i32 {
      %9 = arith.sitofp %arg7 : i32 to f32
      %cst = arith.constant 1.250000e-01 : f32
      %10 = arith.mulf %9, %cst : f32
      %11 = vector.broadcast %10 : f32 to vector<4x256xf32>
      %12 = arith.mulf %11, %0 : vector<4x256xf32>
      %13 = arith.addf %12, %1 : vector<4x256xf32>
      %c17_i32 = arith.constant 17 : i32
      %14 = tpu.dynamic_rotate %arg8 by %c17_i32 dim 1 : vector<4x256xf32>, i32 -> vector<4x256xf32>
      %c0_10 = arith.constant 0 : index
      %c0_11 = arith.constant 0 : index
      %c0_12 = arith.constant 0 : index
      %15 = vector.load %arg5[%c0_10, %c0_11, %c0_12] : memref<9x4x256xf32, #tpu.memory_space<vmem>>, vector<1x4x256xf32>
      %16 = vector.shape_cast %15 : vector<1x4x256xf32> to vector<4x256xf32>
      %17 = arith.mulf %14, %16 : vector<4x256xf32>
      %c0_13 = arith.constant 0 : index
      %c0_14 = arith.constant 0 : index
      %c0_15 = arith.constant 0 : index
      %18 = vector.load %arg2[%c0_13, %c0_14, %c0_15] : memref<9x4x4xf32, #tpu.memory_space<vmem>>, vector<1x4x4xf32>
      %19 = vector.shape_cast %18 : vector<1x4x4xf32> to vector<4x4xf32>
      %cst_16 = arith.constant dense<0.000000e+00> : vector<4x256xf32>
      %20 = tpu.matmul %19, %17, %cst_16 {dimension_numbers = #tpu.dot_dimension_numbers<[1], [0], [0], [1], [0, 0, 1, 1], [], []>, precision = #tpu.contract_precision<fp32>} : vector<4x4xf32>, vector<4x256xf32>, vector<4x256xf32> -> vector<4x256xf32>
      %21 = arith.addf %13, %20 : vector<4x256xf32>
      %c16_i32 = arith.constant 16 : i32
      %22 = tpu.dynamic_rotate %arg8 by %c16_i32 dim 1 : vector<4x256xf32>, i32 -> vector<4x256xf32>
      %c1 = arith.constant 1 : index
      %c0_17 = arith.constant 0 : index
      %c0_18 = arith.constant 0 : index
      %23 = vector.load %arg5[%c1, %c0_17, %c0_18] : memref<9x4x256xf32, #tpu.memory_space<vmem>>, vector<1x4x256xf32>
      %24 = vector.shape_cast %23 : vector<1x4x256xf32> to vector<4x256xf32>
      %25 = arith.mulf %22, %24 : vector<4x256xf32>
      %c1_19 = arith.constant 1 : index
      %c0_20 = arith.constant 0 : index
      %c0_21 = arith.constant 0 : index
      %26 = vector.load %arg2[%c1_19, %c0_20, %c0_21] : memref<9x4x4xf32, #tpu.memory_space<vmem>>, vector<1x4x4xf32>
      %27 = vector.shape_cast %26 : vector<1x4x4xf32> to vector<4x4xf32>
      %cst_22 = arith.constant dense<0.000000e+00> : vector<4x256xf32>
      %28 = tpu.matmul %27, %25, %cst_22 {dimension_numbers = #tpu.dot_dimension_numbers<[1], [0], [0], [1], [0, 0, 1, 1], [], []>, precision = #tpu.contract_precision<fp32>} : vector<4x4xf32>, vector<4x256xf32>, vector<4x256xf32> -> vector<4x256xf32>
      %29 = arith.addf %21, %28 : vector<4x256xf32>
      %c15_i32 = arith.constant 15 : i32
      %30 = tpu.dynamic_rotate %arg8 by %c15_i32 dim 1 : vector<4x256xf32>, i32 -> vector<4x256xf32>
      %c2 = arith.constant 2 : index
      %c0_23 = arith.constant 0 : index
      %c0_24 = arith.constant 0 : index
      %31 = vector.load %arg5[%c2, %c0_23, %c0_24] : memref<9x4x256xf32, #tpu.memory_space<vmem>>, vector<1x4x256xf32>
      %32 = vector.shape_cast %31 : vector<1x4x256xf32> to vector<4x256xf32>
      %33 = arith.mulf %30, %32 : vector<4x256xf32>
      %c2_25 = arith.constant 2 : index
      %c0_26 = arith.constant 0 : index
      %c0_27 = arith.constant 0 : index
      %34 = vector.load %arg2[%c2_25, %c0_26, %c0_27] : memref<9x4x4xf32, #tpu.memory_space<vmem>>, vector<1x4x4xf32>
      %35 = vector.shape_cast %34 : vector<1x4x4xf32> to vector<4x4xf32>
      %cst_28 = arith.constant dense<0.000000e+00> : vector<4x256xf32>
      %36 = tpu.matmul %35, %33, %cst_28 {dimension_numbers = #tpu.dot_dimension_numbers<[1], [0], [0], [1], [0, 0, 1, 1], [], []>, precision = #tpu.contract_precision<fp32>} : vector<4x4xf32>, vector<4x256xf32>, vector<4x256xf32> -> vector<4x256xf32>
      %37 = arith.addf %29, %36 : vector<4x256xf32>
      %c1_i32_29 = arith.constant 1 : i32
      %38 = tpu.dynamic_rotate %arg8 by %c1_i32_29 dim 1 : vector<4x256xf32>, i32 -> vector<4x256xf32>
      %c3 = arith.constant 3 : index
      %c0_30 = arith.constant 0 : index
      %c0_31 = arith.constant 0 : index
      %39 = vector.load %arg5[%c3, %c0_30, %c0_31] : memref<9x4x256xf32, #tpu.memory_space<vmem>>, vector<1x4x256xf32>
      %40 = vector.shape_cast %39 : vector<1x4x256xf32> to vector<4x256xf32>
      %41 = arith.mulf %38, %40 : vector<4x256xf32>
      %c3_32 = arith.constant 3 : index
      %c0_33 = arith.constant 0 : index
      %c0_34 = arith.constant 0 : index
      %42 = vector.load %arg2[%c3_32, %c0_33, %c0_34] : memref<9x4x4xf32, #tpu.memory_space<vmem>>, vector<1x4x4xf32>
      %43 = vector.shape_cast %42 : vector<1x4x4xf32> to vector<4x4xf32>
      %cst_35 = arith.constant dense<0.000000e+00> : vector<4x256xf32>
      %44 = tpu.matmul %43, %41, %cst_35 {dimension_numbers = #tpu.dot_dimension_numbers<[1], [0], [0], [1], [0, 0, 1, 1], [], []>, precision = #tpu.contract_precision<fp32>} : vector<4x4xf32>, vector<4x256xf32>, vector<4x256xf32> -> vector<4x256xf32>
      %45 = arith.addf %37, %44 : vector<4x256xf32>
      %c4 = arith.constant 4 : index
      %c0_36 = arith.constant 0 : index
      %c0_37 = arith.constant 0 : index
      %46 = vector.load %arg5[%c4, %c0_36, %c0_37] : memref<9x4x256xf32, #tpu.memory_space<vmem>>, vector<1x4x256xf32>
      %47 = vector.shape_cast %46 : vector<1x4x256xf32> to vector<4x256xf32>
      %48 = arith.mulf %arg8, %47 : vector<4x256xf32>
      %c4_38 = arith.constant 4 : index
      %c0_39 = arith.constant 0 : index
      %c0_40 = arith.constant 0 : index
      %49 = vector.load %arg2[%c4_38, %c0_39, %c0_40] : memref<9x4x4xf32, #tpu.memory_space<vmem>>, vector<1x4x4xf32>
      %50 = vector.shape_cast %49 : vector<1x4x4xf32> to vector<4x4xf32>
      %cst_41 = arith.constant dense<0.000000e+00> : vector<4x256xf32>
      %51 = tpu.matmul %50, %48, %cst_41 {dimension_numbers = #tpu.dot_dimension_numbers<[1], [0], [0], [1], [0, 0, 1, 1], [], []>, precision = #tpu.contract_precision<fp32>} : vector<4x4xf32>, vector<4x256xf32>, vector<4x256xf32> -> vector<4x256xf32>
      %52 = arith.addf %45, %51 : vector<4x256xf32>
      %c255_i32 = arith.constant 255 : i32
      %53 = tpu.dynamic_rotate %arg8 by %c255_i32 dim 1 : vector<4x256xf32>, i32 -> vector<4x256xf32>
      %c5 = arith.constant 5 : index
      %c0_42 = arith.constant 0 : index
      %c0_43 = arith.constant 0 : index
      %54 = vector.load %arg5[%c5, %c0_42, %c0_43] : memref<9x4x256xf32, #tpu.memory_space<vmem>>, vector<1x4x256xf32>
      %55 = vector.shape_cast %54 : vector<1x4x256xf32> to vector<4x256xf32>
      %56 = arith.mulf %53, %55 : vector<4x256xf32>
      %c5_44 = arith.constant 5 : index
      %c0_45 = arith.constant 0 : index
      %c0_46 = arith.constant 0 : index
      %57 = vector.load %arg2[%c5_44, %c0_45, %c0_46] : memref<9x4x4xf32, #tpu.memory_space<vmem>>, vector<1x4x4xf32>
      %58 = vector.shape_cast %57 : vector<1x4x4xf32> to vector<4x4xf32>
      %cst_47 = arith.constant dense<0.000000e+00> : vector<4x256xf32>
      %59 = tpu.matmul %58, %56, %cst_47 {dimension_numbers = #tpu.dot_dimension_numbers<[1], [0], [0], [1], [0, 0, 1, 1], [], []>, precision = #tpu.contract_precision<fp32>} : vector<4x4xf32>, vector<4x256xf32>, vector<4x256xf32> -> vector<4x256xf32>
      %60 = arith.addf %52, %59 : vector<4x256xf32>
      %c241_i32 = arith.constant 241 : i32
      %61 = tpu.dynamic_rotate %arg8 by %c241_i32 dim 1 : vector<4x256xf32>, i32 -> vector<4x256xf32>
      %c6 = arith.constant 6 : index
      %c0_48 = arith.constant 0 : index
      %c0_49 = arith.constant 0 : index
      %62 = vector.load %arg5[%c6, %c0_48, %c0_49] : memref<9x4x256xf32, #tpu.memory_space<vmem>>, vector<1x4x256xf32>
      %63 = vector.shape_cast %62 : vector<1x4x256xf32> to vector<4x256xf32>
      %64 = arith.mulf %61, %63 : vector<4x256xf32>
      %c6_50 = arith.constant 6 : index
      %c0_51 = arith.constant 0 : index
      %c0_52 = arith.constant 0 : index
      %65 = vector.load %arg2[%c6_50, %c0_51, %c0_52] : memref<9x4x4xf32, #tpu.memory_space<vmem>>, vector<1x4x4xf32>
      %66 = vector.shape_cast %65 : vector<1x4x4xf32> to vector<4x4xf32>
      %cst_53 = arith.constant dense<0.000000e+00> : vector<4x256xf32>
      %67 = tpu.matmul %66, %64, %cst_53 {dimension_numbers = #tpu.dot_dimension_numbers<[1], [0], [0], [1], [0, 0, 1, 1], [], []>, precision = #tpu.contract_precision<fp32>} : vector<4x4xf32>, vector<4x256xf32>, vector<4x256xf32> -> vector<4x256xf32>
      %68 = arith.addf %60, %67 : vector<4x256xf32>
      %c240_i32 = arith.constant 240 : i32
      %69 = tpu.dynamic_rotate %arg8 by %c240_i32 dim 1 : vector<4x256xf32>, i32 -> vector<4x256xf32>
      %c7 = arith.constant 7 : index
      %c0_54 = arith.constant 0 : index
      %c0_55 = arith.constant 0 : index
      %70 = vector.load %arg5[%c7, %c0_54, %c0_55] : memref<9x4x256xf32, #tpu.memory_space<vmem>>, vector<1x4x256xf32>
      %71 = vector.shape_cast %70 : vector<1x4x256xf32> to vector<4x256xf32>
      %72 = arith.mulf %69, %71 : vector<4x256xf32>
      %c7_56 = arith.constant 7 : index
      %c0_57 = arith.constant 0 : index
      %c0_58 = arith.constant 0 : index
      %73 = vector.load %arg2[%c7_56, %c0_57, %c0_58] : memref<9x4x4xf32, #tpu.memory_space<vmem>>, vector<1x4x4xf32>
      %74 = vector.shape_cast %73 : vector<1x4x4xf32> to vector<4x4xf32>
      %cst_59 = arith.constant dense<0.000000e+00> : vector<4x256xf32>
      %75 = tpu.matmul %74, %72, %cst_59 {dimension_numbers = #tpu.dot_dimension_numbers<[1], [0], [0], [1], [0, 0, 1, 1], [], []>, precision = #tpu.contract_precision<fp32>} : vector<4x4xf32>, vector<4x256xf32>, vector<4x256xf32> -> vector<4x256xf32>
      %76 = arith.addf %68, %75 : vector<4x256xf32>
      %c239_i32 = arith.constant 239 : i32
      %77 = tpu.dynamic_rotate %arg8 by %c239_i32 dim 1 : vector<4x256xf32>, i32 -> vector<4x256xf32>
      %c8 = arith.constant 8 : index
      %c0_60 = arith.constant 0 : index
      %c0_61 = arith.constant 0 : index
      %78 = vector.load %arg5[%c8, %c0_60, %c0_61] : memref<9x4x256xf32, #tpu.memory_space<vmem>>, vector<1x4x256xf32>
      %79 = vector.shape_cast %78 : vector<1x4x256xf32> to vector<4x256xf32>
      %80 = arith.mulf %77, %79 : vector<4x256xf32>
      %c8_62 = arith.constant 8 : index
      %c0_63 = arith.constant 0 : index
      %c0_64 = arith.constant 0 : index
      %81 = vector.load %arg2[%c8_62, %c0_63, %c0_64] : memref<9x4x4xf32, #tpu.memory_space<vmem>>, vector<1x4x4xf32>
      %82 = vector.shape_cast %81 : vector<1x4x4xf32> to vector<4x4xf32>
      %cst_65 = arith.constant dense<0.000000e+00> : vector<4x256xf32>
      %83 = tpu.matmul %82, %80, %cst_65 {dimension_numbers = #tpu.dot_dimension_numbers<[1], [0], [0], [1], [0, 0, 1, 1], [], []>, precision = #tpu.contract_precision<fp32>} : vector<4x4xf32>, vector<4x256xf32>, vector<4x256xf32> -> vector<4x256xf32>
      %84 = arith.addf %76, %83 : vector<4x256xf32>
      %85 = math.tanh %84 : vector<4x256xf32>
      %cst_66 = arith.constant 6.250000e-02 : f32
      %86 = arith.addf %10, %cst_66 : f32
      %cst_67 = arith.constant 6.250000e-02 : f32
      %87 = vector.broadcast %cst_67 : f32 to vector<4x256xf32>
      %88 = arith.mulf %87, %85 : vector<4x256xf32>
      %89 = arith.addf %arg8, %88 : vector<4x256xf32>
      %90 = vector.broadcast %86 : f32 to vector<4x256xf32>
      %91 = arith.mulf %90, %0 : vector<4x256xf32>
      %92 = arith.addf %91, %1 : vector<4x256xf32>
      %c17_i32_68 = arith.constant 17 : i32
      %93 = tpu.dynamic_rotate %89 by %c17_i32_68 dim 1 : vector<4x256xf32>, i32 -> vector<4x256xf32>
      %c0_69 = arith.constant 0 : index
      %c0_70 = arith.constant 0 : index
      %c0_71 = arith.constant 0 : index
      %94 = vector.load %arg5[%c0_69, %c0_70, %c0_71] : memref<9x4x256xf32, #tpu.memory_space<vmem>>, vector<1x4x256xf32>
      %95 = vector.shape_cast %94 : vector<1x4x256xf32> to vector<4x256xf32>
      %96 = arith.mulf %93, %95 : vector<4x256xf32>
      %c0_72 = arith.constant 0 : index
      %c0_73 = arith.constant 0 : index
      %c0_74 = arith.constant 0 : index
      %97 = vector.load %arg2[%c0_72, %c0_73, %c0_74] : memref<9x4x4xf32, #tpu.memory_space<vmem>>, vector<1x4x4xf32>
      %98 = vector.shape_cast %97 : vector<1x4x4xf32> to vector<4x4xf32>
      %cst_75 = arith.constant dense<0.000000e+00> : vector<4x256xf32>
      %99 = tpu.matmul %98, %96, %cst_75 {dimension_numbers = #tpu.dot_dimension_numbers<[1], [0], [0], [1], [0, 0, 1, 1], [], []>, precision = #tpu.contract_precision<fp32>} : vector<4x4xf32>, vector<4x256xf32>, vector<4x256xf32> -> vector<4x256xf32>
      %100 = arith.addf %92, %99 : vector<4x256xf32>
      %c16_i32_76 = arith.constant 16 : i32
      %101 = tpu.dynamic_rotate %89 by %c16_i32_76 dim 1 : vector<4x256xf32>, i32 -> vector<4x256xf32>
      %c1_77 = arith.constant 1 : index
      %c0_78 = arith.constant 0 : index
      %c0_79 = arith.constant 0 : index
      %102 = vector.load %arg5[%c1_77, %c0_78, %c0_79] : memref<9x4x256xf32, #tpu.memory_space<vmem>>, vector<1x4x256xf32>
      %103 = vector.shape_cast %102 : vector<1x4x256xf32> to vector<4x256xf32>
      %104 = arith.mulf %101, %103 : vector<4x256xf32>
      %c1_80 = arith.constant 1 : index
      %c0_81 = arith.constant 0 : index
      %c0_82 = arith.constant 0 : index
      %105 = vector.load %arg2[%c1_80, %c0_81, %c0_82] : memref<9x4x4xf32, #tpu.memory_space<vmem>>, vector<1x4x4xf32>
      %106 = vector.shape_cast %105 : vector<1x4x4xf32> to vector<4x4xf32>
      %cst_83 = arith.constant dense<0.000000e+00> : vector<4x256xf32>
      %107 = tpu.matmul %106, %104, %cst_83 {dimension_numbers = #tpu.dot_dimension_numbers<[1], [0], [0], [1], [0, 0, 1, 1], [], []>, precision = #tpu.contract_precision<fp32>} : vector<4x4xf32>, vector<4x256xf32>, vector<4x256xf32> -> vector<4x256xf32>
      %108 = arith.addf %100, %107 : vector<4x256xf32>
      %c15_i32_84 = arith.constant 15 : i32
      %109 = tpu.dynamic_rotate %89 by %c15_i32_84 dim 1 : vector<4x256xf32>, i32 -> vector<4x256xf32>
      %c2_85 = arith.constant 2 : index
      %c0_86 = arith.constant 0 : index
      %c0_87 = arith.constant 0 : index
      %110 = vector.load %arg5[%c2_85, %c0_86, %c0_87] : memref<9x4x256xf32, #tpu.memory_space<vmem>>, vector<1x4x256xf32>
      %111 = vector.shape_cast %110 : vector<1x4x256xf32> to vector<4x256xf32>
      %112 = arith.mulf %109, %111 : vector<4x256xf32>
      %c2_88 = arith.constant 2 : index
      %c0_89 = arith.constant 0 : index
      %c0_90 = arith.constant 0 : index
      %113 = vector.load %arg2[%c2_88, %c0_89, %c0_90] : memref<9x4x4xf32, #tpu.memory_space<vmem>>, vector<1x4x4xf32>
      %114 = vector.shape_cast %113 : vector<1x4x4xf32> to vector<4x4xf32>
      %cst_91 = arith.constant dense<0.000000e+00> : vector<4x256xf32>
      %115 = tpu.matmul %114, %112, %cst_91 {dimension_numbers = #tpu.dot_dimension_numbers<[1], [0], [0], [1], [0, 0, 1, 1], [], []>, precision = #tpu.contract_precision<fp32>} : vector<4x4xf32>, vector<4x256xf32>, vector<4x256xf32> -> vector<4x256xf32>
      %116 = arith.addf %108, %115 : vector<4x256xf32>
      %c1_i32_92 = arith.constant 1 : i32
      %117 = tpu.dynamic_rotate %89 by %c1_i32_92 dim 1 : vector<4x256xf32>, i32 -> vector<4x256xf32>
      %c3_93 = arith.constant 3 : index
      %c0_94 = arith.constant 0 : index
      %c0_95 = arith.constant 0 : index
      %118 = vector.load %arg5[%c3_93, %c0_94, %c0_95] : memref<9x4x256xf32, #tpu.memory_space<vmem>>, vector<1x4x256xf32>
      %119 = vector.shape_cast %118 : vector<1x4x256xf32> to vector<4x256xf32>
      %120 = arith.mulf %117, %119 : vector<4x256xf32>
      %c3_96 = arith.constant 3 : index
      %c0_97 = arith.constant 0 : index
      %c0_98 = arith.constant 0 : index
      %121 = vector.load %arg2[%c3_96, %c0_97, %c0_98] : memref<9x4x4xf32, #tpu.memory_space<vmem>>, vector<1x4x4xf32>
      %122 = vector.shape_cast %121 : vector<1x4x4xf32> to vector<4x4xf32>
      %cst_99 = arith.constant dense<0.000000e+00> : vector<4x256xf32>
      %123 = tpu.matmul %122, %120, %cst_99 {dimension_numbers = #tpu.dot_dimension_numbers<[1], [0], [0], [1], [0, 0, 1, 1], [], []>, precision = #tpu.contract_precision<fp32>} : vector<4x4xf32>, vector<4x256xf32>, vector<4x256xf32> -> vector<4x256xf32>
      %124 = arith.addf %116, %123 : vector<4x256xf32>
      %c4_100 = arith.constant 4 : index
      %c0_101 = arith.constant 0 : index
      %c0_102 = arith.constant 0 : index
      %125 = vector.load %arg5[%c4_100, %c0_101, %c0_102] : memref<9x4x256xf32, #tpu.memory_space<vmem>>, vector<1x4x256xf32>
      %126 = vector.shape_cast %125 : vector<1x4x256xf32> to vector<4x256xf32>
      %127 = arith.mulf %89, %126 : vector<4x256xf32>
      %c4_103 = arith.constant 4 : index
      %c0_104 = arith.constant 0 : index
      %c0_105 = arith.constant 0 : index
      %128 = vector.load %arg2[%c4_103, %c0_104, %c0_105] : memref<9x4x4xf32, #tpu.memory_space<vmem>>, vector<1x4x4xf32>
      %129 = vector.shape_cast %128 : vector<1x4x4xf32> to vector<4x4xf32>
      %cst_106 = arith.constant dense<0.000000e+00> : vector<4x256xf32>
      %130 = tpu.matmul %129, %127, %cst_106 {dimension_numbers = #tpu.dot_dimension_numbers<[1], [0], [0], [1], [0, 0, 1, 1], [], []>, precision = #tpu.contract_precision<fp32>} : vector<4x4xf32>, vector<4x256xf32>, vector<4x256xf32> -> vector<4x256xf32>
      %131 = arith.addf %124, %130 : vector<4x256xf32>
      %c255_i32_107 = arith.constant 255 : i32
      %132 = tpu.dynamic_rotate %89 by %c255_i32_107 dim 1 : vector<4x256xf32>, i32 -> vector<4x256xf32>
      %c5_108 = arith.constant 5 : index
      %c0_109 = arith.constant 0 : index
      %c0_110 = arith.constant 0 : index
      %133 = vector.load %arg5[%c5_108, %c0_109, %c0_110] : memref<9x4x256xf32, #tpu.memory_space<vmem>>, vector<1x4x256xf32>
      %134 = vector.shape_cast %133 : vector<1x4x256xf32> to vector<4x256xf32>
      %135 = arith.mulf %132, %134 : vector<4x256xf32>
      %c5_111 = arith.constant 5 : index
      %c0_112 = arith.constant 0 : index
      %c0_113 = arith.constant 0 : index
      %136 = vector.load %arg2[%c5_111, %c0_112, %c0_113] : memref<9x4x4xf32, #tpu.memory_space<vmem>>, vector<1x4x4xf32>
      %137 = vector.shape_cast %136 : vector<1x4x4xf32> to vector<4x4xf32>
      %cst_114 = arith.constant dense<0.000000e+00> : vector<4x256xf32>
      %138 = tpu.matmul %137, %135, %cst_114 {dimension_numbers = #tpu.dot_dimension_numbers<[1], [0], [0], [1], [0, 0, 1, 1], [], []>, precision = #tpu.contract_precision<fp32>} : vector<4x4xf32>, vector<4x256xf32>, vector<4x256xf32> -> vector<4x256xf32>
      %139 = arith.addf %131, %138 : vector<4x256xf32>
      %c241_i32_115 = arith.constant 241 : i32
      %140 = tpu.dynamic_rotate %89 by %c241_i32_115 dim 1 : vector<4x256xf32>, i32 -> vector<4x256xf32>
      %c6_116 = arith.constant 6 : index
      %c0_117 = arith.constant 0 : index
      %c0_118 = arith.constant 0 : index
      %141 = vector.load %arg5[%c6_116, %c0_117, %c0_118] : memref<9x4x256xf32, #tpu.memory_space<vmem>>, vector<1x4x256xf32>
      %142 = vector.shape_cast %141 : vector<1x4x256xf32> to vector<4x256xf32>
      %143 = arith.mulf %140, %142 : vector<4x256xf32>
      %c6_119 = arith.constant 6 : index
      %c0_120 = arith.constant 0 : index
      %c0_121 = arith.constant 0 : index
      %144 = vector.load %arg2[%c6_119, %c0_120, %c0_121] : memref<9x4x4xf32, #tpu.memory_space<vmem>>, vector<1x4x4xf32>
      %145 = vector.shape_cast %144 : vector<1x4x4xf32> to vector<4x4xf32>
      %cst_122 = arith.constant dense<0.000000e+00> : vector<4x256xf32>
      %146 = tpu.matmul %145, %143, %cst_122 {dimension_numbers = #tpu.dot_dimension_numbers<[1], [0], [0], [1], [0, 0, 1, 1], [], []>, precision = #tpu.contract_precision<fp32>} : vector<4x4xf32>, vector<4x256xf32>, vector<4x256xf32> -> vector<4x256xf32>
      %147 = arith.addf %139, %146 : vector<4x256xf32>
      %c240_i32_123 = arith.constant 240 : i32
      %148 = tpu.dynamic_rotate %89 by %c240_i32_123 dim 1 : vector<4x256xf32>, i32 -> vector<4x256xf32>
      %c7_124 = arith.constant 7 : index
      %c0_125 = arith.constant 0 : index
      %c0_126 = arith.constant 0 : index
      %149 = vector.load %arg5[%c7_124, %c0_125, %c0_126] : memref<9x4x256xf32, #tpu.memory_space<vmem>>, vector<1x4x256xf32>
      %150 = vector.shape_cast %149 : vector<1x4x256xf32> to vector<4x256xf32>
      %151 = arith.mulf %148, %150 : vector<4x256xf32>
      %c7_127 = arith.constant 7 : index
      %c0_128 = arith.constant 0 : index
      %c0_129 = arith.constant 0 : index
      %152 = vector.load %arg2[%c7_127, %c0_128, %c0_129] : memref<9x4x4xf32, #tpu.memory_space<vmem>>, vector<1x4x4xf32>
      %153 = vector.shape_cast %152 : vector<1x4x4xf32> to vector<4x4xf32>
      %cst_130 = arith.constant dense<0.000000e+00> : vector<4x256xf32>
      %154 = tpu.matmul %153, %151, %cst_130 {dimension_numbers = #tpu.dot_dimension_numbers<[1], [0], [0], [1], [0, 0, 1, 1], [], []>, precision = #tpu.contract_precision<fp32>} : vector<4x4xf32>, vector<4x256xf32>, vector<4x256xf32> -> vector<4x256xf32>
      %155 = arith.addf %147, %154 : vector<4x256xf32>
      %c239_i32_131 = arith.constant 239 : i32
      %156 = tpu.dynamic_rotate %89 by %c239_i32_131 dim 1 : vector<4x256xf32>, i32 -> vector<4x256xf32>
      %c8_132 = arith.constant 8 : index
      %c0_133 = arith.constant 0 : index
      %c0_134 = arith.constant 0 : index
      %157 = vector.load %arg5[%c8_132, %c0_133, %c0_134] : memref<9x4x256xf32, #tpu.memory_space<vmem>>, vector<1x4x256xf32>
      %158 = vector.shape_cast %157 : vector<1x4x256xf32> to vector<4x256xf32>
      %159 = arith.mulf %156, %158 : vector<4x256xf32>
      %c8_135 = arith.constant 8 : index
      %c0_136 = arith.constant 0 : index
      %c0_137 = arith.constant 0 : index
      %160 = vector.load %arg2[%c8_135, %c0_136, %c0_137] : memref<9x4x4xf32, #tpu.memory_space<vmem>>, vector<1x4x4xf32>
      %161 = vector.shape_cast %160 : vector<1x4x4xf32> to vector<4x4xf32>
      %cst_138 = arith.constant dense<0.000000e+00> : vector<4x256xf32>
      %162 = tpu.matmul %161, %159, %cst_138 {dimension_numbers = #tpu.dot_dimension_numbers<[1], [0], [0], [1], [0, 0, 1, 1], [], []>, precision = #tpu.contract_precision<fp32>} : vector<4x4xf32>, vector<4x256xf32>, vector<4x256xf32> -> vector<4x256xf32>
      %163 = arith.addf %155, %162 : vector<4x256xf32>
      %164 = math.tanh %163 : vector<4x256xf32>
      %cst_139 = arith.constant 6.250000e-02 : f32
      %165 = arith.addf %10, %cst_139 : f32
      %cst_140 = arith.constant 6.250000e-02 : f32
      %166 = vector.broadcast %cst_140 : f32 to vector<4x256xf32>
      %167 = arith.mulf %166, %164 : vector<4x256xf32>
      %168 = arith.addf %arg8, %167 : vector<4x256xf32>
      %169 = vector.broadcast %165 : f32 to vector<4x256xf32>
      %170 = arith.mulf %169, %0 : vector<4x256xf32>
      %171 = arith.addf %170, %1 : vector<4x256xf32>
      %c17_i32_141 = arith.constant 17 : i32
      %172 = tpu.dynamic_rotate %168 by %c17_i32_141 dim 1 : vector<4x256xf32>, i32 -> vector<4x256xf32>
      %c0_142 = arith.constant 0 : index
      %c0_143 = arith.constant 0 : index
      %c0_144 = arith.constant 0 : index
      %173 = vector.load %arg5[%c0_142, %c0_143, %c0_144] : memref<9x4x256xf32, #tpu.memory_space<vmem>>, vector<1x4x256xf32>
      %174 = vector.shape_cast %173 : vector<1x4x256xf32> to vector<4x256xf32>
      %175 = arith.mulf %172, %174 : vector<4x256xf32>
      %c0_145 = arith.constant 0 : index
      %c0_146 = arith.constant 0 : index
      %c0_147 = arith.constant 0 : index
      %176 = vector.load %arg2[%c0_145, %c0_146, %c0_147] : memref<9x4x4xf32, #tpu.memory_space<vmem>>, vector<1x4x4xf32>
      %177 = vector.shape_cast %176 : vector<1x4x4xf32> to vector<4x4xf32>
      %cst_148 = arith.constant dense<0.000000e+00> : vector<4x256xf32>
      %178 = tpu.matmul %177, %175, %cst_148 {dimension_numbers = #tpu.dot_dimension_numbers<[1], [0], [0], [1], [0, 0, 1, 1], [], []>, precision = #tpu.contract_precision<fp32>} : vector<4x4xf32>, vector<4x256xf32>, vector<4x256xf32> -> vector<4x256xf32>
      %179 = arith.addf %171, %178 : vector<4x256xf32>
      %c16_i32_149 = arith.constant 16 : i32
      %180 = tpu.dynamic_rotate %168 by %c16_i32_149 dim 1 : vector<4x256xf32>, i32 -> vector<4x256xf32>
      %c1_150 = arith.constant 1 : index
      %c0_151 = arith.constant 0 : index
      %c0_152 = arith.constant 0 : index
      %181 = vector.load %arg5[%c1_150, %c0_151, %c0_152] : memref<9x4x256xf32, #tpu.memory_space<vmem>>, vector<1x4x256xf32>
      %182 = vector.shape_cast %181 : vector<1x4x256xf32> to vector<4x256xf32>
      %183 = arith.mulf %180, %182 : vector<4x256xf32>
      %c1_153 = arith.constant 1 : index
      %c0_154 = arith.constant 0 : index
      %c0_155 = arith.constant 0 : index
      %184 = vector.load %arg2[%c1_153, %c0_154, %c0_155] : memref<9x4x4xf32, #tpu.memory_space<vmem>>, vector<1x4x4xf32>
      %185 = vector.shape_cast %184 : vector<1x4x4xf32> to vector<4x4xf32>
      %cst_156 = arith.constant dense<0.000000e+00> : vector<4x256xf32>
      %186 = tpu.matmul %185, %183, %cst_156 {dimension_numbers = #tpu.dot_dimension_numbers<[1], [0], [0], [1], [0, 0, 1, 1], [], []>, precision = #tpu.contract_precision<fp32>} : vector<4x4xf32>, vector<4x256xf32>, vector<4x256xf32> -> vector<4x256xf32>
      %187 = arith.addf %179, %186 : vector<4x256xf32>
      %c15_i32_157 = arith.constant 15 : i32
      %188 = tpu.dynamic_rotate %168 by %c15_i32_157 dim 1 : vector<4x256xf32>, i32 -> vector<4x256xf32>
      %c2_158 = arith.constant 2 : index
      %c0_159 = arith.constant 0 : index
      %c0_160 = arith.constant 0 : index
      %189 = vector.load %arg5[%c2_158, %c0_159, %c0_160] : memref<9x4x256xf32, #tpu.memory_space<vmem>>, vector<1x4x256xf32>
      %190 = vector.shape_cast %189 : vector<1x4x256xf32> to vector<4x256xf32>
      %191 = arith.mulf %188, %190 : vector<4x256xf32>
      %c2_161 = arith.constant 2 : index
      %c0_162 = arith.constant 0 : index
      %c0_163 = arith.constant 0 : index
      %192 = vector.load %arg2[%c2_161, %c0_162, %c0_163] : memref<9x4x4xf32, #tpu.memory_space<vmem>>, vector<1x4x4xf32>
      %193 = vector.shape_cast %192 : vector<1x4x4xf32> to vector<4x4xf32>
      %cst_164 = arith.constant dense<0.000000e+00> : vector<4x256xf32>
      %194 = tpu.matmul %193, %191, %cst_164 {dimension_numbers = #tpu.dot_dimension_numbers<[1], [0], [0], [1], [0, 0, 1, 1], [], []>, precision = #tpu.contract_precision<fp32>} : vector<4x4xf32>, vector<4x256xf32>, vector<4x256xf32> -> vector<4x256xf32>
      %195 = arith.addf %187, %194 : vector<4x256xf32>
      %c1_i32_165 = arith.constant 1 : i32
      %196 = tpu.dynamic_rotate %168 by %c1_i32_165 dim 1 : vector<4x256xf32>, i32 -> vector<4x256xf32>
      %c3_166 = arith.constant 3 : index
      %c0_167 = arith.constant 0 : index
      %c0_168 = arith.constant 0 : index
      %197 = vector.load %arg5[%c3_166, %c0_167, %c0_168] : memref<9x4x256xf32, #tpu.memory_space<vmem>>, vector<1x4x256xf32>
      %198 = vector.shape_cast %197 : vector<1x4x256xf32> to vector<4x256xf32>
      %199 = arith.mulf %196, %198 : vector<4x256xf32>
      %c3_169 = arith.constant 3 : index
      %c0_170 = arith.constant 0 : index
      %c0_171 = arith.constant 0 : index
      %200 = vector.load %arg2[%c3_169, %c0_170, %c0_171] : memref<9x4x4xf32, #tpu.memory_space<vmem>>, vector<1x4x4xf32>
      %201 = vector.shape_cast %200 : vector<1x4x4xf32> to vector<4x4xf32>
      %cst_172 = arith.constant dense<0.000000e+00> : vector<4x256xf32>
      %202 = tpu.matmul %201, %199, %cst_172 {dimension_numbers = #tpu.dot_dimension_numbers<[1], [0], [0], [1], [0, 0, 1, 1], [], []>, precision = #tpu.contract_precision<fp32>} : vector<4x4xf32>, vector<4x256xf32>, vector<4x256xf32> -> vector<4x256xf32>
      %203 = arith.addf %195, %202 : vector<4x256xf32>
      %c4_173 = arith.constant 4 : index
      %c0_174 = arith.constant 0 : index
      %c0_175 = arith.constant 0 : index
      %204 = vector.load %arg5[%c4_173, %c0_174, %c0_175] : memref<9x4x256xf32, #tpu.memory_space<vmem>>, vector<1x4x256xf32>
      %205 = vector.shape_cast %204 : vector<1x4x256xf32> to vector<4x256xf32>
      %206 = arith.mulf %168, %205 : vector<4x256xf32>
      %c4_176 = arith.constant 4 : index
      %c0_177 = arith.constant 0 : index
      %c0_178 = arith.constant 0 : index
      %207 = vector.load %arg2[%c4_176, %c0_177, %c0_178] : memref<9x4x4xf32, #tpu.memory_space<vmem>>, vector<1x4x4xf32>
      %208 = vector.shape_cast %207 : vector<1x4x4xf32> to vector<4x4xf32>
      %cst_179 = arith.constant dense<0.000000e+00> : vector<4x256xf32>
      %209 = tpu.matmul %208, %206, %cst_179 {dimension_numbers = #tpu.dot_dimension_numbers<[1], [0], [0], [1], [0, 0, 1, 1], [], []>, precision = #tpu.contract_precision<fp32>} : vector<4x4xf32>, vector<4x256xf32>, vector<4x256xf32> -> vector<4x256xf32>
      %210 = arith.addf %203, %209 : vector<4x256xf32>
      %c255_i32_180 = arith.constant 255 : i32
      %211 = tpu.dynamic_rotate %168 by %c255_i32_180 dim 1 : vector<4x256xf32>, i32 -> vector<4x256xf32>
      %c5_181 = arith.constant 5 : index
      %c0_182 = arith.constant 0 : index
      %c0_183 = arith.constant 0 : index
      %212 = vector.load %arg5[%c5_181, %c0_182, %c0_183] : memref<9x4x256xf32, #tpu.memory_space<vmem>>, vector<1x4x256xf32>
      %213 = vector.shape_cast %212 : vector<1x4x256xf32> to vector<4x256xf32>
      %214 = arith.mulf %211, %213 : vector<4x256xf32>
      %c5_184 = arith.constant 5 : index
      %c0_185 = arith.constant 0 : index
      %c0_186 = arith.constant 0 : index
      %215 = vector.load %arg2[%c5_184, %c0_185, %c0_186] : memref<9x4x4xf32, #tpu.memory_space<vmem>>, vector<1x4x4xf32>
      %216 = vector.shape_cast %215 : vector<1x4x4xf32> to vector<4x4xf32>
      %cst_187 = arith.constant dense<0.000000e+00> : vector<4x256xf32>
      %217 = tpu.matmul %216, %214, %cst_187 {dimension_numbers = #tpu.dot_dimension_numbers<[1], [0], [0], [1], [0, 0, 1, 1], [], []>, precision = #tpu.contract_precision<fp32>} : vector<4x4xf32>, vector<4x256xf32>, vector<4x256xf32> -> vector<4x256xf32>
      %218 = arith.addf %210, %217 : vector<4x256xf32>
      %c241_i32_188 = arith.constant 241 : i32
      %219 = tpu.dynamic_rotate %168 by %c241_i32_188 dim 1 : vector<4x256xf32>, i32 -> vector<4x256xf32>
      %c6_189 = arith.constant 6 : index
      %c0_190 = arith.constant 0 : index
      %c0_191 = arith.constant 0 : index
      %220 = vector.load %arg5[%c6_189, %c0_190, %c0_191] : memref<9x4x256xf32, #tpu.memory_space<vmem>>, vector<1x4x256xf32>
      %221 = vector.shape_cast %220 : vector<1x4x256xf32> to vector<4x256xf32>
      %222 = arith.mulf %219, %221 : vector<4x256xf32>
      %c6_192 = arith.constant 6 : index
      %c0_193 = arith.constant 0 : index
      %c0_194 = arith.constant 0 : index
      %223 = vector.load %arg2[%c6_192, %c0_193, %c0_194] : memref<9x4x4xf32, #tpu.memory_space<vmem>>, vector<1x4x4xf32>
      %224 = vector.shape_cast %223 : vector<1x4x4xf32> to vector<4x4xf32>
      %cst_195 = arith.constant dense<0.000000e+00> : vector<4x256xf32>
      %225 = tpu.matmul %224, %222, %cst_195 {dimension_numbers = #tpu.dot_dimension_numbers<[1], [0], [0], [1], [0, 0, 1, 1], [], []>, precision = #tpu.contract_precision<fp32>} : vector<4x4xf32>, vector<4x256xf32>, vector<4x256xf32> -> vector<4x256xf32>
      %226 = arith.addf %218, %225 : vector<4x256xf32>
      %c240_i32_196 = arith.constant 240 : i32
      %227 = tpu.dynamic_rotate %168 by %c240_i32_196 dim 1 : vector<4x256xf32>, i32 -> vector<4x256xf32>
      %c7_197 = arith.constant 7 : index
      %c0_198 = arith.constant 0 : index
      %c0_199 = arith.constant 0 : index
      %228 = vector.load %arg5[%c7_197, %c0_198, %c0_199] : memref<9x4x256xf32, #tpu.memory_space<vmem>>, vector<1x4x256xf32>
      %229 = vector.shape_cast %228 : vector<1x4x256xf32> to vector<4x256xf32>
      %230 = arith.mulf %227, %229 : vector<4x256xf32>
      %c7_200 = arith.constant 7 : index
      %c0_201 = arith.constant 0 : index
      %c0_202 = arith.constant 0 : index
      %231 = vector.load %arg2[%c7_200, %c0_201, %c0_202] : memref<9x4x4xf32, #tpu.memory_space<vmem>>, vector<1x4x4xf32>
      %232 = vector.shape_cast %231 : vector<1x4x4xf32> to vector<4x4xf32>
      %cst_203 = arith.constant dense<0.000000e+00> : vector<4x256xf32>
      %233 = tpu.matmul %232, %230, %cst_203 {dimension_numbers = #tpu.dot_dimension_numbers<[1], [0], [0], [1], [0, 0, 1, 1], [], []>, precision = #tpu.contract_precision<fp32>} : vector<4x4xf32>, vector<4x256xf32>, vector<4x256xf32> -> vector<4x256xf32>
      %234 = arith.addf %226, %233 : vector<4x256xf32>
      %c239_i32_204 = arith.constant 239 : i32
      %235 = tpu.dynamic_rotate %168 by %c239_i32_204 dim 1 : vector<4x256xf32>, i32 -> vector<4x256xf32>
      %c8_205 = arith.constant 8 : index
      %c0_206 = arith.constant 0 : index
      %c0_207 = arith.constant 0 : index
      %236 = vector.load %arg5[%c8_205, %c0_206, %c0_207] : memref<9x4x256xf32, #tpu.memory_space<vmem>>, vector<1x4x256xf32>
      %237 = vector.shape_cast %236 : vector<1x4x256xf32> to vector<4x256xf32>
      %238 = arith.mulf %235, %237 : vector<4x256xf32>
      %c8_208 = arith.constant 8 : index
      %c0_209 = arith.constant 0 : index
      %c0_210 = arith.constant 0 : index
      %239 = vector.load %arg2[%c8_208, %c0_209, %c0_210] : memref<9x4x4xf32, #tpu.memory_space<vmem>>, vector<1x4x4xf32>
      %240 = vector.shape_cast %239 : vector<1x4x4xf32> to vector<4x4xf32>
      %cst_211 = arith.constant dense<0.000000e+00> : vector<4x256xf32>
      %241 = tpu.matmul %240, %238, %cst_211 {dimension_numbers = #tpu.dot_dimension_numbers<[1], [0], [0], [1], [0, 0, 1, 1], [], []>, precision = #tpu.contract_precision<fp32>} : vector<4x4xf32>, vector<4x256xf32>, vector<4x256xf32> -> vector<4x256xf32>
      %242 = arith.addf %234, %241 : vector<4x256xf32>
      %243 = math.tanh %242 : vector<4x256xf32>
      %cst_212 = arith.constant 1.250000e-01 : f32
      %244 = arith.addf %10, %cst_212 : f32
      %cst_213 = arith.constant 1.250000e-01 : f32
      %245 = vector.broadcast %cst_213 : f32 to vector<4x256xf32>
      %246 = arith.mulf %245, %243 : vector<4x256xf32>
      %247 = arith.addf %arg8, %246 : vector<4x256xf32>
      %248 = vector.broadcast %244 : f32 to vector<4x256xf32>
      %249 = arith.mulf %248, %0 : vector<4x256xf32>
      %250 = arith.addf %249, %1 : vector<4x256xf32>
      %c17_i32_214 = arith.constant 17 : i32
      %251 = tpu.dynamic_rotate %247 by %c17_i32_214 dim 1 : vector<4x256xf32>, i32 -> vector<4x256xf32>
      %c0_215 = arith.constant 0 : index
      %c0_216 = arith.constant 0 : index
      %c0_217 = arith.constant 0 : index
      %252 = vector.load %arg5[%c0_215, %c0_216, %c0_217] : memref<9x4x256xf32, #tpu.memory_space<vmem>>, vector<1x4x256xf32>
      %253 = vector.shape_cast %252 : vector<1x4x256xf32> to vector<4x256xf32>
      %254 = arith.mulf %251, %253 : vector<4x256xf32>
      %c0_218 = arith.constant 0 : index
      %c0_219 = arith.constant 0 : index
      %c0_220 = arith.constant 0 : index
      %255 = vector.load %arg2[%c0_218, %c0_219, %c0_220] : memref<9x4x4xf32, #tpu.memory_space<vmem>>, vector<1x4x4xf32>
      %256 = vector.shape_cast %255 : vector<1x4x4xf32> to vector<4x4xf32>
      %cst_221 = arith.constant dense<0.000000e+00> : vector<4x256xf32>
      %257 = tpu.matmul %256, %254, %cst_221 {dimension_numbers = #tpu.dot_dimension_numbers<[1], [0], [0], [1], [0, 0, 1, 1], [], []>, precision = #tpu.contract_precision<fp32>} : vector<4x4xf32>, vector<4x256xf32>, vector<4x256xf32> -> vector<4x256xf32>
      %258 = arith.addf %250, %257 : vector<4x256xf32>
      %c16_i32_222 = arith.constant 16 : i32
      %259 = tpu.dynamic_rotate %247 by %c16_i32_222 dim 1 : vector<4x256xf32>, i32 -> vector<4x256xf32>
      %c1_223 = arith.constant 1 : index
      %c0_224 = arith.constant 0 : index
      %c0_225 = arith.constant 0 : index
      %260 = vector.load %arg5[%c1_223, %c0_224, %c0_225] : memref<9x4x256xf32, #tpu.memory_space<vmem>>, vector<1x4x256xf32>
      %261 = vector.shape_cast %260 : vector<1x4x256xf32> to vector<4x256xf32>
      %262 = arith.mulf %259, %261 : vector<4x256xf32>
      %c1_226 = arith.constant 1 : index
      %c0_227 = arith.constant 0 : index
      %c0_228 = arith.constant 0 : index
      %263 = vector.load %arg2[%c1_226, %c0_227, %c0_228] : memref<9x4x4xf32, #tpu.memory_space<vmem>>, vector<1x4x4xf32>
      %264 = vector.shape_cast %263 : vector<1x4x4xf32> to vector<4x4xf32>
      %cst_229 = arith.constant dense<0.000000e+00> : vector<4x256xf32>
      %265 = tpu.matmul %264, %262, %cst_229 {dimension_numbers = #tpu.dot_dimension_numbers<[1], [0], [0], [1], [0, 0, 1, 1], [], []>, precision = #tpu.contract_precision<fp32>} : vector<4x4xf32>, vector<4x256xf32>, vector<4x256xf32> -> vector<4x256xf32>
      %266 = arith.addf %258, %265 : vector<4x256xf32>
      %c15_i32_230 = arith.constant 15 : i32
      %267 = tpu.dynamic_rotate %247 by %c15_i32_230 dim 1 : vector<4x256xf32>, i32 -> vector<4x256xf32>
      %c2_231 = arith.constant 2 : index
      %c0_232 = arith.constant 0 : index
      %c0_233 = arith.constant 0 : index
      %268 = vector.load %arg5[%c2_231, %c0_232, %c0_233] : memref<9x4x256xf32, #tpu.memory_space<vmem>>, vector<1x4x256xf32>
      %269 = vector.shape_cast %268 : vector<1x4x256xf32> to vector<4x256xf32>
      %270 = arith.mulf %267, %269 : vector<4x256xf32>
      %c2_234 = arith.constant 2 : index
      %c0_235 = arith.constant 0 : index
      %c0_236 = arith.constant 0 : index
      %271 = vector.load %arg2[%c2_234, %c0_235, %c0_236] : memref<9x4x4xf32, #tpu.memory_space<vmem>>, vector<1x4x4xf32>
      %272 = vector.shape_cast %271 : vector<1x4x4xf32> to vector<4x4xf32>
      %cst_237 = arith.constant dense<0.000000e+00> : vector<4x256xf32>
      %273 = tpu.matmul %272, %270, %cst_237 {dimension_numbers = #tpu.dot_dimension_numbers<[1], [0], [0], [1], [0, 0, 1, 1], [], []>, precision = #tpu.contract_precision<fp32>} : vector<4x4xf32>, vector<4x256xf32>, vector<4x256xf32> -> vector<4x256xf32>
      %274 = arith.addf %266, %273 : vector<4x256xf32>
      %c1_i32_238 = arith.constant 1 : i32
      %275 = tpu.dynamic_rotate %247 by %c1_i32_238 dim 1 : vector<4x256xf32>, i32 -> vector<4x256xf32>
      %c3_239 = arith.constant 3 : index
      %c0_240 = arith.constant 0 : index
      %c0_241 = arith.constant 0 : index
      %276 = vector.load %arg5[%c3_239, %c0_240, %c0_241] : memref<9x4x256xf32, #tpu.memory_space<vmem>>, vector<1x4x256xf32>
      %277 = vector.shape_cast %276 : vector<1x4x256xf32> to vector<4x256xf32>
      %278 = arith.mulf %275, %277 : vector<4x256xf32>
      %c3_242 = arith.constant 3 : index
      %c0_243 = arith.constant 0 : index
      %c0_244 = arith.constant 0 : index
      %279 = vector.load %arg2[%c3_242, %c0_243, %c0_244] : memref<9x4x4xf32, #tpu.memory_space<vmem>>, vector<1x4x4xf32>
      %280 = vector.shape_cast %279 : vector<1x4x4xf32> to vector<4x4xf32>
      %cst_245 = arith.constant dense<0.000000e+00> : vector<4x256xf32>
      %281 = tpu.matmul %280, %278, %cst_245 {dimension_numbers = #tpu.dot_dimension_numbers<[1], [0], [0], [1], [0, 0, 1, 1], [], []>, precision = #tpu.contract_precision<fp32>} : vector<4x4xf32>, vector<4x256xf32>, vector<4x256xf32> -> vector<4x256xf32>
      %282 = arith.addf %274, %281 : vector<4x256xf32>
      %c4_246 = arith.constant 4 : index
      %c0_247 = arith.constant 0 : index
      %c0_248 = arith.constant 0 : index
      %283 = vector.load %arg5[%c4_246, %c0_247, %c0_248] : memref<9x4x256xf32, #tpu.memory_space<vmem>>, vector<1x4x256xf32>
      %284 = vector.shape_cast %283 : vector<1x4x256xf32> to vector<4x256xf32>
      %285 = arith.mulf %247, %284 : vector<4x256xf32>
      %c4_249 = arith.constant 4 : index
      %c0_250 = arith.constant 0 : index
      %c0_251 = arith.constant 0 : index
      %286 = vector.load %arg2[%c4_249, %c0_250, %c0_251] : memref<9x4x4xf32, #tpu.memory_space<vmem>>, vector<1x4x4xf32>
      %287 = vector.shape_cast %286 : vector<1x4x4xf32> to vector<4x4xf32>
      %cst_252 = arith.constant dense<0.000000e+00> : vector<4x256xf32>
      %288 = tpu.matmul %287, %285, %cst_252 {dimension_numbers = #tpu.dot_dimension_numbers<[1], [0], [0], [1], [0, 0, 1, 1], [], []>, precision = #tpu.contract_precision<fp32>} : vector<4x4xf32>, vector<4x256xf32>, vector<4x256xf32> -> vector<4x256xf32>
      %289 = arith.addf %282, %288 : vector<4x256xf32>
      %c255_i32_253 = arith.constant 255 : i32
      %290 = tpu.dynamic_rotate %247 by %c255_i32_253 dim 1 : vector<4x256xf32>, i32 -> vector<4x256xf32>
      %c5_254 = arith.constant 5 : index
      %c0_255 = arith.constant 0 : index
      %c0_256 = arith.constant 0 : index
      %291 = vector.load %arg5[%c5_254, %c0_255, %c0_256] : memref<9x4x256xf32, #tpu.memory_space<vmem>>, vector<1x4x256xf32>
      %292 = vector.shape_cast %291 : vector<1x4x256xf32> to vector<4x256xf32>
      %293 = arith.mulf %290, %292 : vector<4x256xf32>
      %c5_257 = arith.constant 5 : index
      %c0_258 = arith.constant 0 : index
      %c0_259 = arith.constant 0 : index
      %294 = vector.load %arg2[%c5_257, %c0_258, %c0_259] : memref<9x4x4xf32, #tpu.memory_space<vmem>>, vector<1x4x4xf32>
      %295 = vector.shape_cast %294 : vector<1x4x4xf32> to vector<4x4xf32>
      %cst_260 = arith.constant dense<0.000000e+00> : vector<4x256xf32>
      %296 = tpu.matmul %295, %293, %cst_260 {dimension_numbers = #tpu.dot_dimension_numbers<[1], [0], [0], [1], [0, 0, 1, 1], [], []>, precision = #tpu.contract_precision<fp32>} : vector<4x4xf32>, vector<4x256xf32>, vector<4x256xf32> -> vector<4x256xf32>
      %297 = arith.addf %289, %296 : vector<4x256xf32>
      %c241_i32_261 = arith.constant 241 : i32
      %298 = tpu.dynamic_rotate %247 by %c241_i32_261 dim 1 : vector<4x256xf32>, i32 -> vector<4x256xf32>
      %c6_262 = arith.constant 6 : index
      %c0_263 = arith.constant 0 : index
      %c0_264 = arith.constant 0 : index
      %299 = vector.load %arg5[%c6_262, %c0_263, %c0_264] : memref<9x4x256xf32, #tpu.memory_space<vmem>>, vector<1x4x256xf32>
      %300 = vector.shape_cast %299 : vector<1x4x256xf32> to vector<4x256xf32>
      %301 = arith.mulf %298, %300 : vector<4x256xf32>
      %c6_265 = arith.constant 6 : index
      %c0_266 = arith.constant 0 : index
      %c0_267 = arith.constant 0 : index
      %302 = vector.load %arg2[%c6_265, %c0_266, %c0_267] : memref<9x4x4xf32, #tpu.memory_space<vmem>>, vector<1x4x4xf32>
      %303 = vector.shape_cast %302 : vector<1x4x4xf32> to vector<4x4xf32>
      %cst_268 = arith.constant dense<0.000000e+00> : vector<4x256xf32>
      %304 = tpu.matmul %303, %301, %cst_268 {dimension_numbers = #tpu.dot_dimension_numbers<[1], [0], [0], [1], [0, 0, 1, 1], [], []>, precision = #tpu.contract_precision<fp32>} : vector<4x4xf32>, vector<4x256xf32>, vector<4x256xf32> -> vector<4x256xf32>
      %305 = arith.addf %297, %304 : vector<4x256xf32>
      %c240_i32_269 = arith.constant 240 : i32
      %306 = tpu.dynamic_rotate %247 by %c240_i32_269 dim 1 : vector<4x256xf32>, i32 -> vector<4x256xf32>
      %c7_270 = arith.constant 7 : index
      %c0_271 = arith.constant 0 : index
      %c0_272 = arith.constant 0 : index
      %307 = vector.load %arg5[%c7_270, %c0_271, %c0_272] : memref<9x4x256xf32, #tpu.memory_space<vmem>>, vector<1x4x256xf32>
      %308 = vector.shape_cast %307 : vector<1x4x256xf32> to vector<4x256xf32>
      %309 = arith.mulf %306, %308 : vector<4x256xf32>
      %c7_273 = arith.constant 7 : index
      %c0_274 = arith.constant 0 : index
      %c0_275 = arith.constant 0 : index
      %310 = vector.load %arg2[%c7_273, %c0_274, %c0_275] : memref<9x4x4xf32, #tpu.memory_space<vmem>>, vector<1x4x4xf32>
      %311 = vector.shape_cast %310 : vector<1x4x4xf32> to vector<4x4xf32>
      %cst_276 = arith.constant dense<0.000000e+00> : vector<4x256xf32>
      %312 = tpu.matmul %311, %309, %cst_276 {dimension_numbers = #tpu.dot_dimension_numbers<[1], [0], [0], [1], [0, 0, 1, 1], [], []>, precision = #tpu.contract_precision<fp32>} : vector<4x4xf32>, vector<4x256xf32>, vector<4x256xf32> -> vector<4x256xf32>
      %313 = arith.addf %305, %312 : vector<4x256xf32>
      %c239_i32_277 = arith.constant 239 : i32
      %314 = tpu.dynamic_rotate %247 by %c239_i32_277 dim 1 : vector<4x256xf32>, i32 -> vector<4x256xf32>
      %c8_278 = arith.constant 8 : index
      %c0_279 = arith.constant 0 : index
      %c0_280 = arith.constant 0 : index
      %315 = vector.load %arg5[%c8_278, %c0_279, %c0_280] : memref<9x4x256xf32, #tpu.memory_space<vmem>>, vector<1x4x256xf32>
      %316 = vector.shape_cast %315 : vector<1x4x256xf32> to vector<4x256xf32>
      %317 = arith.mulf %314, %316 : vector<4x256xf32>
      %c8_281 = arith.constant 8 : index
      %c0_282 = arith.constant 0 : index
      %c0_283 = arith.constant 0 : index
      %318 = vector.load %arg2[%c8_281, %c0_282, %c0_283] : memref<9x4x4xf32, #tpu.memory_space<vmem>>, vector<1x4x4xf32>
      %319 = vector.shape_cast %318 : vector<1x4x4xf32> to vector<4x4xf32>
      %cst_284 = arith.constant dense<0.000000e+00> : vector<4x256xf32>
      %320 = tpu.matmul %319, %317, %cst_284 {dimension_numbers = #tpu.dot_dimension_numbers<[1], [0], [0], [1], [0, 0, 1, 1], [], []>, precision = #tpu.contract_precision<fp32>} : vector<4x4xf32>, vector<4x256xf32>, vector<4x256xf32> -> vector<4x256xf32>
      %321 = arith.addf %313, %320 : vector<4x256xf32>
      %322 = math.tanh %321 : vector<4x256xf32>
      %cst_285 = arith.constant 2.000000e+00 : f32
      %323 = vector.broadcast %cst_285 : f32 to vector<4x256xf32>
      %324 = arith.mulf %323, %164 : vector<4x256xf32>
      %325 = arith.addf %85, %324 : vector<4x256xf32>
      %cst_286 = arith.constant 2.000000e+00 : f32
      %326 = vector.broadcast %cst_286 : f32 to vector<4x256xf32>
      %327 = arith.mulf %326, %243 : vector<4x256xf32>
      %328 = arith.addf %325, %327 : vector<4x256xf32>
      %329 = arith.addf %328, %322 : vector<4x256xf32>
      %cst_287 = arith.constant 0.020833334 : f32
      %330 = vector.broadcast %cst_287 : f32 to vector<4x256xf32>
      %331 = arith.mulf %330, %329 : vector<4x256xf32>
      %332 = arith.addf %arg8, %331 : vector<4x256xf32>
      scf.yield %332 : vector<4x256xf32>
    }
    %c8_i32_6 = arith.constant 8 : i32
    %c0_7 = arith.constant 0 : index
    %c0_8 = arith.constant 0 : index
    %c0_9 = arith.constant 0 : index
    %6 = vector.load %arg6[%c0_7, %c0_8, %c0_9] : memref<1x4x256xf32, #tpu.memory_space<vmem>>, vector<1x4x256xf32>
    %7 = vector.shape_cast %6 : vector<1x4x256xf32> to vector<4x256xf32>
    %8 = vector.shape_cast %5 : vector<4x256xf32> to vector<1x4x256xf32>
    tpu.vector_store %arg6[%c0_7, %c0_8, %c0_9], %8 {strides = array<i32>} : memref<1x4x256xf32, #tpu.memory_space<vmem>>, vector<1x4x256xf32>,
    return
  }
  func.func @transform_0(%arg0: i32) -> (i32, i32, i32) {
    %c0_i32 = arith.constant 0 : i32
    %c0_i32_0 = arith.constant 0 : i32
    %c0_i32_1 = arith.constant 0 : i32
    return %arg0, %c0_i32, %c0_i32_0 : i32, i32, i32
  }
  func.func @transform_1(%arg0: i32) -> (i32, i32, i32) {
    %c0_i32 = arith.constant 0 : i32
    %c0_i32_0 = arith.constant 0 : i32
    %c0_i32_1 = arith.constant 0 : i32
    %c0_i32_2 = arith.constant 0 : i32
    return %c0_i32, %c0_i32_0, %c0_i32_1 : i32, i32, i32
  }
  func.func @transform_2(%arg0: i32) -> (i32, i32) {
    %c0_i32 = arith.constant 0 : i32
    %c0_i32_0 = arith.constant 0 : i32
    %c0_i32_1 = arith.constant 0 : i32
    return %c0_i32, %c0_i32_0 : i32, i32
  }
  func.func @transform_3(%arg0: i32) -> (i32, i32) {
    %c0_i32 = arith.constant 0 : i32
    %c0_i32_0 = arith.constant 0 : i32
    %c0_i32_1 = arith.constant 0 : i32
    return %c0_i32, %c0_i32_0 : i32, i32
  }
  func.func @transform_4(%arg0: i32) -> (i32, i32, i32) {
    %c0_i32 = arith.constant 0 : i32
    %c0_i32_0 = arith.constant 0 : i32
    %c0_i32_1 = arith.constant 0 : i32
    %c0_i32_2 = arith.constant 0 : i32
    return %c0_i32, %c0_i32_0, %c0_i32_1 : i32, i32, i32
  }
  func.func @transform_5(%arg0: i32) -> (i32, i32, i32) {
    %c0_i32 = arith.constant 0 : i32
    %c0_i32_0 = arith.constant 0 : i32
    %c0_i32_1 = arith.constant 0 : i32
    return %arg0, %c0_i32, %c0_i32_0 : i32, i32, i32
  }
}

</mosaic_0001>

<bundles_post_ra>
// kernel: ode_int_forward.1
= control target key start
LH: loop header
LB: loop body
LE: loop exit
PB: predicated region body
PF: predicated region fallthrough
CT: control target
= control target key end

     0   :  { %s18348_s18 = smov 0   ;;  %s20186_s0 = inlined_call_operand.vmem [shape: f32[2,4,256], index: 0, kind: input, shape index: {}]   ;;  %s20187_s1 = inlined_call_operand.vmem [shape: f32[9,4,4], index: 1, kind: input, shape index: {}]   ;;  %s20188_s2 = inlined_call_operand.vmem [shape: f32[4,256], index: 2, kind: input, shape index: {}]   ;;  %s20189_s3 = inlined_call_operand.vmem [shape: f32[4,256], index: 3, kind: input, shape index: {}]   ;;  %s20190_s4 = inlined_call_operand.vmem [shape: f32[9,4,256], index: 4, kind: input, shape index: {}]   ;;  %s20191_s5 = inlined_call_operand.vmem [shape: f32[2,4,256], index: 5, kind: output, shape index: {}]  }
   0x1 LB: > { %s17834_s19 = sadd.s32 4294967295, %s18299_s18   ;;  %p17838_p0 = scmp.ge.s32.totalorder %s18299_s18, 1  ;;  %s18299_s18 = sphi %s18348_s18, %s15_s18  }
   0x2   : > { %p187_p1 = scmp.lt.s32.totalorder %s18299_s18, 3 }
   0x4   : > { %p188_p2 = pnand %p17838_p0, %p187_p1 }
   0x6   : > { %191 = sbr.rel (%p188_p2) target bundleno = 2318 (0x90e), region = 40 }
   0xd   : > { %p215_p3 = scmp.lt.s32.totalorder %s17834_s19, 1  ;;  %v18359_v0 = vld [vmem:[%s20188_s2] sm:$0xff]  ;;  %s18376_s6 = smov 0  }
   0xe   : > { %20234 = vst [vmem:[#allocation2_spill] sm:$0xff] %v18359_v0  ;;  %v18364_v1 = vld [vmem:[%s20189_s3] sm:$0xff] }
   0xf   : > { %20235 = vst [vmem:[#allocation3_spill] sm:$0xff] %v18364_v1  ;;  %s20303_s19 = smov (!%p215_p3, %s17834_s19), 1 }
  0x10   : > { %s17861_s24 = sshll.u32 %s20303_s19, 3 }
  0x11   : > { %s219_s27 = scalar_lea.vmem %s20186_s0, %s17861_s24  ;;  %s18372_s30 = scalar_lea.vmem %s20191_s5, %s17861_s24 }
  0x12   : > { %v227_v2 = vld [vmem:[%s219_s27] sm:$0xff]  }
  0x13 LB: >> { %v20192_v3 = vmov 0.0   ;;  %s18310_s7 = smov 17   ;;  %s18311_s8 = smov 16   ;;  %v241_v4 = vcombine.high %v18303_v2, %v18303_v2  ;;  %v258_v5 = vld [vmem:[%s20187_s1] sm:$0xf]  ;;  %vm259_vm0 = vcmask 31744   ;;  %v247_v11 = vlaneseq  ;;  %s18307_s6 = sphi %s18376_s6, %s233_s6   ;;  %v18303_v2 = vphi %v227_v2, %v20301_v2  }
  0x14   : >> { %336 = vmatprep.mubr.f32.mxu0 %v20192_v3  ;;  %831 = vmatprep.mubr.f32.mxu1 %v20192_v3  ;;  %s18312_s9 = smov 15   ;;  %s18313_s10 = smov 1   ;;  %v17844_v6 = vld [vmem:[%s20187_s1 + $0x4] sm:$0xf]  ;;  %v261_v7 = vsel %vm259_vm0, %v258_v5, 0  ;;  %v17843_v16 = vld [vmem:[%s20190_s4 + $0x8] sm:$0xff] }
  0x15   : >> { %243 = vrot.lane.b32.xlu0 %v18303_v2, %s18310_s7  ;;  %740 = vrot.lane.b32.xlu1 %v18303_v2, %s18311_s8  ;;  %s18314_s11 = smov 127   ;;  %s18315_s12 = smov 113   ;;  %v757_v8 = vsel %vm259_vm0, %v17844_v6, 0  ;;  %v18420_v9 = vand.u32 4294901760, %v261_v7  ;;  %v18430_v14 = vand.u32 127, %v247_v11  ;;  %v252_v15 = vld [vmem:[%s20190_s4] sm:$0xff]  ;;  %v18448_v22 = vcombine.high %v17843_v16, %v17843_v16 }
  0x16   : >> { %s18316_s13 = smov 112   ;;  %s18317_s14 = smov 111   ;;  %v18422_v10 = vand.u32 4294901760, %v757_v8  ;;  %v18445_v21 = vcombine.high %v252_v15, %v252_v15  ;;  %vm263_vm3 = vcmask 1043456   ;;  %v17845_v63 = vld [vmem:[%s20190_s4 + $0x10] sm:$0xff]  ;;  %v20256_v0 = vld [vmem:[#allocation2_spill] sm:$0xff] }
  0x17   : >> { %v18425_v12 = vsub.f32 %v261_v7, %v18420_v9  ;;  %vm249_vm1 = vcmp.lt.s32.totalorder %v18430_v14, 17  ;;  %vm744_vm2 = vcmp.lt.s32.totalorder %v18430_v14, 16  ;;  %vm1239_vm4 = vcmp.lt.s32.totalorder %v18430_v14, 15  ;;  %s235_s24 = scvt.s32.f32 %s18307_s6  ;;  %v20257_v1 = vld [vmem:[#allocation3_spill] sm:$0xff]  ;;  %s233_s6 = sadd.s32 1, %s18307_s6  }
  0x18   : >> { %v18428_v13 = vsub.f32 %v757_v8, %v18422_v10  ;;  %v18522_v5 = vcombine.high %v17845_v63, %v17845_v63  ;;  %vm1734_vm5 = vcmp.lt.s32.totalorder %v18430_v14, 1  ;;  %vm2713_vm6 = vcmp.lt.s32.totalorder %v18430_v14, 127  ;;  %p230_p4 = scmp.ge.s32.totalorder %s233_s6, 8  }
  0x19   : >> { %245 = vrot.lane.b32.xlu0 %v241_v4, %s18310_s7  ;;  %742 = vrot.lane.b32.xlu1 %v241_v4, %s18311_s8  ;;  %v18439_v17 = vand.u32 4294901760, %v18425_v12  ;;  %vm3208_vm7 = vcmp.lt.s32.totalorder %v18430_v14, 113  ;;  %vm3703_vm8 = vcmp.lt.s32.totalorder %v18430_v14, 112  ;;  %vm4198_vm9 = vcmp.lt.s32.totalorder %v18430_v14, 111  ;;  %s19023_s25 = smul.f32 0.125, %s235_s24 }
  0x1a   : >> { %v18442_v20 = vand.u32 4294901760, %v18428_v13 }
  0x1b   : >> { %v340_v23 = vsub.f32 %v18425_v12, %v18439_v17  ;;  %s4690_s20 = sadd.f32 0.0625, %s19023_s25 }
  0x1c   : >> { %v835_v26 = vsub.f32 %v18428_v13, %v18442_v20  ;;  %s13404_s17 = sadd.f32 0.125, %s19023_s25 }
  0x1d   : >> { %1237 = vrot.lane.b32.xlu1 %v241_v4, %s18312_s9  ;;  %1235 = vrot.lane.b32.xlu0 %v18303_v2, %s18312_s9  ;;  %v18464_v35 = vand.u32 4294901760, %v340_v23 }
  0x1e   : >> { %v18478_v44 = vand.u32 4294901760, %v835_v26 }
  0x21   : >> { %1732 = vrot.lane.b32.xlu1 %v241_v4, %s18313_s10  ;;  %1730 = vrot.lane.b32.xlu0 %v18303_v2, %s18313_s10 }
  0x25   : >> { %2711 = vrot.lane.b32.xlu1 %v241_v4, %s18314_s11  ;;  %2709 = vrot.lane.b32.xlu0 %v18303_v2, %s18314_s11 }
  0x29   : >> { %3206 = vrot.lane.b32.xlu1 %v241_v4, %s18315_s12  ;;  %3204 = vrot.lane.b32.xlu0 %v18303_v2, %s18315_s12 }
  0x2d   : >> { %3701 = vrot.lane.b32.xlu1 %v241_v4, %s18316_s13  ;;  %3699 = vrot.lane.b32.xlu0 %v18303_v2, %s18316_s13 }
  0x31   : >> { %4196 = vrot.lane.b32.xlu1 %v241_v4, %s18317_s14  ;;  %4194 = vrot.lane.b32.xlu0 %v18303_v2, %s18317_s14  ;;  %v17847_v4 = vld [vmem:[%s20190_s4 + $0x18] sm:$0xff] }
  0x32   : >> { %v18529_v11 = vcombine.high %v17847_v4, %v17847_v4 }
  0x87   : >> { %v244_v18 = vpop.permute.xlu0 %243  ;;  %v741_v19 = vpop.permute.xlu1 %740 }
  0x8b   : >> { %v246_v24 = vpop.permute.xlu0 %245  ;;  %v743_v25 = vpop.permute.xlu1 %742 }
  0x8c   : >> { %v250_v27 = vsel %vm249_vm1, %v244_v18, %v246_v24  ;;  %v251_v28 = vsel %vm249_vm1, %v246_v24, %v244_v18  ;;  %v745_v29 = vsel %vm744_vm2, %v741_v19, %v743_v25  ;;  %v746_v30 = vsel %vm744_vm2, %v743_v25, %v741_v19  ;;  %v17846_v25 = vld [vmem:[%s20187_s1 + $0x8] sm:$0xf] }
  0x8d   : >> { %v256_v31 = vmul.f32 %v252_v15, %v251_v28  ;;  %v257_v32 = vmul.f32 %v18445_v21, %v250_v27  ;;  %v752_v33 = vmul.f32 %v17843_v16, %v746_v30  ;;  %v753_v34 = vmul.f32 %v18448_v22, %v745_v29  ;;  %v17848_v27 = vld [vmem:[%s20187_s1 + $0xc] sm:$0xf] }
  0x8e   : >> { %v1252_v30 = vsel %vm259_vm0, %v17846_v25, 0 }
  0x8f   : >> { %v265_v36 = vsel %vm263_vm3, %v256_v31, 0  ;;  %v268_v37 = vsel %vm263_vm3, %v257_v32, 0  ;;  %v760_v38 = vsel %vm263_vm3, %v752_v33, 0  ;;  %v763_v39 = vsel %vm263_vm3, %v753_v34, 0  ;;  %v1238_v61 = vpop.permute.xlu1 %1237  ;;  %v1236_v62 = vpop.permute.xlu0 %1235 }
  0x90   : >> { %v18470_v40 = vand.u32 4294901760, %v268_v37  ;;  %v18472_v41 = vand.u32 4294901760, %v265_v36  ;;  %v18474_v42 = vand.u32 4294901760, %v763_v39  ;;  %v18476_v43 = vand.u32 4294901760, %v760_v38 }
  0x91   : >> { %v1240_v8 = vsel %vm1239_vm4, %v1236_v62, %v1238_v61  ;;  %v1241_v16 = vsel %vm1239_vm4, %v1238_v61, %v1236_v62  ;;  %v1747_v33 = vsel %vm259_vm0, %v17848_v27, 0  ;;  %v17850_v27 = vld [vmem:[%s20187_s1 + $0x10] sm:$0xf] }
  0x92   : >> { %v349_v45 = vsub.f32 %v268_v37, %v18470_v40  ;;  %v18482_v46 = vsub.f32 %v265_v36, %v18472_v41  ;;  %v18485_v47 = vsub.f32 %v763_v39, %v18474_v42  ;;  %v18488_v48 = vsub.f32 %v760_v38, %v18476_v43  ;;  %271 = vmatprep.subr.mxu0 %v18470_v40 }
  0x93   : >> { %273 = vmatpush1.msra.mxu0 %v18472_v41  ;;  %766 = vmatprep.subr.mxu1 %v18474_v42  ;;  %v1733_v6 = vpop.permute.xlu1 %1732  ;;  %v1731_v7 = vpop.permute.xlu0 %1730  ;;  %v1248_v18 = vmul.f32 %v18522_v5, %v1240_v8  ;;  %v1247_v24 = vmul.f32 %v17845_v63, %v1241_v16  ;;  %v18562_v37 = vand.u32 4294901760, %v1252_v30  ;;  %v18569_v39 = vand.u32 4294901760, %v1747_v33  ;;  %v18660_v8 = vld [vmem:[%s20190_s4 + $0x28] sm:$0xff] }
  0x94   : >> { %342 = vmatmul.mubr.f32.vlgmr.msra.gmra.mrb[0].mxu0 %v18464_v35  ;;  %768 = vmatpush1.msra.mxu1 %v18476_v43  ;;  %v350_v49 = vand.u32 4294901760, %v349_v45  ;;  %v356_v50 = vand.u32 4294901760, %v18482_v46  ;;  %v845_v51 = vand.u32 4294901760, %v18485_v47  ;;  %v851_v52 = vand.u32 4294901760, %v18488_v48 }
  0x95   : >> { %837 = vmatmul.mubr.f32.vlgmr.msra.gmra.mrb[0].mxu1 %v18478_v44  ;;  %422 = vmatprep.mubr.f32.mxu0 %v20192_v3  ;;  %v1735_v15 = vsel %vm1734_vm5, %v1731_v7, %v1733_v6  ;;  %v1736_v19 = vsel %vm1734_vm5, %v1733_v6, %v1731_v7  ;;  %v1258_v26 = vsel %vm263_vm3, %v1248_v18, 0  ;;  %v1255_v31 = vsel %vm263_vm3, %v1247_v24, 0  ;;  %v18653_v7 = vld [vmem:[%s20190_s4 + $0x20] sm:$0xff] }
  0x96   : >> { %v351_v53 = vsub.f32 %v349_v45, %v350_v49  ;;  %v357_v54 = vsub.f32 %v18482_v46, %v356_v50  ;;  %v846_v55 = vsub.f32 %v18485_v47, %v845_v51  ;;  %v852_v56 = vsub.f32 %v18488_v48, %v851_v52  ;;  %917 = vmatprep.mubr.f32.mxu1 %v20192_v3 }
  0x97   : >> { %v1743_v23 = vmul.f32 %v18529_v11, %v1735_v15  ;;  %v1742_v28 = vmul.f32 %v17847_v4, %v1736_v19  ;;  %v18555_v32 = vand.u32 4294901760, %v1258_v26  ;;  %v18567_v38 = vand.u32 4294901760, %v1255_v31  ;;  %v2712_v15 = vpop.permute.xlu1 %2711  ;;  %v2710_v16 = vpop.permute.xlu0 %2709 }
  0x98   : >> { %v352_v57 = vand.u32 4294901760, %v351_v53  ;;  %v358_v58 = vand.u32 4294901760, %v357_v54  ;;  %v847_v59 = vand.u32 4294901760, %v846_v55  ;;  %v853_v60 = vand.u32 4294901760, %v852_v56 }
  0x99   : >> { %v1753_v29 = vsel %vm263_vm3, %v1743_v23, 0  ;;  %v1750_v34 = vsel %vm263_vm3, %v1742_v28, 0  ;;  %v2227_v18 = vmul.f32 %v18303_v2, %v18653_v7  ;;  %v18670_v19 = vcombine.high %v18660_v8, %v18660_v8 }
  0x9a   : >> { %353 = vmatprep.subr.mxu0 %v352_v57  ;;  %848 = vmatprep.subr.mxu1 %v847_v59  ;;  %v18560_v36 = vand.u32 4294901760, %v1753_v29  ;;  %v2715_v23 = vsel %vm2713_vm6, %v2712_v15, %v2710_v16  ;;  %v2714_v24 = vsel %vm2713_vm6, %v2710_v16, %v2712_v15 }
  0x9b   : >> { %359 = vmatpush1.msra.mxu0 %v358_v58  ;;  %854 = vmatpush1.msra.mxu1 %v853_v60  ;;  %v2231_v25 = vcombine.high %v2227_v18, %v2227_v18  ;;  %v2721_v28 = vmul.f32 %v18660_v8, %v2714_v24 }
  0x9c   : >> { %424 = vmatmul.mubr.f32.vlgmr.msra.gmra.mrb[0].mxu0 %v18420_v9  ;;  %432 = vmatprep.subr.mxu0 %v349_v45  ;;  %v18573_v45 = vsub.f32 %v1258_v26, %v18555_v32  ;;  %v2722_v26 = vmul.f32 %v18670_v19, %v2715_v23 }
  0x9d   : >> { %435 = vmatpush1.msra.mxu0 %v18482_v46  ;;  %919 = vmatmul.mubr.f32.vlgmr.msra.gmra.mrb[0].mxu1 %v18422_v10  ;;  %v18579_v46 = vand.u32 4294901760, %v1750_v34 }
  0x9e   : >> { %508 = vmatprep.subr.mxu0 %v18470_v40  ;;  %498 = vmatprep.mubr.f32.mxu0 %v20192_v3 }
  0x9f   : >> { %927 = vmatprep.subr.mxu1 %v18485_v47  ;;  %993 = vmatprep.mubr.f32.mxu1 %v20192_v3  ;;  %v18583_v47 = vsub.f32 %v1753_v29, %v18560_v36  ;;  %v17852_v29 = vld [vmem:[%s20187_s1 + $0x14] sm:$0xf] }
  0xa0   : >> { %930 = vmatpush1.msra.mxu1 %v18488_v48  ;;  %v1340_v48 = vand.u32 4294901760, %v18573_v45 }
  0xa1   : >> { %1003 = vmatprep.subr.mxu1 %v18474_v42 }
  0xa2   : >> { %v1341_v55 = vsub.f32 %v18573_v45, %v1340_v48 }
  0xa4   : >> { %501 = vmatmul.mubr.f32.vlgmr.msra.gmra.mrb[0].mxu0 %v18425_v12  ;;  %v1342_v59 = vand.u32 4294901760, %v1341_v55 }
  0xa5   : >> { %510 = vmatpush1.msra.mxu0 %v18472_v41  ;;  %996 = vmatmul.mubr.f32.vlgmr.msra.gmra.mrb[0].mxu1 %v18428_v13 }
  0xa6   : >> { %586 = vmatprep.subr.mxu0 %v350_v49  ;;  %573 = vmatprep.mubr.f32.mxu0 %v20192_v3  ;;  %v18586_v49 = vsub.f32 %v1252_v30, %v18562_v37  ;;  %v2237_v30 = vsel %vm263_vm3, %v2231_v25, 0 }
  0xa7   : >> { %1005 = vmatpush1.msra.mxu1 %v18476_v43  ;;  %1068 = vmatprep.mubr.f32.mxu1 %v20192_v3  ;;  %v18700_v55 = vand.u32 4294901760, %v2237_v30 }
  0xa8   : >> { %1081 = vmatprep.subr.mxu1 %v845_v51  ;;  %v18596_v51 = vsub.f32 %v1750_v34, %v18579_v46  ;;  %v2235_v34 = vsel %vm263_vm3, %v2227_v18, 0 }
  0xac   : >> { %577 = vmatmul.mubr.f32.vlgmr.msra.gmra.mrb[0].mxu0 %v18439_v17 }
  0xad   : >> { %590 = vmatpush1.msra.mxu0 %v356_v50  ;;  %1072 = vmatmul.mubr.f32.vlgmr.msra.gmra.mrb[0].mxu1 %v18442_v20  ;;  %v18592_v50 = vsub.f32 %v1747_v33, %v18569_v39  ;;  %v2233_v33 = vsel %vm259_vm0, %v17850_v27, 0 }
  0xae   : >> { %662 = vmatprep.subr.mxu0 %v18470_v40  ;;  %653 = vmatprep.mubr.f32.mxu0 %v20192_v3  ;;  %v18589_v40 = vsub.f32 %v1255_v31, %v18567_v38  ;;  %v2732_v31 = vsel %vm263_vm3, %v2722_v26, 0 }
  0xaf   : >> { %1085 = vmatpush1.msra.mxu1 %v851_v52  ;;  %1148 = vmatprep.mubr.f32.mxu1 %v20192_v3  ;;  %v1835_v52 = vand.u32 4294901760, %v18583_v47  ;;  %v18607_v54 = vand.u32 4294901760, %v18592_v50 }
  0xb0   : >> { %1157 = vmatprep.subr.mxu1 %v18474_v42  ;;  %v18600_v42 = vand.u32 4294901760, %v18586_v49  ;;  %v1346_v53 = vand.u32 4294901760, %v18589_v40 }
  0xb1   : >> { %v1825_v58 = vsub.f32 %v18592_v50, %v18607_v54 }
  0xb2   : >> { %v1330_v56 = vsub.f32 %v18586_v49, %v18600_v42  ;;  %v1347_v57 = vsub.f32 %v18589_v40, %v1346_v53 }
  0xb3   : >> { %v18636_v4 = vand.u32 4294901760, %v1825_v58 }
  0xb4   : >> { %655 = vmatmul.mubr.f32.vlgmr.msra.gmra.mrb[0].mxu0 %v18420_v9  ;;  %v18632_v61 = vand.u32 4294901760, %v1330_v56  ;;  %v1348_v63 = vand.u32 4294901760, %v1347_v57  ;;  %v18703_v56 = vand.u32 4294901760, %v2732_v31 }
  0xb5   : >> { %664 = vmatpush1.msra.mxu0 %v18472_v41  ;;  %1150 = vmatmul.mubr.f32.vlgmr.msra.gmra.mrb[0].mxu1 %v18422_v10  ;;  %v1841_v41 = vand.u32 4294901760, %v18596_v51 }
  0xb6   : >> { %1159 = vmatpush1.msra.mxu1 %v18476_v43  ;;  %727 = vmatprep.mubr.f32.mxu0 %v20192_v3  ;;  %v1836_v43 = vsub.f32 %v18583_v47, %v1835_v52 }
  0xb7   : >> { %1222 = vmatprep.mubr.f32.mxu1 %v20192_v3  ;;  %1261 = vmatprep.subr.mxu0 %v18555_v32  ;;  %v1842_v60 = vsub.f32 %v18596_v51, %v1841_v41 }
  0xb8   : >> { %1756 = vmatprep.subr.mxu1 %v18560_v36  ;;  %v1837_v62 = vand.u32 4294901760, %v1836_v43 }
  0xb9   : >> { %v1843_v6 = vand.u32 4294901760, %v1842_v60 }
  0xbc   : >> { %729 = vmatmul.mubr.f32.vlgmr.msra.gmra.mrb[0].mxu0 %v18420_v9 }
  0xbd   : >> { %1224 = vmatmul.mubr.f32.vlgmr.msra.gmra.mrb[0].mxu1 %v18422_v10  ;;  %1263 = vmatpush1.msra.mxu0 %v18567_v38 }
  0xbe   : >> { %1326 = vmatprep.mubr.f32.mxu0 %v20192_v3  ;;  %1343 = vmatprep.subr.mxu0 %v1342_v59 }
  0xbf   : >> { %1758 = vmatpush1.msra.mxu1 %v18579_v46  ;;  %1821 = vmatprep.mubr.f32.mxu1 %v20192_v3 }
  0xc0   : >> { %1332 = vmatmul.mubr.f32.vlgmr.msra.gmra.mrb[2].mxu0 %v18632_v61  ;;  %1838 = vmatprep.subr.mxu1 %v1837_v62 }
  0xc1   : >> { %1349 = vmatpush1.msra.mxu0 %v1348_v63  ;;  %1827 = vmatmul.mubr.f32.vlgmr.msra.gmra.mrb[2].mxu1 %v18636_v4 }
  0xc2   : >> { %1422 = vmatprep.subr.mxu0 %v18573_v45  ;;  %1412 = vmatprep.mubr.f32.mxu0 %v20192_v3  ;;  %v2726_v45 = vsel %vm259_vm0, %v17852_v29, 0 }
  0xc3   : >> { %1844 = vmatpush1.msra.mxu1 %v1843_v6  ;;  %1907 = vmatprep.mubr.f32.mxu1 %v20192_v3  ;;  %v18712_v43 = vand.u32 4294901760, %v2726_v45 }
  0xc4   : >> { %1917 = vmatprep.subr.mxu1 %v18583_v47  ;;  %v18705_v47 = vand.u32 4294901760, %v2233_v33 }
  0xc5   : >> { %v18735_v59 = vsub.f32 %v2726_v45, %v18712_v43 }
  0xc6   : >> { %v18729_v58 = vsub.f32 %v2233_v33, %v18705_v47  ;;  %v18794_v33 = vld [vmem:[%s20190_s4 + $0x30] sm:$0xff] }
  0xc7   : >> { %v18749_v62 = vand.u32 4294901760, %v18735_v59  ;;  %v18810_v45 = vcombine.high %v18794_v33, %v18794_v33 }
  0xc8   : >> { %1414 = vmatmul.mubr.f32.vlgmr.msra.gmra.mrb[2].mxu0 %v18562_v37  ;;  %v18743_v60 = vand.u32 4294901760, %v18729_v58 }
  0xc9   : >> { %1425 = vmatpush1.msra.mxu0 %v18589_v40  ;;  %1909 = vmatmul.mubr.f32.vlgmr.msra.gmra.mrb[2].mxu1 %v18569_v39  ;;  %v18722_v40 = vsub.f32 %v2237_v30, %v18700_v55  ;;  %20237 = vst [vmem:[#allocation5_spill] sm:$0xff] %v18749_v62  ;;  %v3207_v30 = vpop.permute.xlu1 %3206 }
  0xca   : >> { %1498 = vmatprep.subr.mxu0 %v18555_v32  ;;  %1488 = vmatprep.mubr.f32.mxu0 %v20192_v3  ;;  %20236 = vst [vmem:[#allocation4_spill] sm:$0xff] %v18743_v60  ;;  %v2309_v15 = vsub.f32 %v18729_v58, %v18743_v60 }
  0xcb   : >> { %1920 = vmatpush1.msra.mxu1 %v18596_v51  ;;  %1983 = vmatprep.mubr.f32.mxu1 %v20192_v3 }
  0xcc   : >> { %1993 = vmatprep.subr.mxu1 %v18560_v36  ;;  %v18775_v25 = vand.u32 4294901760, %v2309_v15 }
  0xd0   : >> { %1491 = vmatmul.mubr.f32.vlgmr.msra.gmra.mrb[2].mxu0 %v18586_v49 }
  0xd1   : >> { %1500 = vmatpush1.msra.mxu0 %v18567_v38  ;;  %1986 = vmatmul.mubr.f32.vlgmr.msra.gmra.mrb[2].mxu1 %v18592_v50 }
  0xd2   : >> { %1576 = vmatprep.subr.mxu0 %v1340_v48  ;;  %1563 = vmatprep.mubr.f32.mxu0 %v20192_v3  ;;  %v2729_v48 = vsel %vm263_vm3, %v2721_v28, 0 }
  0xd3   : >> { %1995 = vmatpush1.msra.mxu1 %v18579_v46  ;;  %2058 = vmatprep.mubr.f32.mxu1 %v20192_v3  ;;  %v18716_v57 = vand.u32 4294901760, %v2729_v48 }
  0xd4   : >> { %2071 = vmatprep.subr.mxu1 %v1835_v52  ;;  %v18710_v52 = vand.u32 4294901760, %v2235_v34 }
  0xd5   : >> { %v18738_v51 = vsub.f32 %v2729_v48, %v18716_v57  ;;  %v3702_v48 = vpop.permute.xlu1 %3701 }
  0xd7   : >> { %v2820_v6 = vand.u32 4294901760, %v18738_v51 }
  0xd8   : >> { %1567 = vmatmul.mubr.f32.vlgmr.msra.gmra.mrb[2].mxu0 %v18600_v42 }
  0xd9   : >> { %1580 = vmatpush1.msra.mxu0 %v1346_v53  ;;  %2062 = vmatmul.mubr.f32.vlgmr.msra.gmra.mrb[2].mxu1 %v18607_v54  ;;  %v18725_v53 = vsub.f32 %v2732_v31, %v18703_v56  ;;  %v2821_v23 = vsub.f32 %v18738_v51, %v2820_v6  ;;  %v3205_v31 = vpop.permute.xlu0 %3204 }
  0xda   : >> { %1652 = vmatprep.subr.mxu0 %v18555_v32  ;;  %1643 = vmatprep.mubr.f32.mxu0 %v20192_v3  ;;  %v18732_v32 = vsub.f32 %v2235_v34, %v18710_v52  ;;  %v18804_v34 = vld [vmem:[%s20190_s4 + $0x38] sm:$0xff]  ;;  %v3210_v15 = vsel %vm3208_vm7, %v3207_v30, %v3205_v31 }
  0xdb   : >> { %2075 = vmatpush1.msra.mxu1 %v1841_v41  ;;  %2138 = vmatprep.mubr.f32.mxu1 %v20192_v3  ;;  %v2319_v41 = vand.u32 4294901760, %v18722_v40  ;;  %v2822_v29 = vand.u32 4294901760, %v2821_v23  ;;  %20238 = vst [vmem:[#allocation6_spill] sm:$0xff] %v18804_v34  ;;  %v3217_v23 = vmul.f32 %v18810_v45, %v3210_v15 }
  0xdc   : >> { %2147 = vmatprep.subr.mxu1 %v18560_v36  ;;  %v2814_v36 = vand.u32 4294901760, %v18725_v53  ;;  %v2325_v63 = vand.u32 4294901760, %v18732_v32 }
  0xde   : >> { %v2815_v16 = vsub.f32 %v18725_v53, %v2814_v36  ;;  %v2326_v18 = vsub.f32 %v18732_v32, %v2325_v63 }
  0xe0   : >> { %1645 = vmatmul.mubr.f32.vlgmr.msra.gmra.mrb[2].mxu0 %v18562_v37  ;;  %v2816_v26 = vand.u32 4294901760, %v2815_v16  ;;  %v2327_v28 = vand.u32 4294901760, %v2326_v18  ;;  %v18818_v16 = vcombine.high %v18804_v34, %v18804_v34  ;;  %v3209_v18 = vsel %vm3208_vm7, %v3205_v31, %v3207_v30  ;;  %v17856_v31 = vld [vmem:[%s20187_s1 + $0x1c] sm:$0xf] }
  0xe1   : >> { %1654 = vmatpush1.msra.mxu0 %v18567_v38  ;;  %2140 = vmatmul.mubr.f32.vlgmr.msra.gmra.mrb[2].mxu1 %v18569_v39  ;;  %v2320_v38 = vsub.f32 %v18722_v40, %v2319_v41  ;;  %v3227_v30 = vsel %vm263_vm3, %v3217_v23, 0 }
  0xe2   : >> { %1717 = vmatprep.mubr.f32.mxu0 %v20192_v3  ;;  %2149 = vmatpush1.msra.mxu1 %v18579_v46  ;;  %v2804_v46 = vsub.f32 %v18735_v59, %v18749_v62 }
  0xe3   : >> { %2212 = vmatprep.mubr.f32.mxu1 %v20192_v3  ;;  %2240 = vmatprep.subr.mxu0 %v18700_v55  ;;  %v2321_v24 = vand.u32 4294901760, %v2320_v38  ;;  %v3700_v38 = vpop.permute.xlu0 %3699 }
  0xe4   : >> { %2735 = vmatprep.subr.mxu1 %v18703_v56  ;;  %v18779_v27 = vand.u32 4294901760, %v2804_v46  ;;  %v3705_v46 = vsel %vm3703_vm8, %v3702_v48, %v3700_v38 }
  0xe8   : >> { %1719 = vmatmul.mubr.f32.vlgmr.msra.gmra.mrb[2].mxu0 %v18562_v37 }
  0xe9   : >> { %2214 = vmatmul.mubr.f32.vlgmr.msra.gmra.mrb[2].mxu1 %v18569_v39  ;;  %2242 = vmatpush1.msra.mxu0 %v18710_v52 }
  0xea   : >> { %2305 = vmatprep.mubr.f32.mxu0 %v20192_v3  ;;  %2737 = vmatpush1.msra.mxu1 %v18716_v57 }
  0xeb   : >> { %2800 = vmatprep.mubr.f32.mxu1 %v20192_v3  ;;  %2322 = vmatprep.subr.mxu0 %v2321_v24  ;;  %v3704_v24 = vsel %vm3703_vm8, %v3700_v38, %v3702_v48 }
  0xec   : >> { %2311 = vmatmul.mubr.f32.vlgmr.msra.gmra.mrb[4].mxu0 %v18775_v25  ;;  %2817 = vmatprep.subr.mxu1 %v2816_v26  ;;  %v3712_v26 = vmul.f32 %v18818_v16, %v3705_v46  ;;  %v3711_v48 = vmul.f32 %v18804_v34, %v3704_v24 }
  0xed   : >> { %2806 = vmatmul.mubr.f32.vlgmr.msra.gmra.mrb[4].mxu1 %v18779_v27  ;;  %2328 = vmatpush1.msra.mxu0 %v2327_v28  ;;  %v3216_v28 = vmul.f32 %v18794_v33, %v3209_v18  ;;  %v18850_v18 = vand.u32 4294901760, %v3227_v30 }
  0xee   : >> { %2391 = vmatprep.mubr.f32.mxu0 %v20192_v3  ;;  %2823 = vmatpush1.msra.mxu1 %v2822_v29  ;;  %v17854_v29 = vld [vmem:[%s20187_s1 + $0x18] sm:$0xf]  ;;  %v3722_v38 = vsel %vm263_vm3, %v3712_v26, 0 }
  0xef   : >> { %2886 = vmatprep.mubr.f32.mxu1 %v20192_v3  ;;  %2401 = vmatprep.subr.mxu0 %v18722_v40  ;;  %v3221_v15 = vsel %vm259_vm0, %v17854_v29, 0  ;;  %v3224_v46 = vsel %vm263_vm3, %v3216_v28, 0  ;;  %v3716_v40 = vsel %vm259_vm0, %v17856_v31, 0  ;;  %v18855_v23 = vand.u32 4294901760, %v3722_v38 }
  0xf0   : >> { %2896 = vmatprep.subr.mxu1 %v18725_v53  ;;  %v18857_v53 = vand.u32 4294901760, %v3221_v15  ;;  %v18864_v24 = vand.u32 4294901760, %v3716_v40  ;;  %v18867_v26 = vsub.f32 %v3227_v30, %v18850_v18 }
  0xf1   : >> { %v18877_v29 = vsub.f32 %v3722_v38, %v18855_v23 }
  0xf2   : >> { %20239 = vst [vmem:[#allocation7_spill] sm:$0xff] %v18857_v53  ;;  %20240 = vst [vmem:[#allocation8_spill] sm:$0xff] %v18864_v24 }
  0xf4   : >> { %2393 = vmatmul.mubr.f32.vlgmr.msra.gmra.mrb[4].mxu0 %v18705_v47 }
  0xf5   : >> { %2888 = vmatmul.mubr.f32.vlgmr.msra.gmra.mrb[4].mxu1 %v18712_v43  ;;  %2404 = vmatpush1.msra.mxu0 %v18732_v32  ;;  %v18881_v32 = vsub.f32 %v3221_v15, %v18857_v53 }
  0xf6   : >> { %2467 = vmatprep.mubr.f32.mxu0 %v20192_v3  ;;  %2899 = vmatpush1.msra.mxu1 %v18738_v51  ;;  %v18887_v51 = vsub.f32 %v3716_v40, %v18864_v24 }
  0xf7   : >> { %2962 = vmatprep.mubr.f32.mxu1 %v20192_v3  ;;  %2477 = vmatprep.subr.mxu0 %v18700_v55  ;;  %20241 = vst [vmem:[#allocation9_spill] sm:$0xff] %v18881_v32 }
  0xf8   : >> { %2972 = vmatprep.subr.mxu1 %v18703_v56  ;;  %20242 = vst [vmem:[#allocation10_spill] sm:$0xff] %v18887_v51 }
  0xfc   : >> { %2470 = vmatmul.mubr.f32.vlgmr.msra.gmra.mrb[4].mxu0 %v18729_v58 }
  0xfd   : >> { %2965 = vmatmul.mubr.f32.vlgmr.msra.gmra.mrb[4].mxu1 %v18735_v59  ;;  %2479 = vmatpush1.msra.mxu0 %v18710_v52 }
  0xfe   : >> { %2542 = vmatprep.mubr.f32.mxu0 %v20192_v3  ;;  %2974 = vmatpush1.msra.mxu1 %v18716_v57 }
  0xff   : >> { %3037 = vmatprep.mubr.f32.mxu1 %v20192_v3  ;;  %2555 = vmatprep.subr.mxu0 %v2319_v41  ;;  %v3719_v41 = vsel %vm263_vm3, %v3711_v48, 0  ;;  %v18902_v48 = vand.u32 4294901760, %v18887_v51 }
 0x100   : >> { %3050 = vmatprep.subr.mxu1 %v2814_v36  ;;  %v18860_v36 = vand.u32 4294901760, %v3224_v46  ;;  %v18873_v28 = vand.u32 4294901760, %v3719_v41 }
 0x101   : >> { %20244 = vst [vmem:[#allocation12_spill] sm:$0xff] %v18902_v48  ;;  %v3794_v40 = vsub.f32 %v18887_v51, %v18902_v48 }
 0x102   : >> { %v18891_v30 = vsub.f32 %v3719_v41, %v18873_v28 }
 0x104   : >> { %2546 = vmatmul.mubr.f32.vlgmr.msra.gmra.mrb[4].mxu0 %v18743_v60  ;;  %v20201_v15 = vand.u32 4294901760, %v18891_v30  ;;  %v18929_v60 = vand.u32 4294901760, %v3794_v40 }
 0x105   : >> { %3041 = vmatmul.mubr.f32.vlgmr.msra.gmra.mrb[4].mxu1 %v18749_v62  ;;  %2559 = vmatpush1.msra.mxu0 %v2325_v63  ;;  %v18884_v63 = vsub.f32 %v3224_v46, %v18860_v36 }
 0x106   : >> { %2622 = vmatprep.mubr.f32.mxu0 %v20192_v3  ;;  %3054 = vmatpush1.msra.mxu1 %v2820_v6  ;;  %v3309_v6 = vand.u32 4294901760, %v18867_v26  ;;  %20245 = vst [vmem:[#allocation13_spill] sm:$0xff] %v18929_v60 }
 0x107   : >> { %3117 = vmatprep.mubr.f32.mxu1 %v20192_v3  ;;  %3126 = vmatprep.subr.mxu1 %v18703_v56  ;;  %v18895_v56 = vand.u32 4294901760, %v18881_v32  ;;  %v20200_v31 = vand.u32 4294901760, %v18884_v63 }
 0x108   : >> { %2631 = vmatprep.subr.mxu0 %v18700_v55  ;;  %v20197_v55 = vand.u32 4294901760, %v18877_v29  ;;  %v3310_v38 = vsub.f32 %v18867_v26, %v3309_v6 }
 0x109   : >> { %20243 = vst [vmem:[#allocation11_spill] sm:$0xff] %v18895_v56 }
 0x10a   : >> { %v3805_v46 = vsub.f32 %v18877_v29, %v20197_v55  ;;  %v3311_v41 = vand.u32 4294901760, %v3310_v38 }
 0x10c   : >> { %2624 = vmatmul.mubr.f32.vlgmr.msra.gmra.mrb[4].mxu0 %v18705_v47  ;;  %v3806_v34 = vand.u32 4294901760, %v3805_v46 }
 0x10d   : >> { %3119 = vmatmul.mubr.f32.vlgmr.msra.gmra.mrb[4].mxu1 %v18712_v43  ;;  %2633 = vmatpush1.msra.mxu0 %v18710_v52  ;;  %v3299_v52 = vsub.f32 %v18881_v32, %v18895_v56 }
 0x10e   : >> { %3128 = vmatpush1.msra.mxu1 %v18716_v57  ;;  %2696 = vmatprep.mubr.f32.mxu0 %v20192_v3  ;;  %v3316_v57 = vsub.f32 %v18884_v63, %v20200_v31  ;;  %v20246_v31 = vmov 0.0  }
 0x10f   : >> { %3191 = vmatprep.mubr.f32.mxu1 %v20192_v3  ;;  %3230 = vmatprep.subr.mxu0 %v18850_v18  ;;  %v3811_v3 = vsub.f32 %v18891_v30, %v20201_v15  ;;  %v18925_v62 = vand.u32 4294901760, %v3299_v52  ;;  %v20251_v15 = vand.u32 4294901760, %v18884_v63 }
 0x110   : >> { %3725 = vmatprep.subr.mxu1 %v18855_v23  ;;  %v3317_v55 = vand.u32 4294901760, %v3316_v57 }
 0x111   : >> { %v3812_v38 = vand.u32 4294901760, %v3811_v3  ;;  %v18944_v3 = vld [vmem:[%s20190_s4 + $0x40] sm:$0xff] }
 0x112   : >> { %20247 = vst [vmem:[#allocation14_spill] sm:$0xff] %v18944_v3 }
 0x114   : >> { %2698 = vmatmul.mubr.f32.vlgmr.msra.gmra.mrb[4].mxu0 %v18705_v47 }
 0x115   : >> { %3193 = vmatmul.mubr.f32.vlgmr.msra.gmra.mrb[4].mxu1 %v18712_v43  ;;  %3232 = vmatpush1.msra.mxu0 %v18860_v36 }
 0x116   : >> { %3295 = vmatprep.mubr.f32.mxu0 %v20246_v31  ;;  %3312 = vmatprep.subr.mxu0 %v3311_v41  ;;  %v17858_v41 = vld [vmem:[%s20187_s1 + $0x20] sm:$0xf] }
 0x117   : >> { %3727 = vmatpush1.msra.mxu1 %v18873_v28  ;;  %3790 = vmatprep.mubr.f32.mxu1 %v20246_v31 }
 0x118   : >> { %3301 = vmatmul.mubr.f32.vlgmr.msra.gmra.mrb[6].mxu0 %v18925_v62  ;;  %3807 = vmatprep.subr.mxu1 %v3806_v34  ;;  %v4197_v34 = vpop.permute.xlu1 %4196 }
 0x119   : >> { %3318 = vmatpush1.msra.mxu0 %v3317_v55  ;;  %3796 = vmatmul.mubr.f32.vlgmr.msra.gmra.mrb[6].mxu1 %v18929_v60  ;;  %v18955_v55 = vcombine.high %v18944_v3, %v18944_v3 }
 0x11a   : >> { %3391 = vmatprep.subr.mxu0 %v18867_v26  ;;  %3381 = vmatprep.mubr.f32.mxu0 %v20246_v31  ;;  %v4195_v26 = vpop.permute.xlu0 %4194 }
 0x11b   : >> { %3813 = vmatpush1.msra.mxu1 %v3812_v38  ;;  %3876 = vmatprep.mubr.f32.mxu1 %v20246_v31  ;;  %20248 = vst [vmem:[#allocation15_spill] sm:$0xff] %v18955_v55  ;;  %v4200_v52 = vsel %vm4198_vm9, %v4197_v34, %v4195_v26  ;;  %v4199_v46 = vsel %vm4198_vm9, %v4195_v26, %v4197_v34  ;;  %v20249_v34 = vand.u32 4294901760, %v18877_v29  ;;  %v4211_v26 = vsel %vm259_vm0, %v17858_v41, 0 }
 0x11c   : >> { %3886 = vmatprep.subr.mxu1 %v18877_v29  ;;  %v4207_v57 = vmul.f32 %v18955_v55, %v4200_v52  ;;  %v4206_v40 = vmul.f32 %v18944_v3, %v4199_v46  ;;  %v18979_v46 = vand.u32 4294901760, %v4211_v26  ;;  %v20252_v29 = vand.u32 4294901760, %v18891_v30 }
 0x11e   : >> { %v4217_v38 = vsel %vm263_vm3, %v4207_v57, 0  ;;  %20250 = vst [vmem:[#allocation16_spill] sm:$0xff] %v18979_v46 }
 0x11f   : >> { %v4219_v52 = vand.u32 4294901760, %v4217_v38 }
 0x120   : >> { %3383 = vmatmul.mubr.f32.vlgmr.msra.gmra.mrb[6].mxu0 %v18857_v53 }
 0x121   : >> { %3394 = vmatpush1.msra.mxu0 %v18884_v63  ;;  %3878 = vmatmul.mubr.f32.vlgmr.msra.gmra.mrb[6].mxu1 %v18864_v24  ;;  %v4298_v57 = vsub.f32 %v4217_v38, %v4219_v52 }
 0x122   : >> { %3467 = vmatprep.subr.mxu0 %v18850_v18  ;;  %3457 = vmatprep.mubr.f32.mxu0 %v20246_v31 }
 0x123   : >> { %3889 = vmatpush1.msra.mxu1 %v18891_v30  ;;  %3952 = vmatprep.mubr.f32.mxu1 %v20246_v31 }
 0x124   : >> { %3962 = vmatprep.subr.mxu1 %v18855_v23 }
 0x128   : >> { %3460 = vmatmul.mubr.f32.vlgmr.msra.gmra.mrb[6].mxu0 %v18881_v32 }
 0x129   : >> { %3469 = vmatpush1.msra.mxu0 %v18860_v36  ;;  %3955 = vmatmul.mubr.f32.vlgmr.msra.gmra.mrb[6].mxu1 %v18887_v51 }
 0x12a   : >> { %3545 = vmatprep.subr.mxu0 %v3309_v6  ;;  %3532 = vmatprep.mubr.f32.mxu0 %v20246_v31  ;;  %v4214_v6 = vsel %vm263_vm3, %v4206_v40, 0  ;;  %v18991_v40 = vsub.f32 %v4211_v26, %v18979_v46 }
 0x12b   : >> { %3964 = vmatpush1.msra.mxu1 %v18873_v28  ;;  %4027 = vmatprep.mubr.f32.mxu1 %v20246_v31  ;;  %v4221_v51 = vand.u32 4294901760, %v4214_v6 }
 0x12c   : >> { %4040 = vmatprep.subr.mxu1 %v20249_v34  ;;  %20253 = vst [vmem:[#allocation17_spill] sm:$0xff] %v18991_v40  ;;  %v18995_v41 = vand.u32 4294901760, %v18991_v40 }
 0x12d   : >> { %v4304_v63 = vsub.f32 %v4214_v6, %v4221_v51 }
 0x12e   : >> { %20254 = vst [vmem:[#allocation18_spill] sm:$0xff] %v18995_v41  ;;  %v4289_v30 = vsub.f32 %v18991_v40, %v18995_v41 }
 0x130   : >> { %3536 = vmatmul.mubr.f32.vlgmr.msra.gmra.mrb[6].mxu0 %v18895_v56  ;;  %v19005_v26 = vand.u32 4294901760, %v4289_v30 }
 0x131   : >> { %3549 = vmatpush1.msra.mxu0 %v20251_v15  ;;  %4031 = vmatmul.mubr.f32.vlgmr.msra.gmra.mrb[6].mxu1 %v18902_v48  ;;  %v4299_v15 = vand.u32 4294901760, %v4298_v57 }
 0x132   : >> { %3621 = vmatprep.subr.mxu0 %v18850_v18  ;;  %3612 = vmatprep.mubr.f32.mxu0 %v20246_v31  ;;  %v4305_v18 = vand.u32 4294901760, %v4304_v63  ;;  %20255 = vst [vmem:[#allocation19_spill] sm:$0xff] %v19005_v26 }
 0x133   : >> { %4044 = vmatpush1.msra.mxu1 %v20252_v29  ;;  %4107 = vmatprep.mubr.f32.mxu1 %v20246_v31 }
 0x134   : >> { %4116 = vmatprep.subr.mxu1 %v18855_v23  ;;  %v4300_v23 = vsub.f32 %v4298_v57, %v4299_v15  ;;  %v4306_v38 = vsub.f32 %v4304_v63, %v4305_v18 }
 0x136   : >> { %v4301_v34 = vand.u32 4294901760, %v4300_v23 }
 0x138   : >> { %3614 = vmatmul.mubr.f32.vlgmr.msra.gmra.mrb[6].mxu0 %v18857_v53 }
 0x139   : >> { %3623 = vmatpush1.msra.mxu0 %v18860_v36  ;;  %4109 = vmatmul.mubr.f32.vlgmr.msra.gmra.mrb[6].mxu1 %v18864_v24  ;;  %v4307_v36 = vand.u32 4294901760, %v4306_v38 }
 0x13a   : >> { %4118 = vmatpush1.msra.mxu1 %v18873_v28  ;;  %3686 = vmatprep.mubr.f32.mxu0 %v20246_v31  ;;  %v237_v28 = vstv %s19023_s25 }
 0x13b   : >> { %4181 = vmatprep.mubr.f32.mxu1 %v20246_v31  ;;  %4220 = vmatprep.subr.mxu0 %v4219_v52  ;;  %v238_v6 = vmul.f32 %v237_v28, %v20256_v0 }
 0x13d   : >> { %v239_v29 = vadd.f32 %v238_v6, %v20257_v1 }
 0x140   : >> { %3688 = vmatmul.mubr.f32.vlgmr.msra.gmra.mrb[6].mxu0 %v18857_v53 }
 0x141   : >> { %4183 = vmatmul.mubr.f32.vlgmr.msra.gmra.mrb[6].mxu1 %v18864_v24  ;;  %4222 = vmatpush1.msra.mxu0 %v4221_v51 }
 0x142   : >> { %4285 = vmatprep.mubr.f32.mxu0 %v20246_v31  ;;  %4302 = vmatprep.subr.mxu0 %v4301_v34 }
 0x143   : >> { %4779 = vmatprep.mubr.f32.mxu1 %v20246_v31 }
 0x144   : >> { %4291 = vmatmul.mubr.f32.vlgmr.msra.gmra.mrb[8].mxu0 %v19005_v26 }
 0x145   : >> { %4308 = vmatpush1.msra.mxu0 %v4307_v36  ;;  %4371 = vmatprep.mubr.f32.mxu0 %v20246_v31 }
 0x146   : >> { %4381 = vmatprep.subr.mxu0 %v4298_v57 }
 0x14c   : >> { %4373 = vmatmul.mubr.f32.vlgmr.msra.gmra.mrb[8].mxu0 %v18979_v46 }
 0x14d   : >> { %4384 = vmatpush1.msra.mxu0 %v4304_v63  ;;  %4447 = vmatprep.mubr.f32.mxu0 %v20246_v31 }
 0x14e   : >> { %4457 = vmatprep.subr.mxu0 %v4219_v52 }
 0x154   : >> { %4450 = vmatmul.mubr.f32.vlgmr.msra.gmra.mrb[8].mxu0 %v18991_v40 }
 0x155   : >> { %4459 = vmatpush1.msra.mxu0 %v4221_v51  ;;  %4522 = vmatprep.mubr.f32.mxu0 %v20246_v31 }
 0x156   : >> { %4535 = vmatprep.subr.mxu0 %v4299_v15 }
 0x15c   : >> { %4526 = vmatmul.mubr.f32.vlgmr.msra.gmra.mrb[8].mxu0 %v18995_v41 }
 0x15d   : >> { %4539 = vmatpush1.msra.mxu0 %v4305_v18  ;;  %4602 = vmatprep.mubr.f32.mxu0 %v20246_v31 }
 0x15e   : >> { %4611 = vmatprep.subr.mxu0 %v4219_v52 }
 0x164   : >> { %4604 = vmatmul.mubr.f32.vlgmr.msra.gmra.mrb[8].mxu0 %v18979_v46 }
 0x165   : >> { %4613 = vmatpush1.msra.mxu0 %v4221_v51  ;;  %4676 = vmatprep.mubr.f32.mxu0 %v20246_v31 }
 0x16c   : >> { %4678 = vmatmul.mubr.f32.vlgmr.msra.gmra.mrb[8].mxu0 %v18979_v46 }
 0x16d   : >> { %5263 = vmatprep.mubr.f32.mxu0 %v20246_v31 }
 0x18f   : >> { %v730_v57 = vpop.f32.mrb[0].mxu0 }
 0x190   : >> { %v732_v52 = vpop.f32.mrb[1].mxu0  ;;  %v1225_v63 = vpop.f32.mrb[0].mxu1 }
 0x191   : >> { %v737_v15 = vcombine.low %v730_v57, %v732_v52  ;;  %v1227_v51 = vpop.f32.mrb[1].mxu1 }
 0x192   : >> { %v1232_v18 = vcombine.low %v1225_v63, %v1227_v51 }
 0x193   : >> { %v739_v23 = vadd.f32 %v737_v15, %v239_v29 }
 0x195   : >> { %v1234_v30 = vadd.f32 %v1232_v18, %v739_v23 }
 0x1bb   : >> { %v1720_v38 = vpop.f32.mrb[2].mxu0 }
 0x1bc   : >> { %v1722_v34 = vpop.f32.mrb[3].mxu0  ;;  %v2215_v36 = vpop.f32.mrb[2].mxu1 }
 0x1bd   : >> { %v1727_v41 = vcombine.low %v1720_v38, %v1722_v34  ;;  %v2217_v40 = vpop.f32.mrb[3].mxu1 }
 0x1be   : >> { %v2222_v46 = vcombine.low %v2215_v36, %v2217_v40  ;;  %v19067_v36 = vld [vmem:[%s20190_s4] sm:$0xff] }
 0x1bf   : >> { %v1729_v26 = vadd.f32 %v1727_v41, %v1234_v30 }
 0x1c1   : >> { %v2224_v48 = vadd.f32 %v2222_v46, %v1729_v26 }
 0x1e7   : >> { %v2699_v56 = vpop.f32.mrb[4].mxu0 }
 0x1e8   : >> { %v2701_v28 = vpop.f32.mrb[5].mxu0  ;;  %v3194_v0 = vpop.f32.mrb[4].mxu1 }
 0x1e9   : >> { %v2706_v3 = vcombine.low %v2699_v56, %v2701_v28  ;;  %v3196_v6 = vpop.f32.mrb[5].mxu1 }
 0x1ea   : >> { %v3201_v1 = vcombine.low %v3194_v0, %v3196_v6 }
 0x1eb   : >> { %v2708_v55 = vadd.f32 %v2706_v3, %v2224_v48 }
 0x1ed   : >> { %v3203_v57 = vadd.f32 %v3201_v1, %v2708_v55 }
 0x213   : >> { %v3689_v52 = vpop.f32.mrb[6].mxu0 }
 0x214   : >> { %v3691_v63 = vpop.f32.mrb[7].mxu0  ;;  %v4184_v29 = vpop.f32.mrb[6].mxu1 }
 0x215   : >> { %v3696_v15 = vcombine.low %v3689_v52, %v3691_v63  ;;  %v4186_v51 = vpop.f32.mrb[7].mxu1 }
 0x216   : >> { %v4191_v18 = vcombine.low %v4184_v29, %v4186_v51 }
 0x217   : >> { %v3698_v23 = vadd.f32 %v3696_v15, %v3203_v57 }
 0x219   : >> { %v4193_v38 = vadd.f32 %v4191_v18, %v3698_v23 }
 0x23f   : >> { %v4679_v34 = vpop.f32.mrb[8].mxu0 }
 0x240   : >> { %v4681_v40 = vpop.f32.mrb[9].mxu0 }
 0x241   : >> { %v4686_v41 = vcombine.low %v4679_v34, %v4681_v40 }
 0x243   : >> { %v4688_v46 = vadd.f32 %v4686_v41, %v4193_v38  ;;  %v19084_v38 = vld [vmem:[%s20190_s4 + $0x8] sm:$0xff] }
 0x245   : >> { %18264 = vtanh.f32 %v4688_v46 }
 0x24f   : >> { %v19028_v26 = vpop.eup %18264 }
 0x250   : >> { %20258 = vst [vmem:[#allocation20_spill] sm:$0xff] %v19028_v26  ;;  %v4691_v56 = vmul.f32 0.0625, %v19028_v26 }
 0x252   : >> { %v19032_v0 = vadd.f32 %v18303_v2, %v4691_v56 }
 0x254   : >> { %4699 = vrot.lane.b32.xlu0 %v19032_v0, %s18310_s7  ;;  %v4697_v1 = vcombine.high %v19032_v0, %v19032_v0 }
 0x256   : >> { %4701 = vrot.lane.b32.xlu1 %v4697_v1, %s18310_s7 }
 0x258   : >> { %5183 = vrot.lane.b32.xlu0 %v19032_v0, %s18311_s8 }
 0x25a   : >> { %5185 = vrot.lane.b32.xlu1 %v4697_v1, %s18311_s8 }
 0x25c   : >> { %5667 = vrot.lane.b32.xlu0 %v19032_v0, %s18312_s9 }
 0x25e   : >> { %5669 = vrot.lane.b32.xlu1 %v4697_v1, %s18312_s9 }
 0x260   : >> { %6151 = vrot.lane.b32.xlu0 %v19032_v0, %s18313_s10 }
 0x262   : >> { %6153 = vrot.lane.b32.xlu1 %v4697_v1, %s18313_s10 }
 0x264   : >> { %7112 = vrot.lane.b32.xlu0 %v19032_v0, %s18314_s11 }
 0x266   : >> { %7114 = vrot.lane.b32.xlu1 %v4697_v1, %s18314_s11 }
 0x268   : >> { %7596 = vrot.lane.b32.xlu0 %v19032_v0, %s18315_s12 }
 0x26a   : >> { %7598 = vrot.lane.b32.xlu1 %v4697_v1, %s18315_s12 }
 0x26c   : >> { %8080 = vrot.lane.b32.xlu0 %v19032_v0, %s18316_s13 }
 0x26e   : >> { %8082 = vrot.lane.b32.xlu1 %v4697_v1, %s18316_s13 }
 0x270   : >> { %8564 = vrot.lane.b32.xlu0 %v19032_v0, %s18317_s14 }
 0x272   : >> { %8566 = vrot.lane.b32.xlu1 %v4697_v1, %s18317_s14 }
 0x2c6   : >> { %v4700_v48 = vpop.permute.xlu0 %4699 }
 0x2c8   : >> { %v4702_v3 = vpop.permute.xlu1 %4701 }
 0x2c9   : >> { %v4703_v55 = vsel %vm249_vm1, %v4700_v48, %v4702_v3  ;;  %v4704_v30 = vsel %vm249_vm1, %v4702_v3, %v4700_v48 }
 0x2ca   : >> { %v4705_v28 = vmul.f32 %v19067_v36, %v4704_v30  ;;  %v4706_v6 = vmul.f32 %v4703_v55, %v18445_v21  ;;  %v5184_v63 = vpop.permute.xlu0 %5183 }
 0x2cc   : >> { %v4708_v57 = vsel %vm263_vm3, %v4705_v28, 0  ;;  %v4711_v52 = vsel %vm263_vm3, %v4706_v6, 0  ;;  %v5186_v29 = vpop.permute.xlu1 %5185 }
 0x2cd   : >> { %v19073_v15 = vand.u32 4294901760, %v4711_v52  ;;  %v19075_v51 = vand.u32 4294901760, %v4708_v57  ;;  %v5187_v18 = vsel %vm744_vm2, %v5184_v63, %v5186_v29  ;;  %v5188_v23 = vsel %vm744_vm2, %v5186_v29, %v5184_v63 }
 0x2ce   : >> { %v5189_v34 = vmul.f32 %v19084_v38, %v5188_v23  ;;  %v5190_v40 = vmul.f32 %v5187_v18, %v18448_v22 }
 0x2cf   : >> { %v4792_v41 = vsub.f32 %v4711_v52, %v19073_v15  ;;  %v19090_v46 = vsub.f32 %v4708_v57, %v19075_v51  ;;  %4714 = vmatprep.subr.mxu1 %v19073_v15 }
 0x2d0   : >> { %v5192_v56 = vsel %vm263_vm3, %v5189_v34, 0  ;;  %v5195_v1 = vsel %vm263_vm3, %v5190_v40, 0  ;;  %4716 = vmatpush1.msra.mxu1 %v19075_v51 }
 0x2d1   : >> { %v19096_v48 = vand.u32 4294901760, %v5195_v1  ;;  %v19098_v3 = vand.u32 4294901760, %v5192_v56  ;;  %4785 = vmatmul.mubr.f32.vlgmr.msra.gmra.mrb[8].mxu1 %v18464_v35  ;;  %v4793_v55 = vand.u32 4294901760, %v4792_v41  ;;  %v4799_v30 = vand.u32 4294901760, %v19090_v46 }
 0x2d2   : >> { %4865 = vmatprep.mubr.f32.mxu1 %v20246_v31 }
 0x2d3   : >> { %v5276_v28 = vsub.f32 %v5195_v1, %v19096_v48  ;;  %v19105_v6 = vsub.f32 %v5192_v56, %v19098_v3  ;;  %5198 = vmatprep.subr.mxu0 %v19096_v48  ;;  %v4794_v57 = vsub.f32 %v4792_v41, %v4793_v55  ;;  %v4800_v52 = vsub.f32 %v19090_v46, %v4799_v30  ;;  %v5670_v1 = vpop.permute.xlu1 %5669 }
 0x2d4   : >> { %5200 = vmatpush1.msra.mxu0 %v19098_v3 }
 0x2d5   : >> { %5269 = vmatmul.mubr.f32.vlgmr.msra.gmra.mrb[10].mxu0 %v18478_v44  ;;  %v4795_v63 = vand.u32 4294901760, %v4794_v57  ;;  %v4801_v29 = vand.u32 4294901760, %v4800_v52  ;;  %v5277_v18 = vand.u32 4294901760, %v5276_v28  ;;  %v5283_v23 = vand.u32 4294901760, %v19105_v6  ;;  %v5668_v52 = vpop.permute.xlu0 %5667 }
 0x2d6   : >> { %5349 = vmatprep.mubr.f32.mxu0 %v20246_v31 }
 0x2d7   : >> { %4796 = vmatprep.subr.mxu1 %v4795_v63  ;;  %v5278_v34 = vsub.f32 %v5276_v28, %v5277_v18  ;;  %v5284_v40 = vsub.f32 %v19105_v6, %v5283_v23  ;;  %v5671_v63 = vsel %vm1239_vm4, %v5668_v52, %v5670_v1 }
 0x2d8   : >> { %4802 = vmatpush1.msra.mxu1 %v4801_v29  ;;  %v6154_v29 = vpop.permute.xlu1 %6153 }
 0x2d9   : >> { %4867 = vmatmul.mubr.f32.vlgmr.msra.gmra.mrb[8].mxu1 %v18420_v9  ;;  %4875 = vmatprep.subr.mxu1 %v4792_v41  ;;  %v5279_v56 = vand.u32 4294901760, %v5278_v34  ;;  %v5285_v57 = vand.u32 4294901760, %v5284_v40  ;;  %v5672_v41 = vsel %vm1239_vm4, %v5670_v1, %v5668_v52 }
 0x2da   : >> { %4878 = vmatpush1.msra.mxu1 %v19090_v46  ;;  %4941 = vmatprep.mubr.f32.mxu1 %v20246_v31  ;;  %v5674_v46 = vmul.f32 %v5671_v63, %v18522_v5  ;;  %v19153_v63 = vld [vmem:[%s20190_s4 + $0x18] sm:$0xff] }
 0x2db   : >> { %4951 = vmatprep.subr.mxu1 %v19073_v15  ;;  %5280 = vmatprep.subr.mxu0 %v5279_v56 }
 0x2dc   : >> { %5286 = vmatpush1.msra.mxu0 %v5285_v57  ;;  %v5679_v56 = vsel %vm263_vm3, %v5674_v46, 0 }
 0x2dd   : >> { %5351 = vmatmul.mubr.f32.vlgmr.msra.gmra.mrb[10].mxu0 %v18422_v10  ;;  %5359 = vmatprep.subr.mxu0 %v5276_v28  ;;  %v6152_v28 = vpop.permute.xlu0 %6151  ;;  %v19146_v52 = vand.u32 4294901760, %v5679_v56 }
 0x2de   : >> { %5362 = vmatpush1.msra.mxu0 %v19105_v6  ;;  %5425 = vmatprep.mubr.f32.mxu0 %v20246_v31  ;;  %v19133_v6 = vld [vmem:[%s20190_s4 + $0x10] sm:$0xff]  ;;  %v6155_v40 = vsel %vm1734_vm5, %v6152_v28, %v6154_v29  ;;  %v6156_v1 = vsel %vm1734_vm5, %v6154_v29, %v6152_v28 }
 0x2df   : >> { %5435 = vmatprep.subr.mxu0 %v19096_v48  ;;  %v5673_v34 = vmul.f32 %v19133_v6, %v5672_v41  ;;  %v6157_v41 = vmul.f32 %v19153_v63, %v6156_v1 }
 0x2e1   : >> { %4944 = vmatmul.mubr.f32.vlgmr.msra.gmra.mrb[8].mxu1 %v18425_v12  ;;  %v5676_v57 = vsel %vm263_vm3, %v5673_v34, 0  ;;  %v6160_v28 = vsel %vm263_vm3, %v6157_v41, 0 }
 0x2e2   : >> { %4953 = vmatpush1.msra.mxu1 %v19075_v51  ;;  %5016 = vmatprep.mubr.f32.mxu1 %v20246_v31  ;;  %v19157_v46 = vand.u32 4294901760, %v5676_v57 }
 0x2e3   : >> { %5029 = vmatprep.subr.mxu1 %v4793_v55  ;;  %v6158_v55 = vmul.f32 %v6155_v40, %v18529_v11  ;;  %v19171_v40 = vand.u32 4294901760, %v6160_v28 }
 0x2e4   : >> { %v19166_v34 = vsub.f32 %v5676_v57, %v19157_v46 }
 0x2e5   : >> { %5428 = vmatmul.mubr.f32.vlgmr.msra.gmra.mrb[10].mxu0 %v18428_v13  ;;  %v6163_v29 = vsel %vm263_vm3, %v6158_v55, 0  ;;  %v19179_v55 = vsub.f32 %v6160_v28, %v19171_v40 }
 0x2e6   : >> { %5437 = vmatpush1.msra.mxu0 %v19098_v3  ;;  %5500 = vmatprep.mubr.f32.mxu0 %v20246_v31  ;;  %v5767_v1 = vand.u32 4294901760, %v19166_v34 }
 0x2e7   : >> { %5513 = vmatprep.subr.mxu0 %v5277_v18  ;;  %v5760_v18 = vsub.f32 %v5679_v56, %v19146_v52  ;;  %v6251_v41 = vand.u32 4294901760, %v19179_v55 }
 0x2e9   : >> { %5020 = vmatmul.mubr.f32.vlgmr.msra.gmra.mrb[8].mxu1 %v18439_v17 }
 0x2ea   : >> { %5033 = vmatpush1.msra.mxu1 %v4799_v30  ;;  %5096 = vmatprep.mubr.f32.mxu1 %v20246_v31  ;;  %v19162_v30 = vand.u32 4294901760, %v6163_v29 }
 0x2eb   : >> { %5105 = vmatprep.subr.mxu1 %v19073_v15  ;;  %v5761_v15 = vand.u32 4294901760, %v5760_v18 }
 0x2ec   : >> { %v6244_v56 = vsub.f32 %v6163_v29, %v19162_v30 }
 0x2ed   : >> { %5504 = vmatmul.mubr.f32.vlgmr.msra.gmra.mrb[10].mxu0 %v18442_v20 }
 0x2ee   : >> { %5517 = vmatpush1.msra.mxu0 %v5283_v23  ;;  %5580 = vmatprep.mubr.f32.mxu0 %v20246_v31  ;;  %v5762_v23 = vsub.f32 %v5760_v18, %v5761_v15 }
 0x2ef   : >> { %5589 = vmatprep.subr.mxu0 %v19096_v48  ;;  %v6245_v48 = vand.u32 4294901760, %v6244_v56 }
 0x2f0   : >> { %v5763_v57 = vand.u32 4294901760, %v5762_v23 }
 0x2f1   : >> { %5098 = vmatmul.mubr.f32.vlgmr.msra.gmra.mrb[8].mxu1 %v18420_v9  ;;  %v6246_v29 = vsub.f32 %v6244_v56, %v6245_v48 }
 0x2f2   : >> { %5107 = vmatpush1.msra.mxu1 %v19075_v51  ;;  %5170 = vmatprep.mubr.f32.mxu1 %v20246_v31  ;;  %v5768_v51 = vsub.f32 %v19166_v34, %v5767_v1 }
 0x2f3   : >> { %5682 = vmatprep.subr.mxu1 %v19146_v52  ;;  %v6247_v23 = vand.u32 4294901760, %v6246_v29 }
 0x2f4   : >> { %v5769_v28 = vand.u32 4294901760, %v5768_v51 }
 0x2f5   : >> { %5582 = vmatmul.mubr.f32.vlgmr.msra.gmra.mrb[10].mxu0 %v18422_v10 }
 0x2f6   : >> { %5591 = vmatpush1.msra.mxu0 %v19098_v3  ;;  %5654 = vmatprep.mubr.f32.mxu0 %v20246_v31  ;;  %v6252_v3 = vsub.f32 %v19179_v55, %v6251_v41 }
 0x2f7   : >> { %6166 = vmatprep.subr.mxu0 %v19162_v30 }
 0x2f8   : >> { %v6253_v26 = vand.u32 4294901760, %v6252_v3 }
 0x2f9   : >> { %5172 = vmatmul.mubr.f32.vlgmr.msra.gmra.mrb[8].mxu1 %v18420_v9 }
 0x2fa   : >> { %5684 = vmatpush1.msra.mxu1 %v19157_v46  ;;  %5747 = vmatprep.mubr.f32.mxu1 %v20246_v31 }
 0x2fb   : >> { %5764 = vmatprep.subr.mxu1 %v5763_v57 }
 0x2fd   : >> { %5753 = vmatmul.mubr.f32.vlgmr.msra.gmra.mrb[10].mxu1 %v18632_v61  ;;  %5656 = vmatmul.mubr.f32.vlgmr.msra.gmra.mrb[10].mxu0 %v18422_v10 }
 0x2fe   : >> { %5770 = vmatpush1.msra.mxu1 %v5769_v28  ;;  %5833 = vmatprep.mubr.f32.mxu1 %v20246_v31 }
 0x2ff   : >> { %5843 = vmatprep.subr.mxu1 %v5760_v18  ;;  %6168 = vmatpush1.msra.mxu0 %v19171_v40  ;;  %v6635_v18 = vmul.f32 %v18653_v7, %v19032_v0 }
 0x300   : >> { %6231 = vmatprep.mubr.f32.mxu0 %v20246_v31  ;;  %6248 = vmatprep.subr.mxu0 %v6247_v23 }
 0x301   : >> { %6237 = vmatmul.mubr.f32.vlgmr.msra.gmra.mrb[12].mxu0 %v18636_v4  ;;  %v6638_v57 = vsel %vm263_vm3, %v6635_v18, 0 }
 0x302   : >> { %6254 = vmatpush1.msra.mxu0 %v6253_v26  ;;  %6317 = vmatprep.mubr.f32.mxu0 %v20246_v31  ;;  %v7115_v26 = vpop.permute.xlu1 %7114  ;;  %v19228_v3 = vand.u32 4294901760, %v6638_v57 }
 0x303   : >> { %6327 = vmatprep.subr.mxu0 %v6244_v56  ;;  %v7113_v56 = vpop.permute.xlu0 %7112 }
 0x304   : >> { %v7117_v7 = vsel %vm2713_vm6, %v7115_v26, %v7113_v56 }
 0x305   : >> { %5835 = vmatmul.mubr.f32.vlgmr.msra.gmra.mrb[10].mxu1 %v18562_v37  ;;  %v7119_v51 = vmul.f32 %v7117_v7, %v18670_v19 }
 0x306   : >> { %5846 = vmatpush1.msra.mxu1 %v19166_v34  ;;  %5909 = vmatprep.mubr.f32.mxu1 %v20246_v31  ;;  %v6637_v34 = vcombine.high %v6635_v18, %v6635_v18 }
 0x307   : >> { %5919 = vmatprep.subr.mxu1 %v19146_v52  ;;  %v7124_v28 = vsel %vm263_vm3, %v7119_v51, 0 }
 0x308   : >> { %v6640_v0 = vsel %vm263_vm3, %v6637_v34, 0 }
 0x309   : >> { %6319 = vmatmul.mubr.f32.vlgmr.msra.gmra.mrb[12].mxu0 %v18569_v39 }
 0x30a   : >> { %6330 = vmatpush1.msra.mxu0 %v19179_v55  ;;  %6393 = vmatprep.mubr.f32.mxu0 %v20246_v31  ;;  %v7116_v55 = vsel %vm2713_vm6, %v7113_v56, %v7115_v26  ;;  %v19234_v26 = vand.u32 4294901760, %v7124_v28 }
 0x30b   : >> { %6403 = vmatprep.subr.mxu0 %v19162_v30  ;;  %v7118_v29 = vmul.f32 %v18660_v8, %v7116_v55  ;;  %v19239_v8 = vsub.f32 %v6638_v57, %v19228_v3 }
 0x30c   : >> { %v19249_v18 = vsub.f32 %v7124_v28, %v19234_v26  ;;  %v7599_v28 = vpop.permute.xlu1 %7598 }
 0x30d   : >> { %5912 = vmatmul.mubr.f32.vlgmr.msra.gmra.mrb[10].mxu1 %v18586_v49 }
 0x30e   : >> { %5921 = vmatpush1.msra.mxu1 %v19157_v46  ;;  %5984 = vmatprep.mubr.f32.mxu1 %v20246_v31  ;;  %v7206_v56 = vand.u32 4294901760, %v19249_v18 }
 0x30f   : >> { %5997 = vmatprep.subr.mxu1 %v5761_v15  ;;  %v19221_v15 = vand.u32 4294901760, %v6640_v0 }
 0x310   : >> { %v7207_v55 = vsub.f32 %v19249_v18, %v7206_v56 }
 0x311   : >> { %6396 = vmatmul.mubr.f32.vlgmr.msra.gmra.mrb[12].mxu0 %v18592_v50  ;;  %v19231_v23 = vsub.f32 %v6640_v0, %v19221_v15 }
 0x312   : >> { %6405 = vmatpush1.msra.mxu0 %v19171_v40  ;;  %6468 = vmatprep.mubr.f32.mxu0 %v20246_v31  ;;  %v7208_v57 = vand.u32 4294901760, %v7207_v55 }
 0x313   : >> { %6481 = vmatprep.subr.mxu0 %v6245_v48  ;;  %v7121_v48 = vsel %vm263_vm3, %v7118_v29, 0 }
 0x315   : >> { %5988 = vmatmul.mubr.f32.vlgmr.msra.gmra.mrb[10].mxu1 %v18600_v42 }
 0x316   : >> { %6001 = vmatpush1.msra.mxu1 %v5767_v1  ;;  %6064 = vmatprep.mubr.f32.mxu1 %v20246_v31  ;;  %v19244_v1 = vand.u32 4294901760, %v7121_v48 }
 0x317   : >> { %6073 = vmatprep.subr.mxu1 %v19146_v52  ;;  %v6722_v52 = vand.u32 4294901760, %v19231_v23 }
 0x319   : >> { %6472 = vmatmul.mubr.f32.vlgmr.msra.gmra.mrb[12].mxu0 %v18607_v54  ;;  %v6723_v34 = vsub.f32 %v19231_v23, %v6722_v52 }
 0x31a   : >> { %6485 = vmatpush1.msra.mxu0 %v6251_v41  ;;  %6548 = vmatprep.mubr.f32.mxu0 %v20246_v31  ;;  %v6728_v41 = vand.u32 4294901760, %v19239_v8 }
 0x31b   : >> { %6557 = vmatprep.subr.mxu0 %v19162_v30  ;;  %v19255_v30 = vsub.f32 %v7121_v48, %v19244_v1  ;;  %v6724_v7 = vand.u32 4294901760, %v6723_v34  ;;  %v8083_v34 = vpop.permute.xlu1 %8082 }
 0x31d   : >> { %6066 = vmatmul.mubr.f32.vlgmr.msra.gmra.mrb[10].mxu1 %v18562_v37  ;;  %v7212_v0 = vand.u32 4294901760, %v19255_v30 }
 0x31e   : >> { %6075 = vmatpush1.msra.mxu1 %v19157_v46  ;;  %6138 = vmatprep.mubr.f32.mxu1 %v20246_v31  ;;  %v6729_v46 = vsub.f32 %v19239_v8, %v6728_v41 }
 0x31f   : >> { %6643 = vmatprep.subr.mxu1 %v19221_v15 }
 0x320   : >> { %v6730_v51 = vand.u32 4294901760, %v6729_v46 }
 0x321   : >> { %6550 = vmatmul.mubr.f32.vlgmr.msra.gmra.mrb[12].mxu0 %v18569_v39 }
 0x322   : >> { %6559 = vmatpush1.msra.mxu0 %v19171_v40  ;;  %6622 = vmatprep.mubr.f32.mxu0 %v20246_v31  ;;  %v7213_v40 = vsub.f32 %v19255_v30, %v7212_v0 }
 0x323   : >> { %7127 = vmatprep.subr.mxu0 %v19234_v26 }
 0x324   : >> { %v7214_v29 = vand.u32 4294901760, %v7213_v40 }
 0x325   : >> { %6140 = vmatmul.mubr.f32.vlgmr.msra.gmra.mrb[10].mxu1 %v18562_v37 }
 0x326   : >> { %6645 = vmatpush1.msra.mxu1 %v19228_v3  ;;  %6708 = vmatprep.mubr.f32.mxu1 %v20246_v31 }
 0x327   : >> { %6725 = vmatprep.subr.mxu1 %v6724_v7 }
 0x329   : >> { %6714 = vmatmul.mubr.f32.vlgmr.msra.gmra.mrb[12].mxu1 %v18775_v25  ;;  %6624 = vmatmul.mubr.f32.vlgmr.msra.gmra.mrb[12].mxu0 %v18569_v39 }
 0x32a   : >> { %6731 = vmatpush1.msra.mxu1 %v6730_v51  ;;  %6794 = vmatprep.mubr.f32.mxu1 %v20246_v31 }
 0x32b   : >> { %6804 = vmatprep.subr.mxu1 %v19231_v23  ;;  %7129 = vmatpush1.msra.mxu0 %v19244_v1  ;;  %v7597_v23 = vpop.permute.xlu0 %7596 }
 0x32c   : >> { %7192 = vmatprep.mubr.f32.mxu0 %v20246_v31  ;;  %7209 = vmatprep.subr.mxu0 %v7208_v57  ;;  %v7601_v48 = vsel %vm3208_vm7, %v7599_v28, %v7597_v23 }
 0x32d   : >> { %7198 = vmatmul.mubr.f32.vlgmr.msra.gmra.mrb[14].mxu0 %v18779_v27 }
 0x32e   : >> { %7215 = vmatpush1.msra.mxu0 %v7214_v29  ;;  %7278 = vmatprep.mubr.f32.mxu0 %v20246_v31  ;;  %v20260_v29 = vld [vmem:[#allocation6_spill] sm:$0xff] }
 0x32f   : >> { %7288 = vmatprep.subr.mxu0 %v19249_v18  ;;  %v7603_v18 = vmul.f32 %v7601_v48, %v18810_v45  ;;  %v8081_v46 = vpop.permute.xlu0 %8080 }
 0x330   : >> { %v8085_v7 = vsel %vm3703_vm8, %v8083_v34, %v8081_v46  ;;  %v8084_v51 = vsel %vm3703_vm8, %v8081_v46, %v8083_v34 }
 0x331   : >> { %6796 = vmatmul.mubr.f32.vlgmr.msra.gmra.mrb[12].mxu1 %v18705_v47  ;;  %v7608_v55 = vsel %vm263_vm3, %v7603_v18, 0  ;;  %v8087_v40 = vmul.f32 %v8085_v7, %v18818_v16 }
 0x332   : >> { %6807 = vmatpush1.msra.mxu1 %v19239_v8  ;;  %6870 = vmatprep.mubr.f32.mxu1 %v20246_v31  ;;  %v7600_v8 = vsel %vm3208_vm7, %v7597_v23, %v7599_v28  ;;  %v19305_v57 = vand.u32 4294901760, %v7608_v55  ;;  %v8086_v28 = vmul.f32 %v20260_v29, %v8084_v51 }
 0x333   : >> { %6880 = vmatprep.subr.mxu1 %v19221_v15  ;;  %v8092_v48 = vsel %vm263_vm3, %v8087_v40, 0 }
 0x334   : >> { %v8089_v18 = vsel %vm263_vm3, %v8086_v28, 0  ;;  %v19318_v34 = vand.u32 4294901760, %v8092_v48 }
 0x335   : >> { %7280 = vmatmul.mubr.f32.vlgmr.msra.gmra.mrb[14].mxu0 %v18712_v43  ;;  %v19328_v46 = vand.u32 4294901760, %v8089_v18 }
 0x336   : >> { %7291 = vmatpush1.msra.mxu0 %v19255_v30  ;;  %7354 = vmatprep.mubr.f32.mxu0 %v20246_v31  ;;  %v7602_v30 = vmul.f32 %v18794_v33, %v7600_v8  ;;  %v20259_v33 = vld [vmem:[#allocation4_spill] sm:$0xff]  ;;  %v19315_v8 = vsub.f32 %v7608_v55, %v19305_v57 }
 0x337   : >> { %7364 = vmatprep.subr.mxu0 %v19234_v26 }
 0x339   : >> { %6873 = vmatmul.mubr.f32.vlgmr.msra.gmra.mrb[12].mxu1 %v18729_v58 }
 0x33a   : >> { %6882 = vmatpush1.msra.mxu1 %v19228_v3  ;;  %6945 = vmatprep.mubr.f32.mxu1 %v20246_v31 }
 0x33b   : >> { %6958 = vmatprep.subr.mxu1 %v6722_v52  ;;  %v7605_v52 = vsel %vm263_vm3, %v7602_v30, 0  ;;  %v8173_v30 = vsub.f32 %v8092_v48, %v19318_v34 }
 0x33c   : >> { %v19311_v23 = vand.u32 4294901760, %v7605_v52 }
 0x33d   : >> { %7357 = vmatmul.mubr.f32.vlgmr.msra.gmra.mrb[14].mxu0 %v18735_v59  ;;  %v8174_v55 = vand.u32 4294901760, %v8173_v30 }
 0x33e   : >> { %7366 = vmatpush1.msra.mxu0 %v19244_v1  ;;  %7429 = vmatprep.mubr.f32.mxu0 %v20246_v31 }
 0x33f   : >> { %7442 = vmatprep.subr.mxu0 %v7206_v56  ;;  %v20261_v56 = vld [vmem:[#allocation5_spill] sm:$0xff] }
 0x341   : >> { %6949 = vmatmul.mubr.f32.vlgmr.msra.gmra.mrb[12].mxu1 %v20259_v33 }
 0x342   : >> { %6962 = vmatpush1.msra.mxu1 %v6728_v41  ;;  %7025 = vmatprep.mubr.f32.mxu1 %v20246_v31  ;;  %v19322_v41 = vsub.f32 %v7605_v52, %v19311_v23  ;;  %v8175_v52 = vsub.f32 %v8173_v30, %v8174_v55 }
 0x343   : >> { %7034 = vmatprep.subr.mxu1 %v19221_v15  ;;  %v7690_v15 = vand.u32 4294901760, %v19315_v8 }
 0x344   : >> { %v8176_v28 = vand.u32 4294901760, %v8175_v52 }
 0x345   : >> { %7433 = vmatmul.mubr.f32.vlgmr.msra.gmra.mrb[14].mxu0 %v20261_v56  ;;  %v7691_v7 = vsub.f32 %v19315_v8, %v7690_v15 }
 0x346   : >> { %7446 = vmatpush1.msra.mxu0 %v7212_v0  ;;  %7509 = vmatprep.mubr.f32.mxu0 %v20246_v31  ;;  %v7696_v0 = vand.u32 4294901760, %v19322_v41 }
 0x347   : >> { %7518 = vmatprep.subr.mxu0 %v19234_v26  ;;  %v19337_v26 = vsub.f32 %v8089_v18, %v19328_v46  ;;  %v7692_v51 = vand.u32 4294901760, %v7691_v7  ;;  %v8565_v18 = vpop.permute.xlu0 %8564 }
 0x349   : >> { %7027 = vmatmul.mubr.f32.vlgmr.msra.gmra.mrb[12].mxu1 %v18705_v47  ;;  %v8180_v40 = vand.u32 4294901760, %v19337_v26 }
 0x34a   : >> { %7036 = vmatpush1.msra.mxu1 %v19228_v3  ;;  %7099 = vmatprep.mubr.f32.mxu1 %v20246_v31  ;;  %v7697_v3 = vsub.f32 %v19322_v41, %v7696_v0 }
 0x34b   : >> { %7611 = vmatprep.subr.mxu1 %v19305_v57 }
 0x34c   : >> { %v7698_v29 = vand.u32 4294901760, %v7697_v3 }
 0x34d   : >> { %7511 = vmatmul.mubr.f32.vlgmr.msra.gmra.mrb[14].mxu0 %v18712_v43 }
 0x34e   : >> { %7520 = vmatpush1.msra.mxu0 %v19244_v1  ;;  %7583 = vmatprep.mubr.f32.mxu0 %v20246_v31  ;;  %v8181_v1 = vsub.f32 %v19337_v26, %v8180_v40 }
 0x34f   : >> { %8095 = vmatprep.subr.mxu0 %v19318_v34 }
 0x350   : >> { %v8182_v48 = vand.u32 4294901760, %v8181_v1 }
 0x351   : >> { %7101 = vmatmul.mubr.f32.vlgmr.msra.gmra.mrb[12].mxu1 %v18705_v47 }
 0x352   : >> { %7613 = vmatpush1.msra.mxu1 %v19311_v23  ;;  %7676 = vmatprep.mubr.f32.mxu1 %v20246_v31 }
 0x353   : >> { %7693 = vmatprep.subr.mxu1 %v7692_v51  ;;  %v20263_v51 = vld [vmem:[#allocation14_spill] sm:$0xff] }
 0x355   : >> { %7682 = vmatmul.mubr.f32.vlgmr.msra.gmra.mrb[14].mxu1 %v18925_v62  ;;  %7585 = vmatmul.mubr.f32.vlgmr.msra.gmra.mrb[14].mxu0 %v18712_v43 }
 0x356   : >> { %7699 = vmatpush1.msra.mxu1 %v7698_v29  ;;  %7762 = vmatprep.mubr.f32.mxu1 %v20246_v31  ;;  %v20264_v29 = vld [vmem:[#allocation10_spill] sm:$0xff] }
 0x357   : >> { %7772 = vmatprep.subr.mxu1 %v19315_v8  ;;  %8097 = vmatpush1.msra.mxu0 %v19328_v46  ;;  %v8567_v8 = vpop.permute.xlu1 %8566 }
 0x358   : >> { %8160 = vmatprep.mubr.f32.mxu0 %v20246_v31  ;;  %8177 = vmatprep.subr.mxu0 %v8176_v28  ;;  %v8569_v7 = vsel %vm4198_vm9, %v8567_v8, %v8565_v18 }
 0x359   : >> { %8166 = vmatmul.mubr.f32.vlgmr.msra.gmra.mrb[16].mxu0 %v18929_v60 }
 0x35a   : >> { %8183 = vmatpush1.msra.mxu0 %v8182_v48  ;;  %8246 = vmatprep.mubr.f32.mxu0 %v20246_v31  ;;  %v20265_v48 = vld [vmem:[#allocation11_spill] sm:$0xff] }
 0x35b   : >> { %8256 = vmatprep.subr.mxu0 %v8173_v30  ;;  %v20262_v30 = vld [vmem:[#allocation15_spill] sm:$0xff] }
 0x35c   : >> { %v8571_v3 = vmul.f32 %v8569_v7, %v20262_v30 }
 0x35d   : >> { %7764 = vmatmul.mubr.f32.vlgmr.msra.gmra.mrb[14].mxu1 %v18857_v53 }
 0x35e   : >> { %7775 = vmatpush1.msra.mxu1 %v19322_v41  ;;  %7838 = vmatprep.mubr.f32.mxu1 %v20246_v31  ;;  %v8568_v41 = vsel %vm4198_vm9, %v8565_v18, %v8567_v8  ;;  %v20266_v18 = vld [vmem:[#allocation12_spill] sm:$0xff] }
 0x35f   : >> { %7848 = vmatprep.subr.mxu1 %v19305_v57  ;;  %v8570_v52 = vmul.f32 %v20263_v51, %v8568_v41  ;;  %v20267_v41 = vld [vmem:[#allocation19_spill] sm:$0xff]  ;;  %v20270_v51 = vld [vmem:[#allocation18_spill] sm:$0xff] }
 0x361   : >> { %8248 = vmatmul.mubr.f32.vlgmr.msra.gmra.mrb[16].mxu0 %v18864_v24  ;;  %v8573_v1 = vsel %vm263_vm3, %v8570_v52, 0  ;;  %v4693_v52 = vstv %s4690_s20 }
 0x362   : >> { %8259 = vmatpush1.msra.mxu0 %v19337_v26  ;;  %8322 = vmatprep.mubr.f32.mxu0 %v20246_v31  ;;  %v8576_v26 = vsel %vm263_vm3, %v8571_v3, 0  ;;  %v20269_v3 = vld [vmem:[#allocation17_spill] sm:$0xff] }
 0x363   : >> { %8332 = vmatprep.subr.mxu0 %v19318_v34  ;;  %v8578_v28 = vand.u32 4294901760, %v8576_v26 }
 0x365   : >> { %7841 = vmatmul.mubr.f32.vlgmr.msra.gmra.mrb[14].mxu1 %v18881_v32  ;;  %v8657_v8 = vsub.f32 %v8576_v26, %v8578_v28 }
 0x366   : >> { %7850 = vmatpush1.msra.mxu1 %v19311_v23  ;;  %7913 = vmatprep.mubr.f32.mxu1 %v20246_v31 }
 0x367   : >> { %7926 = vmatprep.subr.mxu1 %v7690_v15  ;;  %v8580_v15 = vand.u32 4294901760, %v8573_v1 }
 0x369   : >> { %8325 = vmatmul.mubr.f32.vlgmr.msra.gmra.mrb[16].mxu0 %v20264_v29  ;;  %v8663_v7 = vsub.f32 %v8573_v1, %v8580_v15  ;;  %v20271_v1 = vld [vmem:[#allocation2_spill] sm:$0xff] }
 0x36a   : >> { %8334 = vmatpush1.msra.mxu0 %v19328_v46  ;;  %8397 = vmatprep.mubr.f32.mxu0 %v20246_v31 }
 0x36b   : >> { %8410 = vmatprep.subr.mxu0 %v8174_v55  ;;  %v8658_v55 = vand.u32 4294901760, %v8657_v8 }
 0x36d   : >> { %7917 = vmatmul.mubr.f32.vlgmr.msra.gmra.mrb[14].mxu1 %v20265_v48 }
 0x36e   : >> { %7930 = vmatpush1.msra.mxu1 %v7696_v0  ;;  %7993 = vmatprep.mubr.f32.mxu1 %v20246_v31  ;;  %v8664_v0 = vand.u32 4294901760, %v8663_v7 }
 0x36f   : >> { %8002 = vmatprep.subr.mxu1 %v19305_v57  ;;  %v8659_v57 = vsub.f32 %v8657_v8, %v8658_v55 }
 0x371   : >> { %8401 = vmatmul.mubr.f32.vlgmr.msra.gmra.mrb[16].mxu0 %v20266_v18 }
 0x372   : >> { %8414 = vmatpush1.msra.mxu0 %v8180_v40  ;;  %8477 = vmatprep.mubr.f32.mxu0 %v20246_v31  ;;  %v8665_v40 = vsub.f32 %v8663_v7, %v8664_v0 }
 0x373   : >> { %8486 = vmatprep.subr.mxu0 %v19318_v34  ;;  %v8660_v34 = vand.u32 4294901760, %v8659_v57 }
 0x375   : >> { %7995 = vmatmul.mubr.f32.vlgmr.msra.gmra.mrb[14].mxu1 %v18857_v53 }
 0x376   : >> { %8004 = vmatpush1.msra.mxu1 %v19311_v23  ;;  %8067 = vmatprep.mubr.f32.mxu1 %v20246_v31  ;;  %v8666_v23 = vand.u32 4294901760, %v8665_v40 }
 0x377   : >> { %8579 = vmatprep.subr.mxu1 %v8578_v28 }
 0x379   : >> { %8479 = vmatmul.mubr.f32.vlgmr.msra.gmra.mrb[16].mxu0 %v18864_v24 }
 0x37a   : >> { %8488 = vmatpush1.msra.mxu0 %v19328_v46  ;;  %8551 = vmatprep.mubr.f32.mxu0 %v20246_v31  ;;  %v20268_v46 = vld [vmem:[#allocation16_spill] sm:$0xff] }
 0x37d   : >> { %8069 = vmatmul.mubr.f32.vlgmr.msra.gmra.mrb[14].mxu1 %v18857_v53 }
 0x37e   : >> { %8581 = vmatpush1.msra.mxu1 %v8580_v15  ;;  %8644 = vmatprep.mubr.f32.mxu1 %v20246_v31 }
 0x37f   : >> { %8661 = vmatprep.subr.mxu1 %v8660_v34 }
 0x381   : >> { %8650 = vmatmul.mubr.f32.vlgmr.msra.gmra.mrb[16].mxu1 %v20267_v41  ;;  %8553 = vmatmul.mubr.f32.vlgmr.msra.gmra.mrb[16].mxu0 %v18864_v24 }
 0x382   : >> { %8667 = vmatpush1.msra.mxu1 %v8666_v23  ;;  %8730 = vmatprep.mubr.f32.mxu1 %v20246_v31 }
 0x383   : >> { %8740 = vmatprep.subr.mxu1 %v8657_v8  ;;  %9134 = vmatprep.mubr.f32.mxu0 %v20246_v31  ;;  %v4694_v8 = vmul.f32 %v4693_v52, %v20271_v1 }
 0x389   : >> { %8732 = vmatmul.mubr.f32.vlgmr.msra.gmra.mrb[16].mxu1 %v20268_v46 }
 0x38a   : >> { %8743 = vmatpush1.msra.mxu1 %v8663_v7  ;;  %8806 = vmatprep.mubr.f32.mxu1 %v20246_v31 }
 0x38b   : >> { %8816 = vmatprep.subr.mxu1 %v8578_v28 }
 0x391   : >> { %8809 = vmatmul.mubr.f32.vlgmr.msra.gmra.mrb[16].mxu1 %v20269_v3 }
 0x392   : >> { %8818 = vmatpush1.msra.mxu1 %v8580_v15  ;;  %8881 = vmatprep.mubr.f32.mxu1 %v20246_v31 }
 0x393   : >> { %8894 = vmatprep.subr.mxu1 %v8658_v55 }
 0x399   : >> { %8885 = vmatmul.mubr.f32.vlgmr.msra.gmra.mrb[16].mxu1 %v20270_v51 }
 0x39a   : >> { %8898 = vmatpush1.msra.mxu1 %v8664_v0  ;;  %8961 = vmatprep.mubr.f32.mxu1 %v20246_v31  ;;  %v20272_v0 = vld [vmem:[#allocation3_spill] sm:$0xff] }
 0x39b   : >> { %8970 = vmatprep.subr.mxu1 %v8578_v28  ;;  %v19410_v57 = vadd.f32 %v4694_v8, %v20272_v0 }
 0x3a1   : >> { %8963 = vmatmul.mubr.f32.vlgmr.msra.gmra.mrb[16].mxu1 %v20268_v46 }
 0x3a2   : >> { %8972 = vmatpush1.msra.mxu1 %v8580_v15  ;;  %9035 = vmatprep.mubr.f32.mxu1 %v20246_v31 }
 0x3a9   : >> { %9037 = vmatmul.mubr.f32.vlgmr.msra.gmra.mrb[16].mxu1 %v20268_v46 }
 0x3aa   : >> { %9618 = vmatprep.mubr.f32.mxu1 %v20246_v31 }
 0x3cc   : >> { %v5173_v26 = vpop.f32.mrb[8].mxu1 }
 0x3cd   : >> { %v5175_v7 = vpop.f32.mrb[9].mxu1 }
 0x3ce   : >> { %v5180_v55 = vcombine.low %v5173_v26, %v5175_v7 }
 0x3d0   : >> { %v5657_v28 = vpop.f32.mrb[10].mxu0  ;;  %v5182_v15 = vadd.f32 %v5180_v55, %v19410_v57 }
 0x3d1   : >> { %v5659_v40 = vpop.f32.mrb[11].mxu0 }
 0x3d2   : >> { %v5664_v34 = vcombine.low %v5657_v28, %v5659_v40 }
 0x3d4   : >> { %v5666_v23 = vadd.f32 %v5664_v34, %v5182_v15 }
 0x3f8   : >> { %v6141_v51 = vpop.f32.mrb[10].mxu1 }
 0x3f9   : >> { %v6143_v3 = vpop.f32.mrb[11].mxu1 }
 0x3fa   : >> { %v6148_v46 = vcombine.low %v6141_v51, %v6143_v3 }
 0x3fc   : >> { %v6150_v41 = vadd.f32 %v6148_v46, %v5666_v23  ;;  %v6625_v18 = vpop.f32.mrb[12].mxu0 }
 0x3fd   : >> { %v6627_v48 = vpop.f32.mrb[13].mxu0 }
 0x3fe   : >> { %v6632_v29 = vcombine.low %v6625_v18, %v6627_v48 }
 0x400   : >> { %v6634_v30 = vadd.f32 %v6632_v29, %v6150_v41 }
 0x424   : >> { %v7102_v52 = vpop.f32.mrb[12].mxu1 }
 0x425   : >> { %v7104_v1 = vpop.f32.mrb[13].mxu1 }
 0x426   : >> { %v7109_v26 = vcombine.low %v7102_v52, %v7104_v1 }
 0x428   : >> { %v7111_v7 = vadd.f32 %v7109_v26, %v6634_v30  ;;  %v7586_v8 = vpop.f32.mrb[14].mxu0 }
 0x429   : >> { %v7588_v0 = vpop.f32.mrb[15].mxu0 }
 0x42a   : >> { %v7593_v32 = vcombine.low %v7586_v8, %v7588_v0 }
 0x42c   : >> { %v7595_v24 = vadd.f32 %v7593_v32, %v7111_v7 }
 0x450   : >> { %v8070_v53 = vpop.f32.mrb[14].mxu1 }
 0x451   : >> { %v8072_v55 = vpop.f32.mrb[15].mxu1 }
 0x452   : >> { %v8077_v28 = vcombine.low %v8070_v53, %v8072_v55 }
 0x454   : >> { %v8079_v40 = vadd.f32 %v8077_v28, %v7595_v24  ;;  %v8554_v15 = vpop.f32.mrb[16].mxu0 }
 0x455   : >> { %v8556_v34 = vpop.f32.mrb[17].mxu0 }
 0x456   : >> { %v8561_v3 = vcombine.low %v8554_v15, %v8556_v34 }
 0x458   : >> { %v8563_v46 = vadd.f32 %v8561_v3, %v8079_v40 }
 0x47c   : >> { %v9038_v51 = vpop.f32.mrb[16].mxu1 }
 0x47d   : >> { %v9040_v23 = vpop.f32.mrb[17].mxu1 }
 0x47e   : >> { %v9045_v48 = vcombine.low %v9038_v51, %v9040_v23 }
 0x480   : >> { %v9047_v29 = vadd.f32 %v9045_v48, %v8563_v46 }
 0x482   : >> { %18266 = vtanh.f32 %v9047_v29 }
 0x48c   : >> { %v19413_v18 = vpop.eup %18266 }
 0x48d   : >> { %v9049_v30 = vmul.f32 0.0625, %v19413_v18 }
 0x48f   : >> { %v19417_v41 = vadd.f32 %v18303_v2, %v9049_v30 }
 0x491   : >> { %9054 = vrot.lane.b32.xlu0 %v19417_v41, %s18310_s7  ;;  %v9052_v53 = vcombine.high %v19417_v41, %v19417_v41 }
 0x493   : >> { %9056 = vrot.lane.b32.xlu1 %v9052_v53, %s18310_s7 }
 0x495   : >> { %9538 = vrot.lane.b32.xlu0 %v19417_v41, %s18311_s8 }
 0x497   : >> { %9540 = vrot.lane.b32.xlu1 %v9052_v53, %s18311_s8 }
 0x499   : >> { %10022 = vrot.lane.b32.xlu0 %v19417_v41, %s18312_s9 }
 0x49b   : >> { %10024 = vrot.lane.b32.xlu1 %v9052_v53, %s18312_s9 }
 0x49d   : >> { %10506 = vrot.lane.b32.xlu0 %v19417_v41, %s18313_s10 }
 0x49f   : >> { %10508 = vrot.lane.b32.xlu1 %v9052_v53, %s18313_s10 }
 0x4a1   : >> { %11467 = vrot.lane.b32.xlu0 %v19417_v41, %s18314_s11 }
 0x4a3   : >> { %11469 = vrot.lane.b32.xlu1 %v9052_v53, %s18314_s11 }
 0x4a5   : >> { %11951 = vrot.lane.b32.xlu0 %v19417_v41, %s18315_s12 }
 0x4a7   : >> { %11953 = vrot.lane.b32.xlu1 %v9052_v53, %s18315_s12 }
 0x4a9   : >> { %12435 = vrot.lane.b32.xlu0 %v19417_v41, %s18316_s13 }
 0x4ab   : >> { %12437 = vrot.lane.b32.xlu1 %v9052_v53, %s18316_s13 }
 0x4ad   : >> { %12919 = vrot.lane.b32.xlu0 %v19417_v41, %s18317_s14 }
 0x4af   : >> { %12921 = vrot.lane.b32.xlu1 %v9052_v53, %s18317_s14 }
 0x503   : >> { %v9055_v24 = vpop.permute.xlu0 %9054 }
 0x505   : >> { %v9057_v32 = vpop.permute.xlu1 %9056 }
 0x506   : >> { %v9058_v1 = vsel %vm249_vm1, %v9055_v24, %v9057_v32  ;;  %v9059_v0 = vsel %vm249_vm1, %v9057_v32, %v9055_v24 }
 0x507   : >> { %v9060_v52 = vmul.f32 %v19067_v36, %v9059_v0  ;;  %v9061_v26 = vmul.f32 %v9058_v1, %v18445_v21  ;;  %v9539_v55 = vpop.permute.xlu0 %9538 }
 0x509   : >> { %v9063_v7 = vsel %vm263_vm3, %v9060_v52, 0  ;;  %v9066_v8 = vsel %vm263_vm3, %v9061_v26, 0  ;;  %v9541_v28 = vpop.permute.xlu1 %9540 }
 0x50a   : >> { %v19453_v40 = vand.u32 4294901760, %v9066_v8  ;;  %v19455_v15 = vand.u32 4294901760, %v9063_v7  ;;  %v9542_v34 = vsel %vm744_vm2, %v9539_v55, %v9541_v28  ;;  %v9543_v3 = vsel %vm744_vm2, %v9541_v28, %v9539_v55 }
 0x50b   : >> { %v9544_v36 = vmul.f32 %v19084_v38, %v9543_v3  ;;  %v9545_v46 = vmul.f32 %v9542_v34, %v18448_v22 }
 0x50c   : >> { %v9147_v51 = vsub.f32 %v9066_v8, %v19453_v40  ;;  %v19465_v23 = vsub.f32 %v9063_v7, %v19455_v15  ;;  %9069 = vmatprep.subr.mxu0 %v19453_v40 }
 0x50d   : >> { %v9547_v48 = vsel %vm263_vm3, %v9544_v36, 0  ;;  %v9550_v29 = vsel %vm263_vm3, %v9545_v46, 0  ;;  %9071 = vmatpush1.msra.mxu0 %v19455_v15  ;;  %v10025_v36 = vpop.permute.xlu1 %10024 }
 0x50e   : >> { %v19471_v30 = vand.u32 4294901760, %v9550_v29  ;;  %v19473_v53 = vand.u32 4294901760, %v9547_v48  ;;  %9140 = vmatmul.mubr.f32.vlgmr.msra.gmra.mrb[18].mxu0 %v18464_v35  ;;  %v9148_v38 = vand.u32 4294901760, %v9147_v51  ;;  %v9154_v24 = vand.u32 4294901760, %v19465_v23 }
 0x50f   : >> { %9220 = vmatprep.mubr.f32.mxu0 %v20246_v31 }
 0x510   : >> { %v9631_v32 = vsub.f32 %v9550_v29, %v19471_v30  ;;  %v19480_v1 = vsub.f32 %v9547_v48, %v19473_v53  ;;  %9553 = vmatprep.subr.mxu1 %v19471_v30  ;;  %v9149_v0 = vsub.f32 %v9147_v51, %v9148_v38  ;;  %v9155_v52 = vsub.f32 %v19465_v23, %v9154_v24  ;;  %v10023_v48 = vpop.permute.xlu0 %10022 }
 0x511   : >> { %9555 = vmatpush1.msra.mxu1 %v19473_v53  ;;  %v10026_v29 = vsel %vm1239_vm4, %v10023_v48, %v10025_v36 }
 0x512   : >> { %9624 = vmatmul.mubr.f32.vlgmr.msra.gmra.mrb[18].mxu1 %v18478_v44  ;;  %v9150_v26 = vand.u32 4294901760, %v9149_v0  ;;  %v9156_v7 = vand.u32 4294901760, %v9155_v52  ;;  %v9632_v8 = vand.u32 4294901760, %v9631_v32  ;;  %v9638_v55 = vand.u32 4294901760, %v19480_v1  ;;  %v10509_v0 = vpop.permute.xlu1 %10508 }
 0x513   : >> { %9704 = vmatprep.mubr.f32.mxu1 %v20246_v31 }
 0x514   : >> { %9151 = vmatprep.subr.mxu0 %v9150_v26  ;;  %v9633_v28 = vsub.f32 %v9631_v32, %v9632_v8  ;;  %v9639_v34 = vsub.f32 %v19480_v1, %v9638_v55 }
 0x515   : >> { %9157 = vmatpush1.msra.mxu0 %v9156_v7 }
 0x516   : >> { %9222 = vmatmul.mubr.f32.vlgmr.msra.gmra.mrb[18].mxu0 %v18420_v9  ;;  %9230 = vmatprep.subr.mxu0 %v9147_v51  ;;  %v9634_v3 = vand.u32 4294901760, %v9633_v28  ;;  %v9640_v46 = vand.u32 4294901760, %v9639_v34  ;;  %v10027_v51 = vsel %vm1239_vm4, %v10025_v36, %v10023_v48 }
 0x517   : >> { %9233 = vmatpush1.msra.mxu0 %v19465_v23  ;;  %9296 = vmatprep.mubr.f32.mxu0 %v20246_v31  ;;  %v10029_v23 = vmul.f32 %v10026_v29, %v18522_v5 }
 0x518   : >> { %9306 = vmatprep.subr.mxu0 %v19453_v40  ;;  %9635 = vmatprep.subr.mxu1 %v9634_v3 }
 0x519   : >> { %9641 = vmatpush1.msra.mxu1 %v9640_v46  ;;  %v10034_v26 = vsel %vm263_vm3, %v10029_v23, 0 }
 0x51a   : >> { %9706 = vmatmul.mubr.f32.vlgmr.msra.gmra.mrb[18].mxu1 %v18422_v10  ;;  %9714 = vmatprep.subr.mxu1 %v9631_v32  ;;  %v10507_v32 = vpop.permute.xlu0 %10506  ;;  %v19516_v34 = vand.u32 4294901760, %v10034_v26 }
 0x51b   : >> { %9717 = vmatpush1.msra.mxu1 %v19480_v1  ;;  %9780 = vmatprep.mubr.f32.mxu1 %v20246_v31  ;;  %v10028_v1 = vmul.f32 %v19133_v6, %v10027_v51  ;;  %v10510_v52 = vsel %vm1734_vm5, %v10507_v32, %v10509_v0  ;;  %v10511_v7 = vsel %vm1734_vm5, %v10509_v0, %v10507_v32 }
 0x51c   : >> { %9790 = vmatprep.subr.mxu1 %v19471_v30  ;;  %v10513_v28 = vmul.f32 %v10510_v52, %v18529_v11  ;;  %v10512_v6 = vmul.f32 %v19153_v63, %v10511_v7  ;;  %v10115_v46 = vsub.f32 %v10034_v26, %v19516_v34 }
 0x51e   : >> { %9299 = vmatmul.mubr.f32.vlgmr.msra.gmra.mrb[18].mxu0 %v18425_v12  ;;  %v10518_v36 = vsel %vm263_vm3, %v10513_v28, 0  ;;  %v10515_v48 = vsel %vm263_vm3, %v10512_v6, 0  ;;  %v10116_v63 = vand.u32 4294901760, %v10115_v46  ;;  %v19570_v28 = vld [vmem:[%s20190_s4 + $0x20] sm:$0xff]  ;;  %v11470_v6 = vpop.permute.xlu1 %11469 }
 0x51f   : >> { %9308 = vmatpush1.msra.mxu0 %v19455_v15  ;;  %9371 = vmatprep.mubr.f32.mxu0 %v20246_v31  ;;  %v19527_v29 = vand.u32 4294901760, %v10518_v36 }
 0x520   : >> { %9384 = vmatprep.subr.mxu0 %v9148_v38  ;;  %v10031_v38 = vsel %vm263_vm3, %v10028_v1, 0 }
 0x521   : >> { %v19522_v3 = vand.u32 4294901760, %v10031_v38 }
 0x522   : >> { %9783 = vmatmul.mubr.f32.vlgmr.msra.gmra.mrb[18].mxu1 %v18428_v13 }
 0x523   : >> { %9792 = vmatpush1.msra.mxu1 %v19473_v53  ;;  %9855 = vmatprep.mubr.f32.mxu1 %v20246_v31 }
 0x524   : >> { %9868 = vmatprep.subr.mxu1 %v9632_v8  ;;  %v10599_v8 = vsub.f32 %v10518_v36, %v19527_v29 }
 0x526   : >> { %9375 = vmatmul.mubr.f32.vlgmr.msra.gmra.mrb[18].mxu0 %v18439_v17 }
 0x527   : >> { %9388 = vmatpush1.msra.mxu0 %v9154_v24  ;;  %9451 = vmatprep.mubr.f32.mxu0 %v20246_v31  ;;  %v19531_v24 = vsub.f32 %v10031_v38, %v19522_v3  ;;  %v10990_v38 = vmul.f32 %v19570_v28, %v19417_v41 }
 0x528   : >> { %9460 = vmatprep.subr.mxu0 %v19453_v40  ;;  %v19536_v40 = vand.u32 4294901760, %v10515_v48 }
 0x529   : >> { %v10122_v51 = vand.u32 4294901760, %v19531_v24  ;;  %v10992_v36 = vcombine.high %v10990_v38, %v10990_v38 }
 0x52a   : >> { %9859 = vmatmul.mubr.f32.vlgmr.msra.gmra.mrb[18].mxu1 %v18442_v20  ;;  %v19544_v23 = vsub.f32 %v10515_v48, %v19536_v40 }
 0x52b   : >> { %9872 = vmatpush1.msra.mxu1 %v9638_v55  ;;  %9935 = vmatprep.mubr.f32.mxu1 %v20246_v31  ;;  %v10117_v55 = vsub.f32 %v10115_v46, %v10116_v63  ;;  %v10995_v48 = vsel %vm263_vm3, %v10992_v36, 0 }
 0x52c   : >> { %9944 = vmatprep.subr.mxu1 %v19471_v30  ;;  %v10600_v30 = vand.u32 4294901760, %v10599_v8  ;;  %v10606_v32 = vand.u32 4294901760, %v19544_v23 }
 0x52d   : >> { %v10118_v0 = vand.u32 4294901760, %v10117_v55  ;;  %v10993_v55 = vsel %vm263_vm3, %v10990_v38, 0 }
 0x52e   : >> { %9453 = vmatmul.mubr.f32.vlgmr.msra.gmra.mrb[18].mxu0 %v18420_v9  ;;  %v10601_v1 = vsub.f32 %v10599_v8, %v10600_v30 }
 0x52f   : >> { %9462 = vmatpush1.msra.mxu0 %v19455_v15  ;;  %9525 = vmatprep.mubr.f32.mxu0 %v20246_v31  ;;  %v10123_v15 = vsub.f32 %v19531_v24, %v10122_v51 }
 0x530   : >> { %10037 = vmatprep.subr.mxu0 %v19516_v34  ;;  %v10602_v26 = vand.u32 4294901760, %v10601_v1 }
 0x531   : >> { %v10124_v52 = vand.u32 4294901760, %v10123_v15 }
 0x532   : >> { %9937 = vmatmul.mubr.f32.vlgmr.msra.gmra.mrb[18].mxu1 %v18422_v10 }
 0x533   : >> { %9946 = vmatpush1.msra.mxu1 %v19473_v53  ;;  %10009 = vmatprep.mubr.f32.mxu1 %v20246_v31  ;;  %v10607_v53 = vsub.f32 %v19544_v23, %v10606_v32 }
 0x534   : >> { %10521 = vmatprep.subr.mxu1 %v19527_v29 }
 0x535   : >> { %v10608_v7 = vand.u32 4294901760, %v10607_v53 }
 0x536   : >> { %9527 = vmatmul.mubr.f32.vlgmr.msra.gmra.mrb[18].mxu0 %v18420_v9 }
 0x537   : >> { %10039 = vmatpush1.msra.mxu0 %v19522_v3  ;;  %10102 = vmatprep.mubr.f32.mxu0 %v20246_v31 }
 0x538   : >> { %10119 = vmatprep.subr.mxu0 %v10118_v0  ;;  %v19603_v0 = vand.u32 4294901760, %v10993_v55 }
 0x53a   : >> { %10108 = vmatmul.mubr.f32.vlgmr.msra.gmra.mrb[20].mxu0 %v18632_v61  ;;  %10011 = vmatmul.mubr.f32.vlgmr.msra.gmra.mrb[18].mxu1 %v18422_v10  ;;  %v19614_v53 = vsub.f32 %v10993_v55, %v19603_v0  ;;  %v11954_v55 = vpop.permute.xlu1 %11953 }
 0x53b   : >> { %10125 = vmatpush1.msra.mxu0 %v10124_v52  ;;  %10188 = vmatprep.mubr.f32.mxu0 %v20246_v31 }
 0x53c   : >> { %10198 = vmatprep.subr.mxu0 %v10115_v46  ;;  %10523 = vmatpush1.msra.mxu1 %v19536_v40  ;;  %v11468_v46 = vpop.permute.xlu0 %11467 }
 0x53d   : >> { %10586 = vmatprep.mubr.f32.mxu1 %v20246_v31  ;;  %10603 = vmatprep.subr.mxu1 %v10602_v26  ;;  %v11472_v41 = vsel %vm2713_vm6, %v11470_v6, %v11468_v46 }
 0x53e   : >> { %10592 = vmatmul.mubr.f32.vlgmr.msra.gmra.mrb[20].mxu1 %v18636_v4 }
 0x53f   : >> { %10609 = vmatpush1.msra.mxu1 %v10608_v7  ;;  %10672 = vmatprep.mubr.f32.mxu1 %v20246_v31 }
 0x540   : >> { %10682 = vmatprep.subr.mxu1 %v10599_v8  ;;  %v11474_v8 = vmul.f32 %v11472_v41, %v18670_v19 }
 0x542   : >> { %10190 = vmatmul.mubr.f32.vlgmr.msra.gmra.mrb[20].mxu0 %v18562_v37 }
 0x543   : >> { %10201 = vmatpush1.msra.mxu0 %v19531_v24  ;;  %10264 = vmatprep.mubr.f32.mxu0 %v20246_v31  ;;  %v11471_v24 = vsel %vm2713_vm6, %v11468_v46, %v11470_v6 }
 0x544   : >> { %10274 = vmatprep.subr.mxu0 %v19516_v34 }
 0x546   : >> { %10674 = vmatmul.mubr.f32.vlgmr.msra.gmra.mrb[20].mxu1 %v18569_v39 }
 0x547   : >> { %10685 = vmatpush1.msra.mxu1 %v19544_v23  ;;  %10748 = vmatprep.mubr.f32.mxu1 %v20246_v31  ;;  %v19598_v23 = vld [vmem:[%s20190_s4 + $0x28] sm:$0xff] }
 0x548   : >> { %10758 = vmatprep.subr.mxu1 %v19527_v29  ;;  %v11473_v15 = vmul.f32 %v19598_v23, %v11471_v24 }
 0x54a   : >> { %10267 = vmatmul.mubr.f32.vlgmr.msra.gmra.mrb[20].mxu0 %v18586_v49 }
 0x54b   : >> { %10276 = vmatpush1.msra.mxu0 %v19522_v3  ;;  %10339 = vmatprep.mubr.f32.mxu0 %v20246_v31 }
 0x54c   : >> { %10352 = vmatprep.subr.mxu0 %v10116_v63  ;;  %v19591_v63 = vand.u32 4294901760, %v10995_v48 }
 0x54e   : >> { %10751 = vmatmul.mubr.f32.vlgmr.msra.gmra.mrb[20].mxu1 %v18592_v50  ;;  %v19606_v1 = vsub.f32 %v10995_v48, %v19591_v63 }
 0x54f   : >> { %10760 = vmatpush1.msra.mxu1 %v19536_v40  ;;  %10823 = vmatprep.mubr.f32.mxu1 %v20246_v31 }
 0x550   : >> { %10836 = vmatprep.subr.mxu1 %v10600_v30  ;;  %v11479_v30 = vsel %vm263_vm3, %v11474_v8, 0 }
 0x551   : >> { %v19609_v52 = vand.u32 4294901760, %v11479_v30 }
 0x552   : >> { %10343 = vmatmul.mubr.f32.vlgmr.msra.gmra.mrb[20].mxu0 %v18600_v42 }
 0x553   : >> { %10356 = vmatpush1.msra.mxu0 %v10122_v51  ;;  %10419 = vmatprep.mubr.f32.mxu0 %v20246_v31  ;;  %v11476_v51 = vsel %vm263_vm3, %v11473_v15, 0  ;;  %v19624_v7 = vsub.f32 %v11479_v30, %v19609_v52  ;;  %v11952_v15 = vpop.permute.xlu0 %11951 }
 0x554   : >> { %10428 = vmatprep.subr.mxu0 %v19516_v34  ;;  %v11077_v34 = vand.u32 4294901760, %v19606_v1  ;;  %v19619_v26 = vand.u32 4294901760, %v11476_v51  ;;  %v11956_v30 = vsel %vm3208_vm7, %v11954_v55, %v11952_v15 }
 0x555   : >> { %v11561_v6 = vand.u32 4294901760, %v19624_v7 }
 0x556   : >> { %10827 = vmatmul.mubr.f32.vlgmr.msra.gmra.mrb[20].mxu1 %v18607_v54  ;;  %v11078_v38 = vsub.f32 %v19606_v1, %v11077_v34 }
 0x557   : >> { %10840 = vmatpush1.msra.mxu1 %v10606_v32  ;;  %10903 = vmatprep.mubr.f32.mxu1 %v20246_v31  ;;  %v11083_v32 = vand.u32 4294901760, %v19614_v53 }
 0x558   : >> { %10912 = vmatprep.subr.mxu1 %v19527_v29  ;;  %v19630_v29 = vsub.f32 %v11476_v51, %v19619_v26  ;;  %v11079_v36 = vand.u32 4294901760, %v11078_v38  ;;  %v11958_v51 = vmul.f32 %v11956_v30, %v18810_v45  ;;  %v12436_v38 = vpop.permute.xlu0 %12435 }
 0x55a   : >> { %10421 = vmatmul.mubr.f32.vlgmr.msra.gmra.mrb[20].mxu0 %v18562_v37  ;;  %v11567_v46 = vand.u32 4294901760, %v19630_v29 }
 0x55b   : >> { %10430 = vmatpush1.msra.mxu0 %v19522_v3  ;;  %10493 = vmatprep.mubr.f32.mxu0 %v20246_v31  ;;  %v11084_v3 = vsub.f32 %v19614_v53, %v11083_v32 }
 0x55c   : >> { %10998 = vmatprep.subr.mxu0 %v19591_v63  ;;  %v11568_v48 = vsub.f32 %v19630_v29, %v11567_v46 }
 0x55d   : >> { %v11085_v41 = vand.u32 4294901760, %v11084_v3  ;;  %v19676_v3 = vld [vmem:[%s20190_s4 + $0x30] sm:$0xff] }
 0x55e   : >> { %10905 = vmatmul.mubr.f32.vlgmr.msra.gmra.mrb[20].mxu1 %v18569_v39  ;;  %v11569_v8 = vand.u32 4294901760, %v11568_v48 }
 0x55f   : >> { %10914 = vmatpush1.msra.mxu1 %v19536_v40  ;;  %10977 = vmatprep.mubr.f32.mxu1 %v20246_v31  ;;  %v11562_v40 = vsub.f32 %v19624_v7, %v11561_v6 }
 0x560   : >> { %11482 = vmatprep.subr.mxu1 %v19609_v52 }
 0x561   : >> { %v11563_v24 = vand.u32 4294901760, %v11562_v40 }
 0x562   : >> { %10495 = vmatmul.mubr.f32.vlgmr.msra.gmra.mrb[20].mxu0 %v18562_v37 }
 0x563   : >> { %11000 = vmatpush1.msra.mxu0 %v19603_v0  ;;  %11063 = vmatprep.mubr.f32.mxu0 %v20246_v31 }
 0x564   : >> { %11080 = vmatprep.subr.mxu0 %v11079_v36 }
 0x566   : >> { %11069 = vmatmul.mubr.f32.vlgmr.msra.gmra.mrb[22].mxu0 %v18775_v25  ;;  %10979 = vmatmul.mubr.f32.vlgmr.msra.gmra.mrb[20].mxu1 %v18569_v39 }
 0x567   : >> { %11086 = vmatpush1.msra.mxu0 %v11085_v41  ;;  %11149 = vmatprep.mubr.f32.mxu0 %v20246_v31  ;;  %v11963_v41 = vsel %vm263_vm3, %v11958_v51, 0 }
 0x568   : >> { %11159 = vmatprep.subr.mxu0 %v19606_v1  ;;  %11484 = vmatpush1.msra.mxu1 %v19619_v26  ;;  %v11955_v1 = vsel %vm3208_vm7, %v11952_v15, %v11954_v55  ;;  %v19698_v55 = vld [vmem:[%s20190_s4 + $0x38] sm:$0xff] }
 0x569   : >> { %11547 = vmatprep.mubr.f32.mxu1 %v20246_v31  ;;  %11564 = vmatprep.subr.mxu1 %v11563_v24  ;;  %v11957_v36 = vmul.f32 %v19676_v3, %v11955_v1 }
 0x56a   : >> { %11553 = vmatmul.mubr.f32.vlgmr.msra.gmra.mrb[22].mxu1 %v18779_v27 }
 0x56b   : >> { %11570 = vmatpush1.msra.mxu1 %v11569_v8  ;;  %11633 = vmatprep.mubr.f32.mxu1 %v20246_v31  ;;  %v11960_v24 = vsel %vm263_vm3, %v11957_v36, 0  ;;  %v19689_v8 = vand.u32 4294901760, %v11963_v41 }
 0x56c   : >> { %11643 = vmatprep.subr.mxu1 %v19624_v7  ;;  %v12438_v7 = vpop.permute.xlu1 %12437  ;;  %v19702_v30 = vand.u32 4294901760, %v11960_v24 }
 0x56d   : >> { %v12440_v40 = vsel %vm3703_vm8, %v12438_v7, %v12436_v38  ;;  %v12439_v48 = vsel %vm3703_vm8, %v12436_v38, %v12438_v7  ;;  %v19706_v1 = vsub.f32 %v11963_v41, %v19689_v8 }
 0x56e   : >> { %11151 = vmatmul.mubr.f32.vlgmr.msra.gmra.mrb[22].mxu0 %v18705_v47  ;;  %v12441_v15 = vmul.f32 %v19698_v55, %v12439_v48  ;;  %v19713_v51 = vsub.f32 %v11960_v24, %v19702_v30 }
 0x56f   : >> { %11162 = vmatpush1.msra.mxu0 %v19614_v53  ;;  %11225 = vmatprep.mubr.f32.mxu0 %v20246_v31 }
 0x570   : >> { %11235 = vmatprep.subr.mxu0 %v19591_v63  ;;  %v12444_v53 = vsel %vm263_vm3, %v12441_v15, 0 }
 0x571   : >> { %v19721_v7 = vand.u32 4294901760, %v12444_v53 }
 0x572   : >> { %11635 = vmatmul.mubr.f32.vlgmr.msra.gmra.mrb[22].mxu1 %v18712_v43 }
 0x573   : >> { %11646 = vmatpush1.msra.mxu1 %v19630_v29  ;;  %11709 = vmatprep.mubr.f32.mxu1 %v20246_v31  ;;  %v12051_v29 = vand.u32 4294901760, %v19713_v51 }
 0x574   : >> { %11719 = vmatprep.subr.mxu1 %v19609_v52 }
 0x576   : >> { %11228 = vmatmul.mubr.f32.vlgmr.msra.gmra.mrb[22].mxu0 %v18729_v58 }
 0x577   : >> { %11237 = vmatpush1.msra.mxu0 %v19603_v0  ;;  %11300 = vmatprep.mubr.f32.mxu0 %v20246_v31 }
 0x578   : >> { %11313 = vmatprep.subr.mxu0 %v11077_v34  ;;  %v12442_v34 = vmul.f32 %v12440_v40, %v18818_v16 }
 0x57a   : >> { %11712 = vmatmul.mubr.f32.vlgmr.msra.gmra.mrb[22].mxu1 %v18735_v59 }
 0x57b   : >> { %11721 = vmatpush1.msra.mxu1 %v19619_v26  ;;  %11784 = vmatprep.mubr.f32.mxu1 %v20246_v31 }
 0x57c   : >> { %11797 = vmatprep.subr.mxu1 %v11561_v6  ;;  %v12447_v6 = vsel %vm263_vm3, %v12442_v34, 0 }
 0x57e   : >> { %11304 = vmatmul.mubr.f32.vlgmr.msra.gmra.mrb[22].mxu0 %v20259_v33 }
 0x57f   : >> { %11317 = vmatpush1.msra.mxu0 %v11083_v32  ;;  %11380 = vmatprep.mubr.f32.mxu0 %v20246_v31  ;;  %v19709_v32 = vand.u32 4294901760, %v12447_v6 }
 0x580   : >> { %11389 = vmatprep.subr.mxu0 %v19591_v63  ;;  %v12045_v63 = vand.u32 4294901760, %v19706_v1 }
 0x581   : >> { %v12528_v38 = vsub.f32 %v12447_v6, %v19709_v32  ;;  %v20273_v6 = vld [vmem:[#allocation7_spill] sm:$0xff] }
 0x582   : >> { %11788 = vmatmul.mubr.f32.vlgmr.msra.gmra.mrb[22].mxu1 %v20261_v56 }
 0x583   : >> { %11801 = vmatpush1.msra.mxu1 %v11567_v46  ;;  %11864 = vmatprep.mubr.f32.mxu1 %v20246_v31  ;;  %v12046_v46 = vsub.f32 %v19706_v1, %v12045_v63  ;;  %v12529_v36 = vand.u32 4294901760, %v12528_v38 }
 0x584   : >> { %11873 = vmatprep.subr.mxu1 %v19609_v52  ;;  %v19730_v52 = vsub.f32 %v12444_v53, %v19721_v7  ;;  %v12920_v53 = vpop.permute.xlu0 %12919 }
 0x585   : >> { %v12047_v40 = vand.u32 4294901760, %v12046_v46  ;;  %v12530_v48 = vsub.f32 %v12528_v38, %v12529_v36 }
 0x586   : >> { %11382 = vmatmul.mubr.f32.vlgmr.msra.gmra.mrb[22].mxu0 %v18705_v47  ;;  %v12535_v41 = vand.u32 4294901760, %v19730_v52 }
 0x587   : >> { %11391 = vmatpush1.msra.mxu0 %v19603_v0  ;;  %11454 = vmatprep.mubr.f32.mxu0 %v20246_v31  ;;  %v12052_v0 = vsub.f32 %v19713_v51, %v12051_v29  ;;  %v12531_v24 = vand.u32 4294901760, %v12530_v48 }
 0x588   : >> { %11966 = vmatprep.subr.mxu0 %v19689_v8 }
 0x589   : >> { %v12053_v34 = vand.u32 4294901760, %v12052_v0  ;;  %v20274_v0 = vld [vmem:[#allocation8_spill] sm:$0xff] }
 0x58a   : >> { %11866 = vmatmul.mubr.f32.vlgmr.msra.gmra.mrb[22].mxu1 %v18712_v43 }
 0x58b   : >> { %11875 = vmatpush1.msra.mxu1 %v19619_v26  ;;  %11938 = vmatprep.mubr.f32.mxu1 %v20246_v31  ;;  %v12536_v26 = vsub.f32 %v19730_v52, %v12535_v41 }
 0x58c   : >> { %12450 = vmatprep.subr.mxu1 %v19709_v32 }
 0x58d   : >> { %v12537_v15 = vand.u32 4294901760, %v12536_v26 }
 0x58e   : >> { %11456 = vmatmul.mubr.f32.vlgmr.msra.gmra.mrb[22].mxu0 %v18705_v47 }
 0x58f   : >> { %11968 = vmatpush1.msra.mxu0 %v19702_v30  ;;  %12031 = vmatprep.mubr.f32.mxu0 %v20246_v31 }
 0x590   : >> { %12048 = vmatprep.subr.mxu0 %v12047_v40  ;;  %v20276_v40 = vld [vmem:[#allocation15_spill] sm:$0xff] }
 0x592   : >> { %12037 = vmatmul.mubr.f32.vlgmr.msra.gmra.mrb[24].mxu0 %v18925_v62  ;;  %11940 = vmatmul.mubr.f32.vlgmr.msra.gmra.mrb[22].mxu1 %v18712_v43 }
 0x593   : >> { %12054 = vmatpush1.msra.mxu0 %v12053_v34  ;;  %12117 = vmatprep.mubr.f32.mxu0 %v20246_v31 }
 0x594   : >> { %12127 = vmatprep.subr.mxu0 %v19706_v1  ;;  %12452 = vmatpush1.msra.mxu1 %v19721_v7  ;;  %v12922_v1 = vpop.permute.xlu1 %12921 }
 0x595   : >> { %12515 = vmatprep.mubr.f32.mxu1 %v20246_v31  ;;  %12532 = vmatprep.subr.mxu1 %v12531_v24  ;;  %v12924_v46 = vsel %vm4198_vm9, %v12922_v1, %v12920_v53  ;;  %v20278_v24 = vld [vmem:[#allocation10_spill] sm:$0xff] }
 0x596   : >> { %12521 = vmatmul.mubr.f32.vlgmr.msra.gmra.mrb[24].mxu1 %v18929_v60  ;;  %v12926_v48 = vmul.f32 %v12924_v46, %v20276_v40 }
 0x597   : >> { %12538 = vmatpush1.msra.mxu1 %v12537_v15  ;;  %12601 = vmatprep.mubr.f32.mxu1 %v20246_v31 }
 0x598   : >> { %12611 = vmatprep.subr.mxu1 %v12528_v38  ;;  %v20275_v38 = vld [vmem:[#allocation9_spill] sm:$0xff]  ;;  %v12931_v26 = vsel %vm263_vm3, %v12926_v48, 0 }
 0x59a   : >> { %12119 = vmatmul.mubr.f32.vlgmr.msra.gmra.mrb[24].mxu0 %v20273_v6 }
 0x59b   : >> { %12130 = vmatpush1.msra.mxu0 %v19713_v51  ;;  %12193 = vmatprep.mubr.f32.mxu0 %v20246_v31  ;;  %v12923_v51 = vsel %vm4198_vm9, %v12920_v53, %v12922_v1  ;;  %v12933_v1 = vand.u32 4294901760, %v12931_v26 }
 0x59c   : >> { %12203 = vmatprep.subr.mxu0 %v19689_v8 }
 0x59d   : >> { %v13012_v46 = vsub.f32 %v12931_v26, %v12933_v1  ;;  %v20283_v26 = vld [vmem:[#allocation17_spill] sm:$0xff] }
 0x59e   : >> { %12603 = vmatmul.mubr.f32.vlgmr.msra.gmra.mrb[24].mxu1 %v20274_v0 }
 0x59f   : >> { %12614 = vmatpush1.msra.mxu1 %v19730_v52  ;;  %12677 = vmatprep.mubr.f32.mxu1 %v20246_v31  ;;  %v19769_v52 = vld [vmem:[%s20190_s4 + $0x40] sm:$0xff] }
 0x5a0   : >> { %12687 = vmatprep.subr.mxu1 %v19709_v32  ;;  %20277 = vst [vmem:[#allocation4_spill] sm:$0xff] %v19769_v52  ;;  %v12925_v34 = vmul.f32 %v19769_v52, %v12923_v51  ;;  %v20280_v51 = vld [vmem:[#allocation12_spill] sm:$0xff] }
 0x5a2   : >> { %12196 = vmatmul.mubr.f32.vlgmr.msra.gmra.mrb[24].mxu0 %v20275_v38  ;;  %v12928_v15 = vsel %vm263_vm3, %v12925_v34, 0  ;;  %v20281_v34 = vld [vmem:[#allocation19_spill] sm:$0xff] }
 0x5a3   : >> { %12205 = vmatpush1.msra.mxu0 %v19702_v30  ;;  %12268 = vmatprep.mubr.f32.mxu0 %v20246_v31  ;;  %v12935_v53 = vand.u32 4294901760, %v12928_v15 }
 0x5a4   : >> { %12281 = vmatprep.subr.mxu0 %v12045_v63  ;;  %v20279_v63 = vld [vmem:[#allocation11_spill] sm:$0xff] }
 0x5a5   : >> { %v13018_v48 = vsub.f32 %v12928_v15, %v12935_v53  ;;  %v20284_v15 = vld [vmem:[#allocation18_spill] sm:$0xff] }
 0x5a6   : >> { %12680 = vmatmul.mubr.f32.vlgmr.msra.gmra.mrb[24].mxu1 %v20278_v24 }
 0x5a7   : >> { %12689 = vmatpush1.msra.mxu1 %v19721_v7  ;;  %12752 = vmatprep.mubr.f32.mxu1 %v20246_v31 }
 0x5a8   : >> { %12765 = vmatprep.subr.mxu1 %v12529_v36  ;;  %v13013_v36 = vand.u32 4294901760, %v13012_v46 }
 0x5aa   : >> { %12272 = vmatmul.mubr.f32.vlgmr.msra.gmra.mrb[24].mxu0 %v20279_v63 }
 0x5ab   : >> { %12285 = vmatpush1.msra.mxu0 %v12051_v29  ;;  %12348 = vmatprep.mubr.f32.mxu0 %v20246_v31  ;;  %v13019_v29 = vand.u32 4294901760, %v13018_v48 }
 0x5ac   : >> { %12357 = vmatprep.subr.mxu0 %v19689_v8  ;;  %v13014_v8 = vsub.f32 %v13012_v46, %v13013_v36 }
 0x5ae   : >> { %12756 = vmatmul.mubr.f32.vlgmr.msra.gmra.mrb[24].mxu1 %v20280_v51 }
 0x5af   : >> { %12769 = vmatpush1.msra.mxu1 %v12535_v41  ;;  %12832 = vmatprep.mubr.f32.mxu1 %v20246_v31  ;;  %v13020_v41 = vsub.f32 %v13018_v48, %v13019_v29 }
 0x5b0   : >> { %12841 = vmatprep.subr.mxu1 %v19709_v32  ;;  %v13015_v32 = vand.u32 4294901760, %v13014_v8 }
 0x5b2   : >> { %12350 = vmatmul.mubr.f32.vlgmr.msra.gmra.mrb[24].mxu0 %v20273_v6 }
 0x5b3   : >> { %12359 = vmatpush1.msra.mxu0 %v19702_v30  ;;  %12422 = vmatprep.mubr.f32.mxu0 %v20246_v31  ;;  %v13021_v30 = vand.u32 4294901760, %v13020_v41 }
 0x5b4   : >> { %12934 = vmatprep.subr.mxu0 %v12933_v1 }
 0x5b6   : >> { %12834 = vmatmul.mubr.f32.vlgmr.msra.gmra.mrb[24].mxu1 %v20274_v0 }
 0x5b7   : >> { %12843 = vmatpush1.msra.mxu1 %v19721_v7  ;;  %12906 = vmatprep.mubr.f32.mxu1 %v20246_v31  ;;  %v20282_v7 = vld [vmem:[#allocation16_spill] sm:$0xff] }
 0x5ba   : >> { %12424 = vmatmul.mubr.f32.vlgmr.msra.gmra.mrb[24].mxu0 %v20273_v6 }
 0x5bb   : >> { %12936 = vmatpush1.msra.mxu0 %v12935_v53  ;;  %12999 = vmatprep.mubr.f32.mxu0 %v20246_v31 }
 0x5bc   : >> { %13016 = vmatprep.subr.mxu0 %v13015_v32 }
 0x5be   : >> { %13005 = vmatmul.mubr.f32.vlgmr.msra.gmra.mrb[26].mxu0 %v20281_v34  ;;  %12908 = vmatmul.mubr.f32.vlgmr.msra.gmra.mrb[24].mxu1 %v20274_v0 }
 0x5bf   : >> { %13022 = vmatpush1.msra.mxu0 %v13021_v30  ;;  %13085 = vmatprep.mubr.f32.mxu0 %v20246_v31 }
 0x5c0   : >> { %13095 = vmatprep.subr.mxu0 %v13012_v46  ;;  %13493 = vmatprep.mubr.f32.mxu1 %v20246_v31 }
 0x5c6   : >> { %13087 = vmatmul.mubr.f32.vlgmr.msra.gmra.mrb[26].mxu0 %v20282_v7 }
 0x5c7   : >> { %13098 = vmatpush1.msra.mxu0 %v13018_v48  ;;  %13161 = vmatprep.mubr.f32.mxu0 %v20246_v31 }
 0x5c8   : >> { %13171 = vmatprep.subr.mxu0 %v12933_v1 }
 0x5ce   : >> { %13164 = vmatmul.mubr.f32.vlgmr.msra.gmra.mrb[26].mxu0 %v20283_v26 }
 0x5cf   : >> { %13173 = vmatpush1.msra.mxu0 %v12935_v53  ;;  %13236 = vmatprep.mubr.f32.mxu0 %v20246_v31 }
 0x5d0   : >> { %13249 = vmatprep.subr.mxu0 %v13013_v36 }
 0x5d6   : >> { %13240 = vmatmul.mubr.f32.vlgmr.msra.gmra.mrb[26].mxu0 %v20284_v15 }
 0x5d7   : >> { %13253 = vmatpush1.msra.mxu0 %v13019_v29  ;;  %13316 = vmatprep.mubr.f32.mxu0 %v20246_v31 }
 0x5d8   : >> { %13325 = vmatprep.subr.mxu0 %v12933_v1 }
 0x5de   : >> { %13318 = vmatmul.mubr.f32.vlgmr.msra.gmra.mrb[26].mxu0 %v20282_v7 }
 0x5df   : >> { %13327 = vmatpush1.msra.mxu0 %v12935_v53  ;;  %13390 = vmatprep.mubr.f32.mxu0 %v20246_v31 }
 0x5e6   : >> { %13392 = vmatmul.mubr.f32.vlgmr.msra.gmra.mrb[26].mxu0 %v20282_v7 }
 0x5e7   : >> { %13977 = vmatprep.mubr.f32.mxu0 %v20246_v31 }
 0x609   : >> { %v9528_v46 = vpop.f32.mrb[18].mxu0 }
 0x60a   : >> { %v9530_v48 = vpop.f32.mrb[19].mxu0 }
 0x60b   : >> { %v9535_v8 = vcombine.low %v9528_v46, %v9530_v48 }
 0x60d   : >> { %v10012_v41 = vpop.f32.mrb[18].mxu1  ;;  %v9537_v32 = vadd.f32 %v9535_v8, %v19410_v57 }
 0x60e   : >> { %v10014_v36 = vpop.f32.mrb[19].mxu1 }
 0x60f   : >> { %v10019_v29 = vcombine.low %v10012_v41, %v10014_v36 }
 0x611   : >> { %v10021_v30 = vadd.f32 %v10019_v29, %v9537_v32 }
 0x635   : >> { %v10496_v15 = vpop.f32.mrb[20].mxu0 }
 0x636   : >> { %v10498_v1 = vpop.f32.mrb[21].mxu0 }
 0x637   : >> { %v10503_v26 = vcombine.low %v10496_v15, %v10498_v1 }
 0x639   : >> { %v10505_v34 = vadd.f32 %v10503_v26, %v10021_v30  ;;  %v10980_v53 = vpop.f32.mrb[20].mxu1 }
 0x63a   : >> { %v10982_v51 = vpop.f32.mrb[21].mxu1 }
 0x63b   : >> { %v10987_v63 = vcombine.low %v10980_v53, %v10982_v51 }
 0x63d   : >> { %v10989_v24 = vadd.f32 %v10987_v63, %v10505_v34 }
 0x661   : >> { %v11457_v7 = vpop.f32.mrb[22].mxu0 }
 0x662   : >> { %v11459_v52 = vpop.f32.mrb[23].mxu0 }
 0x663   : >> { %v11464_v40 = vcombine.low %v11457_v7, %v11459_v52  ;;  %v17763_v52 = vmul.f32 2.0, %v19413_v18 }
 0x665   : >> { %v11466_v38 = vadd.f32 %v11464_v40, %v10989_v24  ;;  %v11941_v0 = vpop.f32.mrb[22].mxu1  ;;  %v20285_v24 = vld [vmem:[#allocation20_spill] sm:$0xff] }
 0x666   : >> { %v11943_v46 = vpop.f32.mrb[23].mxu1  ;;  %v17764_v34 = vadd.f32 %v20285_v24, %v17763_v52 }
 0x667   : >> { %v11948_v48 = vcombine.low %v11941_v0, %v11943_v46 }
 0x669   : >> { %v11950_v6 = vadd.f32 %v11948_v48, %v11466_v38  ;;  %v18281_v48 = vld [vmem:[%s20190_s4] sm:$0xff] }
 0x68d   : >> { %v12425_v60 = vpop.f32.mrb[24].mxu0 }
 0x68e   : >> { %v12427_v57 = vpop.f32.mrb[25].mxu0 }
 0x68f   : >> { %v12432_v8 = vcombine.low %v12425_v60, %v12427_v57 }
 0x691   : >> { %v12434_v41 = vadd.f32 %v12432_v8, %v11950_v6  ;;  %v12909_v36 = vpop.f32.mrb[24].mxu1 }
 0x692   : >> { %v12911_v32 = vpop.f32.mrb[25].mxu1 }
 0x693   : >> { %v12916_v15 = vcombine.low %v12909_v36, %v12911_v32 }
 0x695   : >> { %v12918_v26 = vadd.f32 %v12916_v15, %v12434_v41 }
 0x6b9   : >> { %v13393_v29 = vpop.f32.mrb[26].mxu0 }
 0x6ba   : >> { %v13395_v30 = vpop.f32.mrb[27].mxu0 }
 0x6bb   : >> { %v13400_v51 = vcombine.low %v13393_v29, %v13395_v30 }
 0x6bd   : >> { %v13402_v63 = vadd.f32 %v13400_v51, %v12918_v26 }
 0x6bf   : >> { %18268 = vtanh.f32 %v13402_v63 }
 0x6c9   : >> { %v18269_v40 = vpop.eup %18268 }
 0x6ca   : >> { %v13405_v0 = vmul.f32 0.125, %v18269_v40  ;;  %v17765_v38 = vmul.f32 2.0, %v18269_v40 }
 0x6cc   : >> { %v19809_v7 = vadd.f32 %v18303_v2, %v13405_v0  ;;  %v19811_v60 = vadd.f32 %v17765_v38, %v17764_v34 }
 0x6ce   : >> { %13413 = vrot.lane.b32.xlu0 %v19809_v7, %s18310_s7  ;;  %v13411_v6 = vcombine.high %v19809_v7, %v19809_v7 }
 0x6d0   : >> { %13415 = vrot.lane.b32.xlu1 %v13411_v6, %s18310_s7 }
 0x6d2   : >> { %13897 = vrot.lane.b32.xlu0 %v19809_v7, %s18311_s8 }
 0x6d4   : >> { %13899 = vrot.lane.b32.xlu1 %v13411_v6, %s18311_s8 }
 0x6d6   : >> { %14381 = vrot.lane.b32.xlu0 %v19809_v7, %s18312_s9 }
 0x6d8   : >> { %14383 = vrot.lane.b32.xlu1 %v13411_v6, %s18312_s9 }
 0x6da   : >> { %14865 = vrot.lane.b32.xlu0 %v19809_v7, %s18313_s10 }
 0x6dc   : >> { %14867 = vrot.lane.b32.xlu1 %v13411_v6, %s18313_s10 }
 0x6de   : >> { %15826 = vrot.lane.b32.xlu0 %v19809_v7, %s18314_s11 }
 0x6e0   : >> { %15828 = vrot.lane.b32.xlu1 %v13411_v6, %s18314_s11 }
 0x6e2   : >> { %16310 = vrot.lane.b32.xlu0 %v19809_v7, %s18315_s12 }
 0x6e4   : >> { %16312 = vrot.lane.b32.xlu1 %v13411_v6, %s18315_s12 }
 0x6e6   : >> { %16794 = vrot.lane.b32.xlu0 %v19809_v7, %s18316_s13 }
 0x6e8   : >> { %16796 = vrot.lane.b32.xlu1 %v13411_v6, %s18316_s13 }
 0x6ea   : >> { %17278 = vrot.lane.b32.xlu0 %v19809_v7, %s18317_s14 }
 0x6ec   : >> { %17280 = vrot.lane.b32.xlu1 %v13411_v6, %s18317_s14 }
 0x740   : >> { %v13414_v18 = vpop.permute.xlu0 %13413 }
 0x742   : >> { %v13416_v1 = vpop.permute.xlu1 %13415 }
 0x743   : >> { %v13417_v53 = vsel %vm249_vm1, %v13414_v18, %v13416_v1  ;;  %v13418_v46 = vsel %vm249_vm1, %v13416_v1, %v13414_v18 }
 0x744   : >> { %v13419_v57 = vmul.f32 %v18281_v48, %v13418_v46  ;;  %v13420_v8 = vmul.f32 %v13417_v53, %v18445_v21  ;;  %v13898_v32 = vpop.permute.xlu0 %13897  ;;  %v18282_v21 = vld [vmem:[%s20190_s4 + $0x8] sm:$0xff] }
 0x746   : >> { %v13422_v41 = vsel %vm263_vm3, %v13419_v57, 0  ;;  %v13425_v36 = vsel %vm263_vm3, %v13420_v8, 0  ;;  %v13900_v15 = vpop.permute.xlu1 %13899 }
 0x747   : >> { %v19849_v26 = vand.u32 4294901760, %v13425_v36  ;;  %v19851_v29 = vand.u32 4294901760, %v13422_v41  ;;  %v13901_v30 = vsel %vm744_vm2, %v13898_v32, %v13900_v15  ;;  %v13902_v51 = vsel %vm744_vm2, %v13900_v15, %v13898_v32 }
 0x748   : >> { %v13903_v63 = vmul.f32 %v18282_v21, %v13902_v51  ;;  %v13904_v52 = vmul.f32 %v13901_v30, %v18448_v22  ;;  %v14382_v51 = vpop.permute.xlu0 %14381 }
 0x749   : >> { %v13506_v40 = vsub.f32 %v13425_v36, %v19849_v26  ;;  %v19863_v24 = vsub.f32 %v13422_v41, %v19851_v29  ;;  %13428 = vmatprep.subr.mxu1 %v19849_v26 }
 0x74a   : >> { %v13906_v34 = vsel %vm263_vm3, %v13903_v63, 0  ;;  %v13909_v0 = vsel %vm263_vm3, %v13904_v52, 0  ;;  %13430 = vmatpush1.msra.mxu1 %v19851_v29  ;;  %v14384_v15 = vpop.permute.xlu1 %14383 }
 0x74b   : >> { %v19869_v38 = vand.u32 4294901760, %v13909_v0  ;;  %v19871_v6 = vand.u32 4294901760, %v13906_v34  ;;  %13499 = vmatmul.mubr.f32.vlgmr.msra.gmra.mrb[26].mxu1 %v18464_v35  ;;  %v13507_v22 = vand.u32 4294901760, %v13506_v40  ;;  %v13513_v18 = vand.u32 4294901760, %v19863_v24 }
 0x74c   : >> { %13579 = vmatprep.mubr.f32.mxu1 %v20246_v31  ;;  %v14385_v21 = vsel %vm1239_vm4, %v14382_v51, %v14384_v15  ;;  %v14386_v63 = vsel %vm1239_vm4, %v14384_v15, %v14382_v51 }
 0x74d   : >> { %v13990_v1 = vsub.f32 %v13909_v0, %v19869_v38  ;;  %v19878_v53 = vsub.f32 %v13906_v34, %v19871_v6  ;;  %13912 = vmatprep.subr.mxu0 %v19869_v38  ;;  %v13508_v46 = vsub.f32 %v13506_v40, %v13507_v22  ;;  %v13514_v48 = vsub.f32 %v19863_v24, %v13513_v18  ;;  %v18283_v34 = vld [vmem:[%s20190_s4 + $0x10] sm:$0xff] }
 0x74e   : >> { %13914 = vmatpush1.msra.mxu0 %v19871_v6  ;;  %v14388_v52 = vmul.f32 %v14385_v21, %v18522_v5  ;;  %v14387_v0 = vmul.f32 %v18283_v34, %v14386_v63 }
 0x74f   : >> { %13983 = vmatmul.mubr.f32.vlgmr.msra.gmra.mrb[28].mxu0 %v18478_v44  ;;  %v13509_v35 = vand.u32 4294901760, %v13508_v46  ;;  %v13515_v57 = vand.u32 4294901760, %v13514_v48  ;;  %v13991_v8 = vand.u32 4294901760, %v13990_v1  ;;  %v13997_v41 = vand.u32 4294901760, %v19878_v53 }
 0x750   : >> { %14063 = vmatprep.mubr.f32.mxu0 %v20246_v31 }
 0x751   : >> { %13510 = vmatprep.subr.mxu1 %v13509_v35  ;;  %v13992_v36 = vsub.f32 %v13990_v1, %v13991_v8  ;;  %v13998_v32 = vsub.f32 %v19878_v53, %v13997_v41 }
 0x752   : >> { %13516 = vmatpush1.msra.mxu1 %v13515_v57 }
 0x753   : >> { %13581 = vmatmul.mubr.f32.vlgmr.msra.gmra.mrb[26].mxu1 %v18420_v9  ;;  %13589 = vmatprep.subr.mxu1 %v13506_v40  ;;  %v13993_v44 = vand.u32 4294901760, %v13992_v36  ;;  %v13999_v30 = vand.u32 4294901760, %v13998_v32  ;;  %v14868_v40 = vpop.permute.xlu1 %14867 }
 0x754   : >> { %13592 = vmatpush1.msra.mxu1 %v19863_v24  ;;  %13655 = vmatprep.mubr.f32.mxu1 %v20246_v31  ;;  %v14866_v24 = vpop.permute.xlu0 %14865 }
 0x755   : >> { %13665 = vmatprep.subr.mxu1 %v19849_v26  ;;  %13994 = vmatprep.subr.mxu0 %v13993_v44  ;;  %v14870_v5 = vsel %vm1734_vm5, %v14868_v40, %v14866_v24 }
 0x756   : >> { %14000 = vmatpush1.msra.mxu0 %v13999_v30 }
 0x757   : >> { %14065 = vmatmul.mubr.f32.vlgmr.msra.gmra.mrb[28].mxu0 %v18422_v10  ;;  %14073 = vmatprep.subr.mxu0 %v13990_v1  ;;  %v14393_v1 = vsel %vm263_vm3, %v14388_v52, 0 }
 0x758   : >> { %14076 = vmatpush1.msra.mxu0 %v19878_v53  ;;  %14139 = vmatprep.mubr.f32.mxu0 %v20246_v31  ;;  %v19916_v46 = vand.u32 4294901760, %v14393_v1  ;;  %v15827_v52 = vpop.permute.xlu0 %15826 }
 0x759   : >> { %14149 = vmatprep.subr.mxu0 %v19869_v38 }
 0x75a   : >> { %v14474_v57 = vsub.f32 %v14393_v1, %v19916_v46 }
 0x75b   : >> { %13658 = vmatmul.mubr.f32.vlgmr.msra.gmra.mrb[26].mxu1 %v18425_v12  ;;  %v14869_v12 = vsel %vm1734_vm5, %v14866_v24, %v14868_v40 }
 0x75c   : >> { %13667 = vmatpush1.msra.mxu1 %v19851_v29  ;;  %13730 = vmatprep.mubr.f32.mxu1 %v20246_v31  ;;  %v14872_v53 = vmul.f32 %v14869_v12, %v18529_v11 }
 0x75d   : >> { %13743 = vmatprep.subr.mxu1 %v13507_v22  ;;  %v14390_v22 = vsel %vm263_vm3, %v14387_v0, 0 }
 0x75e   : >> { %v19924_v11 = vand.u32 4294901760, %v14390_v22  ;;  %v14877_v35 = vsel %vm263_vm3, %v14872_v53, 0 }
 0x75f   : >> { %14142 = vmatmul.mubr.f32.vlgmr.msra.gmra.mrb[28].mxu0 %v18428_v13  ;;  %v18284_v13 = vld [vmem:[%s20190_s4 + $0x18] sm:$0xff]  ;;  %v19929_v36 = vand.u32 4294901760, %v14877_v35 }
 0x760   : >> { %14151 = vmatpush1.msra.mxu0 %v19871_v6  ;;  %14214 = vmatprep.mubr.f32.mxu0 %v20246_v31  ;;  %v14871_v48 = vmul.f32 %v18284_v13, %v14870_v5 }
 0x761   : >> { %14227 = vmatprep.subr.mxu0 %v13991_v8  ;;  %v14958_v32 = vsub.f32 %v14877_v35, %v19929_v36 }
 0x762   : >> { %v14874_v8 = vsel %vm263_vm3, %v14871_v48, 0 }
 0x763   : >> { %13734 = vmatmul.mubr.f32.vlgmr.msra.gmra.mrb[26].mxu1 %v18439_v17  ;;  %v19933_v17 = vsub.f32 %v14390_v22, %v19924_v11 }
 0x764   : >> { %13747 = vmatpush1.msra.mxu1 %v13513_v18  ;;  %13810 = vmatprep.mubr.f32.mxu1 %v20246_v31  ;;  %v19938_v18 = vand.u32 4294901760, %v14874_v8 }
 0x765   : >> { %13819 = vmatprep.subr.mxu1 %v19849_v26  ;;  %v14475_v26 = vand.u32 4294901760, %v14474_v57 }
 0x766   : >> { %v19946_v44 = vsub.f32 %v14874_v8, %v19938_v18 }
 0x767   : >> { %14218 = vmatmul.mubr.f32.vlgmr.msra.gmra.mrb[28].mxu0 %v18442_v20  ;;  %v14481_v20 = vand.u32 4294901760, %v19933_v17 }
 0x768   : >> { %14231 = vmatpush1.msra.mxu0 %v13997_v41  ;;  %14294 = vmatprep.mubr.f32.mxu0 %v20246_v31  ;;  %v14476_v41 = vsub.f32 %v14474_v57, %v14475_v26  ;;  %v14965_v30 = vand.u32 4294901760, %v19946_v44 }
 0x769   : >> { %14303 = vmatprep.subr.mxu0 %v19869_v38  ;;  %v14959_v38 = vand.u32 4294901760, %v14958_v32 }
 0x76a   : >> { %v14477_v15 = vand.u32 4294901760, %v14476_v41 }
 0x76b   : >> { %13812 = vmatmul.mubr.f32.vlgmr.msra.gmra.mrb[26].mxu1 %v18420_v9  ;;  %v14960_v51 = vsub.f32 %v14958_v32, %v14959_v38 }
 0x76c   : >> { %13821 = vmatpush1.msra.mxu1 %v19851_v29  ;;  %13884 = vmatprep.mubr.f32.mxu1 %v20246_v31  ;;  %v14482_v29 = vsub.f32 %v19933_v17, %v14481_v20 }
 0x76d   : >> { %14396 = vmatprep.subr.mxu1 %v19916_v46 }
 0x76e   : >> { %v14483_v21 = vand.u32 4294901760, %v14482_v29 }
 0x76f   : >> { %14296 = vmatmul.mubr.f32.vlgmr.msra.gmra.mrb[28].mxu0 %v18422_v10 }
 0x770   : >> { %14305 = vmatpush1.msra.mxu0 %v19871_v6  ;;  %14368 = vmatprep.mubr.f32.mxu0 %v20246_v31  ;;  %v14966_v6 = vsub.f32 %v19946_v44, %v14965_v30 }
 0x771   : >> { %14880 = vmatprep.subr.mxu0 %v19929_v36 }
 0x772   : >> { %v14967_v63 = vand.u32 4294901760, %v14966_v6 }
 0x773   : >> { %13886 = vmatmul.mubr.f32.vlgmr.msra.gmra.mrb[26].mxu1 %v18420_v9  ;;  %v14961_v9 = vand.u32 4294901760, %v14960_v51 }
 0x774   : >> { %14398 = vmatpush1.msra.mxu1 %v19924_v11  ;;  %14461 = vmatprep.mubr.f32.mxu1 %v20246_v31 }
 0x775   : >> { %14478 = vmatprep.subr.mxu1 %v14477_v15 }
 0x777   : >> { %14467 = vmatmul.mubr.f32.vlgmr.msra.gmra.mrb[28].mxu1 %v18632_v61  ;;  %14370 = vmatmul.mubr.f32.vlgmr.msra.gmra.mrb[28].mxu0 %v18422_v10  ;;  %v15349_v10 = vmul.f32 %v19570_v28, %v19809_v7  ;;  %v15829_v61 = vpop.permute.xlu1 %15828 }
 0x778   : >> { %14484 = vmatpush1.msra.mxu1 %v14483_v21  ;;  %14547 = vmatprep.mubr.f32.mxu1 %v20246_v31  ;;  %v15831_v28 = vsel %vm2713_vm6, %v15829_v61, %v15827_v52  ;;  %v15830_v40 = vsel %vm2713_vm6, %v15827_v52, %v15829_v61 }
 0x779   : >> { %14557 = vmatprep.subr.mxu1 %v14474_v57  ;;  %14882 = vmatpush1.msra.mxu0 %v19938_v18  ;;  %v15352_v34 = vsel %vm263_vm3, %v15349_v10, 0 }
 0x77a   : >> { %14945 = vmatprep.mubr.f32.mxu0 %v20246_v31  ;;  %14962 = vmatprep.subr.mxu0 %v14961_v9  ;;  %v19995_v0 = vand.u32 4294901760, %v15352_v34 }
 0x77b   : >> { %14951 = vmatmul.mubr.f32.vlgmr.msra.gmra.mrb[30].mxu0 %v18636_v4  ;;  %v15351_v4 = vcombine.high %v15349_v10, %v15349_v10 }
 0x77c   : >> { %14968 = vmatpush1.msra.mxu0 %v14967_v63  ;;  %15031 = vmatprep.mubr.f32.mxu0 %v20246_v31 }
 0x77d   : >> { %15041 = vmatprep.subr.mxu0 %v14958_v32  ;;  %v15354_v7 = vsel %vm263_vm3, %v15351_v4, 0 }
 0x77e   : >> { %v19988_v24 = vand.u32 4294901760, %v15354_v7 }
 0x77f   : >> { %14549 = vmatmul.mubr.f32.vlgmr.msra.gmra.mrb[28].mxu1 %v18562_v37 }
 0x780   : >> { %14560 = vmatpush1.msra.mxu1 %v19933_v17  ;;  %14623 = vmatprep.mubr.f32.mxu1 %v20246_v31  ;;  %v19998_v12 = vsub.f32 %v15354_v7, %v19988_v24 }
 0x781   : >> { %14633 = vmatprep.subr.mxu1 %v19916_v46 }
 0x782   : >> { %v15436_v5 = vand.u32 4294901760, %v19998_v12 }
 0x783   : >> { %15033 = vmatmul.mubr.f32.vlgmr.msra.gmra.mrb[30].mxu0 %v18569_v39 }
 0x784   : >> { %15044 = vmatpush1.msra.mxu0 %v19946_v44  ;;  %15107 = vmatprep.mubr.f32.mxu0 %v20246_v31 }
 0x785   : >> { %15117 = vmatprep.subr.mxu0 %v19929_v36 }
 0x787   : >> { %14626 = vmatmul.mubr.f32.vlgmr.msra.gmra.mrb[28].mxu1 %v18586_v49  ;;  %v15833_v49 = vmul.f32 %v15831_v28, %v18670_v19 }
 0x788   : >> { %14635 = vmatpush1.msra.mxu1 %v19924_v11  ;;  %14698 = vmatprep.mubr.f32.mxu1 %v20246_v31 }
 0x789   : >> { %14711 = vmatprep.subr.mxu1 %v14475_v26  ;;  %v15838_v19 = vsel %vm263_vm3, %v15833_v49, 0 }
 0x78a   : >> { %v20001_v1 = vand.u32 4294901760, %v15838_v19 }
 0x78b   : >> { %15110 = vmatmul.mubr.f32.vlgmr.msra.gmra.mrb[30].mxu0 %v18592_v50  ;;  %v15832_v50 = vmul.f32 %v19598_v23, %v15830_v40  ;;  %v20006_v23 = vsub.f32 %v15352_v34, %v19995_v0 }
 0x78c   : >> { %15119 = vmatpush1.msra.mxu0 %v19938_v18  ;;  %15182 = vmatprep.mubr.f32.mxu0 %v20246_v31 }
 0x78d   : >> { %15195 = vmatprep.subr.mxu0 %v14959_v38  ;;  %v15442_v22 = vand.u32 4294901760, %v20006_v23 }
 0x78f   : >> { %14702 = vmatmul.mubr.f32.vlgmr.msra.gmra.mrb[28].mxu1 %v18600_v42  ;;  %v15835_v42 = vsel %vm263_vm3, %v15832_v50, 0  ;;  %v20286_v50 = vld [vmem:[#allocation13_spill] sm:$0xff] }
 0x790   : >> { %14715 = vmatpush1.msra.mxu1 %v14481_v20  ;;  %14778 = vmatprep.mubr.f32.mxu1 %v20246_v31  ;;  %v20011_v53 = vand.u32 4294901760, %v15835_v42 }
 0x791   : >> { %14787 = vmatprep.subr.mxu1 %v19916_v46  ;;  %v15437_v46 = vsub.f32 %v19998_v12, %v15436_v5 }
 0x792   : >> { %v20022_v13 = vsub.f32 %v15835_v42, %v20011_v53  ;;  %v20289_v42 = vld [vmem:[#allocation9_spill] sm:$0xff] }
 0x793   : >> { %15186 = vmatmul.mubr.f32.vlgmr.msra.gmra.mrb[30].mxu0 %v18607_v54  ;;  %v20016_v54 = vsub.f32 %v15838_v19, %v20001_v1  ;;  %v15438_v35 = vand.u32 4294901760, %v15437_v46  ;;  %v20292_v46 = vld [vmem:[#allocation10_spill] sm:$0xff] }
 0x794   : >> { %15199 = vmatpush1.msra.mxu0 %v14965_v30  ;;  %15262 = vmatprep.mubr.f32.mxu0 %v20246_v31  ;;  %v15926_v57 = vand.u32 4294901760, %v20022_v13 }
 0x795   : >> { %15271 = vmatprep.subr.mxu0 %v19929_v36  ;;  %v15920_v48 = vand.u32 4294901760, %v20016_v54 }
 0x796   : >> { %v15927_v17 = vsub.f32 %v20022_v13, %v15926_v57 }
 0x797   : >> { %14780 = vmatmul.mubr.f32.vlgmr.msra.gmra.mrb[28].mxu1 %v18562_v37  ;;  %v15921_v8 = vsub.f32 %v20016_v54, %v15920_v48 }
 0x798   : >> { %14789 = vmatpush1.msra.mxu1 %v19924_v11  ;;  %14852 = vmatprep.mubr.f32.mxu1 %v20246_v31  ;;  %v15443_v11 = vsub.f32 %v20006_v23, %v15442_v22  ;;  %v15928_v26 = vand.u32 4294901760, %v15927_v17 }
 0x799   : >> { %15357 = vmatprep.subr.mxu1 %v19988_v24 }
 0x79a   : >> { %v15444_v36 = vand.u32 4294901760, %v15443_v11 }
 0x79b   : >> { %15264 = vmatmul.mubr.f32.vlgmr.msra.gmra.mrb[30].mxu0 %v18569_v39 }
 0x79c   : >> { %15273 = vmatpush1.msra.mxu0 %v19938_v18  ;;  %15336 = vmatprep.mubr.f32.mxu0 %v20246_v31 }
 0x79d   : >> { %15841 = vmatprep.subr.mxu0 %v20001_v1 }
 0x79f   : >> { %14854 = vmatmul.mubr.f32.vlgmr.msra.gmra.mrb[28].mxu1 %v18562_v37  ;;  %v15922_v37 = vand.u32 4294901760, %v15921_v8 }
 0x7a0   : >> { %15359 = vmatpush1.msra.mxu1 %v19995_v0  ;;  %15422 = vmatprep.mubr.f32.mxu1 %v20246_v31 }
 0x7a1   : >> { %15439 = vmatprep.subr.mxu1 %v15438_v35 }
 0x7a3   : >> { %15428 = vmatmul.mubr.f32.vlgmr.msra.gmra.mrb[30].mxu1 %v18775_v25  ;;  %15338 = vmatmul.mubr.f32.vlgmr.msra.gmra.mrb[30].mxu0 %v18569_v39  ;;  %v16313_v39 = vpop.permute.xlu1 %16312  ;;  %v16311_v25 = vpop.permute.xlu0 %16310 }
 0x7a4   : >> { %15445 = vmatpush1.msra.mxu1 %v15444_v36  ;;  %15508 = vmatprep.mubr.f32.mxu1 %v20246_v31  ;;  %v16315_v18 = vsel %vm3208_vm7, %v16313_v39, %v16311_v25 }
 0x7a5   : >> { %15518 = vmatprep.subr.mxu1 %v19998_v12  ;;  %15843 = vmatpush1.msra.mxu0 %v20011_v53  ;;  %v16317_v32 = vmul.f32 %v16315_v18, %v18810_v45  ;;  %v20288_v12 = vld [vmem:[#allocation8_spill] sm:$0xff]  ;;  %v20295_v18 = vld [vmem:[#allocation19_spill] sm:$0xff] }
 0x7a6   : >> { %15906 = vmatprep.mubr.f32.mxu0 %v20246_v31  ;;  %15923 = vmatprep.subr.mxu0 %v15922_v37 }
 0x7a7   : >> { %15912 = vmatmul.mubr.f32.vlgmr.msra.gmra.mrb[32].mxu0 %v18779_v27  ;;  %v16314_v27 = vsel %vm3208_vm7, %v16311_v25, %v16313_v39  ;;  %v16797_v20 = vpop.permute.xlu1 %16796  ;;  %v16795_v41 = vpop.permute.xlu0 %16794  ;;  %v16322_v29 = vsel %vm263_vm3, %v16317_v32, 0  ;;  %v20297_v32 = vld [vmem:[#allocation17_spill] sm:$0xff] }
 0x7a8   : >> { %15929 = vmatpush1.msra.mxu0 %v15928_v26  ;;  %15992 = vmatprep.mubr.f32.mxu0 %v20246_v31  ;;  %v16316_v44 = vmul.f32 %v19676_v3, %v16314_v27  ;;  %v16799_v38 = vsel %vm3703_vm8, %v16797_v20, %v16795_v41  ;;  %v20072_v30 = vand.u32 4294901760, %v16322_v29  ;;  %v20296_v27 = vld [vmem:[#allocation16_spill] sm:$0xff] }
 0x7a9   : >> { %16002 = vmatprep.subr.mxu0 %v20016_v54  ;;  %v16801_v45 = vmul.f32 %v16799_v38, %v18818_v16  ;;  %v20299_v38 = vld [vmem:[#allocation2_spill] sm:$0xff] }
 0x7aa   : >> { %v16319_v15 = vsel %vm263_vm3, %v16316_v44, 0  ;;  %v20082_v51 = vsub.f32 %v16322_v29, %v20072_v30 }
 0x7ab   : >> { %15510 = vmatmul.mubr.f32.vlgmr.msra.gmra.mrb[30].mxu1 %v18705_v47  ;;  %v20078_v3 = vand.u32 4294901760, %v16319_v15  ;;  %v16806_v16 = vsel %vm263_vm3, %v16801_v45, 0  ;;  %v17279_v19 = vpop.permute.xlu0 %17278 }
 0x7ac   : >> { %15521 = vmatpush1.msra.mxu1 %v20006_v23  ;;  %15584 = vmatprep.mubr.f32.mxu1 %v20246_v31  ;;  %v20085_v6 = vand.u32 4294901760, %v16806_v16  ;;  %v20290_v23 = vld [vmem:[#allocation15_spill] sm:$0xff] }
 0x7ad   : >> { %15594 = vmatprep.subr.mxu1 %v19988_v24 }
 0x7af   : >> { %15994 = vmatmul.mubr.f32.vlgmr.msra.gmra.mrb[32].mxu0 %v18712_v43 }
 0x7b0   : >> { %16005 = vmatpush1.msra.mxu0 %v20022_v13  ;;  %16068 = vmatprep.mubr.f32.mxu0 %v20246_v31 }
 0x7b1   : >> { %16078 = vmatprep.subr.mxu0 %v20001_v1 }
 0x7b3   : >> { %15587 = vmatmul.mubr.f32.vlgmr.msra.gmra.mrb[30].mxu1 %v18729_v58  ;;  %v16798_v58 = vsel %vm3703_vm8, %v16795_v41, %v16797_v20  ;;  %v20298_v20 = vld [vmem:[#allocation18_spill] sm:$0xff]  ;;  %v13407_v41 = vstv %s13404_s17 }
 0x7b4   : >> { %15596 = vmatpush1.msra.mxu1 %v19995_v0  ;;  %15659 = vmatprep.mubr.f32.mxu1 %v20246_v31  ;;  %v13408_v29 = vmul.f32 %v13407_v41, %v20299_v38 }
 0x7b5   : >> { %15672 = vmatprep.subr.mxu1 %v15436_v5 }
 0x7b7   : >> { %16071 = vmatmul.mubr.f32.vlgmr.msra.gmra.mrb[32].mxu0 %v18735_v59  ;;  %v16800_v59 = vmul.f32 %v19698_v55, %v16798_v58  ;;  %v16404_v55 = vand.u32 4294901760, %v20082_v51 }
 0x7b8   : >> { %16080 = vmatpush1.msra.mxu0 %v20011_v53  ;;  %16143 = vmatprep.mubr.f32.mxu0 %v20246_v31 }
 0x7b9   : >> { %16156 = vmatprep.subr.mxu0 %v15920_v48  ;;  %v16803_v21 = vsel %vm263_vm3, %v16800_v59, 0  ;;  %v16405_v10 = vsub.f32 %v20082_v51, %v16404_v55  ;;  %v20293_v48 = vld [vmem:[#allocation11_spill] sm:$0xff] }
 0x7ba   : >> { %v20095_v9 = vand.u32 4294901760, %v16803_v21 }
 0x7bb   : >> { %15663 = vmatmul.mubr.f32.vlgmr.msra.gmra.mrb[30].mxu1 %v20259_v33  ;;  %v20089_v33 = vsub.f32 %v16319_v15, %v20078_v3  ;;  %v16406_v28 = vand.u32 4294901760, %v16405_v10  ;;  %v20300_v15 = vld [vmem:[#allocation3_spill] sm:$0xff] }
 0x7bc   : >> { %15676 = vmatpush1.msra.mxu1 %v15442_v22  ;;  %15739 = vmatprep.mubr.f32.mxu1 %v20246_v31  ;;  %v20104_v61 = vsub.f32 %v16803_v21, %v20095_v9 }
 0x7bd   : >> { %15748 = vmatprep.subr.mxu1 %v19988_v24  ;;  %v16410_v63 = vand.u32 4294901760, %v20089_v33 }
 0x7be   : >> { %v16894_v7 = vand.u32 4294901760, %v20104_v61 }
 0x7bf   : >> { %16147 = vmatmul.mubr.f32.vlgmr.msra.gmra.mrb[32].mxu0 %v20261_v56  ;;  %v16887_v56 = vsub.f32 %v16806_v16, %v20085_v6  ;;  %v16411_v52 = vsub.f32 %v20089_v33, %v16410_v63 }
 0x7c0   : >> { %16160 = vmatpush1.msra.mxu0 %v15926_v57  ;;  %16223 = vmatprep.mubr.f32.mxu0 %v20246_v31  ;;  %v16895_v24 = vsub.f32 %v20104_v61, %v16894_v7  ;;  %v20294_v57 = vld [vmem:[#allocation12_spill] sm:$0xff] }
 0x7c1   : >> { %16232 = vmatprep.subr.mxu0 %v20001_v1  ;;  %v16888_v4 = vand.u32 4294901760, %v16887_v56  ;;  %v16412_v49 = vand.u32 4294901760, %v16411_v52 }
 0x7c2   : >> { %v16896_v34 = vand.u32 4294901760, %v16895_v24 }
 0x7c3   : >> { %15741 = vmatmul.mubr.f32.vlgmr.msra.gmra.mrb[30].mxu1 %v18705_v47  ;;  %v16889_v40 = vsub.f32 %v16887_v56, %v16888_v4 }
 0x7c4   : >> { %15750 = vmatpush1.msra.mxu1 %v19995_v0  ;;  %15813 = vmatprep.mubr.f32.mxu1 %v20246_v31 }
 0x7c5   : >> { %16325 = vmatprep.subr.mxu1 %v20072_v30 }
 0x7c7   : >> { %16225 = vmatmul.mubr.f32.vlgmr.msra.gmra.mrb[32].mxu0 %v18712_v43 }
 0x7c8   : >> { %16234 = vmatpush1.msra.mxu0 %v20011_v53  ;;  %16297 = vmatprep.mubr.f32.mxu0 %v20246_v31  ;;  %v20291_v53 = vld [vmem:[#allocation4_spill] sm:$0xff] }
 0x7c9   : >> { %16809 = vmatprep.subr.mxu0 %v20085_v6 }
 0x7cb   : >> { %15815 = vmatmul.mubr.f32.vlgmr.msra.gmra.mrb[30].mxu1 %v18705_v47  ;;  %v16890_v47 = vand.u32 4294901760, %v16889_v40 }
 0x7cc   : >> { %16327 = vmatpush1.msra.mxu1 %v20078_v3  ;;  %16390 = vmatprep.mubr.f32.mxu1 %v20246_v31 }
 0x7cd   : >> { %16407 = vmatprep.subr.mxu1 %v16406_v28 }
 0x7cf   : >> { %16396 = vmatmul.mubr.f32.vlgmr.msra.gmra.mrb[32].mxu1 %v18925_v62  ;;  %16299 = vmatmul.mubr.f32.vlgmr.msra.gmra.mrb[32].mxu0 %v18712_v43  ;;  %v20287_v62 = vld [vmem:[#allocation7_spill] sm:$0xff]  ;;  %v17281_v43 = vpop.permute.xlu1 %17280 }
 0x7d0   : >> { %16413 = vmatpush1.msra.mxu1 %v16412_v49  ;;  %16476 = vmatprep.mubr.f32.mxu1 %v20246_v31  ;;  %v17283_v0 = vsel %vm4198_vm9, %v17281_v43, %v17279_v19  ;;  %v17282_v1 = vsel %vm4198_vm9, %v17279_v19, %v17281_v43 }
 0x7d1   : >> { %16486 = vmatprep.subr.mxu1 %v20082_v51  ;;  %16811 = vmatpush1.msra.mxu0 %v20095_v9  ;;  %v17285_v5 = vmul.f32 %v17283_v0, %v20290_v23  ;;  %v17284_v54 = vmul.f32 %v20291_v53, %v17282_v1 }
 0x7d2   : >> { %16874 = vmatprep.mubr.f32.mxu0 %v20246_v31  ;;  %16891 = vmatprep.subr.mxu0 %v16890_v47 }
 0x7d3   : >> { %16880 = vmatmul.mubr.f32.vlgmr.msra.gmra.mrb[34].mxu0 %v20286_v50  ;;  %v17290_v22 = vsel %vm263_vm3, %v17285_v5, 0  ;;  %v17287_v14 = vsel %vm263_vm3, %v17284_v54, 0 }
 0x7d4   : >> { %16897 = vmatpush1.msra.mxu0 %v16896_v34  ;;  %16960 = vmatprep.mubr.f32.mxu0 %v20246_v31  ;;  %v17292_v13 = vand.u32 4294901760, %v17290_v22  ;;  %v17294_v11 = vand.u32 4294901760, %v17287_v14 }
 0x7d5   : >> { %16970 = vmatprep.subr.mxu0 %v16887_v56 }
 0x7d6   : >> { %v17371_v35 = vsub.f32 %v17290_v22, %v17292_v13  ;;  %v17377_v8 = vsub.f32 %v17287_v14, %v17294_v11 }
 0x7d7   : >> { %16478 = vmatmul.mubr.f32.vlgmr.msra.gmra.mrb[32].mxu1 %v20287_v62 }
 0x7d8   : >> { %16489 = vmatpush1.msra.mxu1 %v20089_v33  ;;  %16552 = vmatprep.mubr.f32.mxu1 %v20246_v31  ;;  %v17372_v36 = vand.u32 4294901760, %v17371_v35  ;;  %v17378_v17 = vand.u32 4294901760, %v17377_v8 }
 0x7d9   : >> { %16562 = vmatprep.subr.mxu1 %v20072_v30 }
 0x7da   : >> { %v17373_v37 = vsub.f32 %v17371_v35, %v17372_v36  ;;  %v17379_v26 = vsub.f32 %v17377_v8, %v17378_v17 }
 0x7db   : >> { %16962 = vmatmul.mubr.f32.vlgmr.msra.gmra.mrb[34].mxu0 %v20288_v12 }
 0x7dc   : >> { %16973 = vmatpush1.msra.mxu0 %v20104_v61  ;;  %17036 = vmatprep.mubr.f32.mxu0 %v20246_v31  ;;  %v17374_v39 = vand.u32 4294901760, %v17373_v37  ;;  %v17380_v25 = vand.u32 4294901760, %v17379_v26 }
 0x7dd   : >> { %17046 = vmatprep.subr.mxu0 %v20085_v6 }
 0x7df   : >> { %16555 = vmatmul.mubr.f32.vlgmr.msra.gmra.mrb[32].mxu1 %v20289_v42 }
 0x7e0   : >> { %16564 = vmatpush1.msra.mxu1 %v20078_v3  ;;  %16627 = vmatprep.mubr.f32.mxu1 %v20246_v31 }
 0x7e1   : >> { %16640 = vmatprep.subr.mxu1 %v16404_v55 }
 0x7e3   : >> { %17039 = vmatmul.mubr.f32.vlgmr.msra.gmra.mrb[34].mxu0 %v20292_v46 }
 0x7e4   : >> { %17048 = vmatpush1.msra.mxu0 %v20095_v9  ;;  %17111 = vmatprep.mubr.f32.mxu0 %v20246_v31 }
 0x7e5   : >> { %17124 = vmatprep.subr.mxu0 %v16888_v4 }
 0x7e7   : >> { %16631 = vmatmul.mubr.f32.vlgmr.msra.gmra.mrb[32].mxu1 %v20293_v48 }
 0x7e8   : >> { %16644 = vmatpush1.msra.mxu1 %v16410_v63  ;;  %16707 = vmatprep.mubr.f32.mxu1 %v20246_v31 }
 0x7e9   : >> { %16716 = vmatprep.subr.mxu1 %v20072_v30  ;;  %v13409_v30 = vadd.f32 %v13408_v29, %v20300_v15 }
 0x7eb   : >> { %17115 = vmatmul.mubr.f32.vlgmr.msra.gmra.mrb[34].mxu0 %v20294_v57 }
 0x7ec   : >> { %17128 = vmatpush1.msra.mxu0 %v16894_v7  ;;  %17191 = vmatprep.mubr.f32.mxu0 %v20246_v31 }
 0x7ed   : >> { %17200 = vmatprep.subr.mxu0 %v20085_v6 }
 0x7ef   : >> { %16709 = vmatmul.mubr.f32.vlgmr.msra.gmra.mrb[32].mxu1 %v20287_v62 }
 0x7f0   : >> { %16718 = vmatpush1.msra.mxu1 %v20078_v3  ;;  %16781 = vmatprep.mubr.f32.mxu1 %v20246_v31 }
 0x7f1   : >> { %17293 = vmatprep.subr.mxu1 %v17292_v13 }
 0x7f3   : >> { %17193 = vmatmul.mubr.f32.vlgmr.msra.gmra.mrb[34].mxu0 %v20288_v12 }
 0x7f4   : >> { %17202 = vmatpush1.msra.mxu0 %v20095_v9  ;;  %17265 = vmatprep.mubr.f32.mxu0 %v20246_v31 }
 0x7f7   : >> { %16783 = vmatmul.mubr.f32.vlgmr.msra.gmra.mrb[32].mxu1 %v20287_v62 }
 0x7f8   : >> { %17295 = vmatpush1.msra.mxu1 %v17294_v11  ;;  %17358 = vmatprep.mubr.f32.mxu1 %v20246_v31 }
 0x7f9   : >> { %17375 = vmatprep.subr.mxu1 %v17374_v39 }
 0x7fb   : >> { %17364 = vmatmul.mubr.f32.vlgmr.msra.gmra.mrb[34].mxu1 %v20295_v18  ;;  %17267 = vmatmul.mubr.f32.vlgmr.msra.gmra.mrb[34].mxu0 %v20288_v12 }
 0x7fc   : >> { %17381 = vmatpush1.msra.mxu1 %v17380_v25  ;;  %17444 = vmatprep.mubr.f32.mxu1 %v20246_v31 }
 0x7fd   : >> { %17454 = vmatprep.subr.mxu1 %v17371_v35 }
 0x803   : >> { %17446 = vmatmul.mubr.f32.vlgmr.msra.gmra.mrb[34].mxu1 %v20296_v27 }
 0x804   : >> { %17457 = vmatpush1.msra.mxu1 %v17377_v8  ;;  %17520 = vmatprep.mubr.f32.mxu1 %v20246_v31 }
 0x805   : >> { %17530 = vmatprep.subr.mxu1 %v17292_v13 }
 0x80b   : >> { %17523 = vmatmul.mubr.f32.vlgmr.msra.gmra.mrb[34].mxu1 %v20297_v32 }
 0x80c   : >> { %17532 = vmatpush1.msra.mxu1 %v17294_v11  ;;  %17595 = vmatprep.mubr.f32.mxu1 %v20246_v31 }
 0x80d   : >> { %17608 = vmatprep.subr.mxu1 %v17372_v36 }
 0x813   : >> { %17599 = vmatmul.mubr.f32.vlgmr.msra.gmra.mrb[34].mxu1 %v20298_v20 }
 0x814   : >> { %17612 = vmatpush1.msra.mxu1 %v17378_v17  ;;  %17675 = vmatprep.mubr.f32.mxu1 %v20246_v31 }
 0x815   : >> { %17684 = vmatprep.subr.mxu1 %v17292_v13 }
 0x81b   : >> { %17677 = vmatmul.mubr.f32.vlgmr.msra.gmra.mrb[34].mxu1 %v20296_v27 }
 0x81c   : >> { %17686 = vmatpush1.msra.mxu1 %v17294_v11  ;;  %17749 = vmatprep.mubr.f32.mxu1 %v20246_v31 }
 0x823   : >> { %17751 = vmatmul.mubr.f32.vlgmr.msra.gmra.mrb[34].mxu1 %v20296_v27 }
 0x846   : >> { %v13887_v44 = vpop.f32.mrb[26].mxu1 }
 0x847   : >> { %v13889_v58 = vpop.f32.mrb[27].mxu1 }
 0x848   : >> { %v13894_v45 = vcombine.low %v13887_v44, %v13889_v58 }
 0x84a   : >> { %v14371_v59 = vpop.f32.mrb[28].mxu0  ;;  %v13896_v16 = vadd.f32 %v13894_v45, %v13409_v30 }
 0x84b   : >> { %v14373_v3 = vpop.f32.mrb[29].mxu0 }
 0x84c   : >> { %v14378_v51 = vcombine.low %v14371_v59, %v14373_v3 }
 0x84e   : >> { %v14380_v21 = vadd.f32 %v14378_v51, %v13896_v16 }
 0x872   : >> { %v14855_v6 = vpop.f32.mrb[28].mxu1 }
 0x873   : >> { %v14857_v33 = vpop.f32.mrb[29].mxu1 }
 0x874   : >> { %v14862_v55 = vcombine.low %v14855_v6, %v14857_v33 }
 0x876   : >> { %v14864_v31 = vadd.f32 %v14862_v55, %v14380_v21  ;;  %v15339_v9 = vpop.f32.mrb[30].mxu0 }
 0x877   : >> { %v15341_v56 = vpop.f32.mrb[31].mxu0 }
 0x878   : >> { %v15346_v63 = vcombine.low %v15339_v9, %v15341_v56 }
 0x87a   : >> { %v15348_v10 = vadd.f32 %v15346_v63, %v14864_v31 }
 0x89e   : >> { %v15816_v61 = vpop.f32.mrb[30].mxu1 }
 0x89f   : >> { %v15818_v4 = vpop.f32.mrb[31].mxu1 }
 0x8a0   : >> { %v15823_v52 = vcombine.low %v15816_v61, %v15818_v4 }
 0x8a2   : >> { %v15825_v28 = vadd.f32 %v15823_v52, %v15348_v10  ;;  %v16300_v7 = vpop.f32.mrb[32].mxu0 }
 0x8a3   : >> { %v16302_v40 = vpop.f32.mrb[33].mxu0 }
 0x8a4   : >> { %v16307_v49 = vcombine.low %v16300_v7, %v16302_v40 }
 0x8a6   : >> { %v16309_v24 = vadd.f32 %v16307_v49, %v15825_v28 }
 0x8ca   : >> { %v16784_v47 = vpop.f32.mrb[32].mxu1 }
 0x8cb   : >> { %v16786_v34 = vpop.f32.mrb[33].mxu1 }
 0x8cc   : >> { %v16791_v50 = vcombine.low %v16784_v47, %v16786_v34 }
 0x8ce   : >> { %v16793_v62 = vadd.f32 %v16791_v50, %v16309_v24  ;;  %v17268_v43 = vpop.f32.mrb[34].mxu0 }
 0x8cf   : >> { %v17270_v19 = vpop.f32.mrb[35].mxu0 }
 0x8d0   : >> { %v17275_v0 = vcombine.low %v17268_v43, %v17270_v19 }
 0x8d2   : >> { %v17277_v12 = vadd.f32 %v17275_v0, %v16793_v62 }
 0x8f6   : >> { %v17752_v42 = vpop.f32.mrb[34].mxu1 }
 0x8f7   : >> { %v17754_v1 = vpop.f32.mrb[35].mxu1 }
 0x8f8   : >> { %v17759_v23 = vcombine.low %v17752_v42, %v17754_v1 }
 0x8fa   : >> { %v17761_v5 = vadd.f32 %v17759_v23, %v17277_v12 }
 0x8fc   : >> { %18270 = vtanh.f32 %v17761_v5 }
 0x906   : >> { %v18271_v53 = vpop.eup %18270 }
 0x907   : >> { %v17767_v54 = vadd.f32 %v18271_v53, %v19811_v60  ;;  %232 = sbr.rel (!%p230_p4) target bundleno = 19 (0x13), region = 93 }
 0x909   : >> { %v17768_v22 = vmul.f32 0.020833334, %v17767_v54 }
 0x90b   : >> { %v17769_v46 = vadd.f32 %v18303_v2, %v17768_v22  }
 0x90d   : >> { %v20301_v2 = vmov %v17769_v46  ;;  %17770 = vst [vmem:[%s18372_s30] sm:$0xff] (%p230_p4), %v17769_v46 }
 0x90e PF: > { %s15_s18 = sadd.s32 1, %s18299_s18  }
 0x90f   : > { %p12_p5 = scmp.ge.s32.totalorder %s15_s18, 4  }
 0x911   :  { %14 = sbr.rel (!%p12_p5) target bundleno = 1 (0x1), region = 104 }

</bundles_post_ra>
